<compile_context>
chip_gen: v5e
topology: v5e:2x2
jax: 0.10.0
libtpu: 0.0.40
codegen_flags: <defaults>
</compile_context>

<pallas_src>
import functools

import jax
import jax.numpy as jnp
import numpy as np
from jax.experimental import pallas as pl
from jax.experimental.pallas import tpu as pltpu

LEAKY_SLOPE = 0.01
BN_EPS = 1e-5
LANE = 128
STATS_ROWS = 8  # sum in row 0, sum-of-squares in row 1, rest zero (tile-aligned)


def _round_up(n, m):
    return (n + m - 1) // m * m


def _choose_tile_rows(h, w, cin_p, cout_p, max_rows=8, budget_bytes=12 * 2**20):
    """Largest divisor of h (<= max_rows) whose per-step working set fits the budget.

    Budget is conservative so the same tiling fits v7x's 64 MiB VMEM (and the
    16/32 MiB scoped defaults on v5e/v6e) with double buffering.
    """
    best = 1
    for tr in range(2, min(h, max_rows) + 1):
        if h % tr:
            continue
        est = (2 * tr * w * cin_p * 2             # double-buffered input row block (bf16)
               + (tr + 2) * (w + 2) * cin_p * 6   # assembled halo tile (bf16) + f32 act temp
               + tr * w * 9 * cin_p * 2           # im2col patch (bf16)
               + 2 * 9 * cin_p * cout_p * 2       # double-buffered weights (bf16)
               + tr * w * cout_p * 4              # f32 conv accumulator
               + 2 * tr * w * cout_p * 2)         # double-buffered output block (bf16)
        if est <= budget_bytes:
            best = tr
    return best
    # TODO(synk): for the largest Adabins layers (Cin=2048, Cout=1024) the full weight
    # tensor no longer fits VMEM; add a Cout / K grid axis in that regime.


# ---------------------------------------------------------------------------
# Pallas kernels
# ---------------------------------------------------------------------------
def _conv3x3_stats_kernel(apply_act, tile_rows,
                          xm_ref, xt_ref, xb_ref,     # main rows / top halo / bottom halo
                          scale_ref, shift_ref,       # (1, Cin_p) folded BN of previous stage
                          w_ref, b_ref,               # (9*Cin_p, Cout_p) bf16, (1, Cout_p) f32
                          y_ref, stats_ref):          # (1,Tr,W,Cout_p) bf16, (1,1,8,Cout_p) f32
    ti = pl.program_id(1)
    n_tiles = pl.num_programs(1)
    tr = tile_rows
    _, _, w_dim, cin_p = xm_ref.shape
    cout_p = w_ref.shape[1]

    xm = xm_ref[0]            # (Tr, W, Cin_p) bf16
    xt = xt_ref[0]            # (1,  W, Cin_p) bf16
    xb = xb_ref[0]            # (1,  W, Cin_p) bf16

    if apply_act:
        # Fused BatchNorm (previous stage, folded to per-channel affine) + LeakyReLU.
        sc = scale_ref[...].reshape(1, 1, cin_p)
        sh = shift_ref[...].reshape(1, 1, cin_p)

        def _act(v):
            vf = v.astype(jnp.float32) * sc + sh
            vf = jnp.where(vf > 0, vf, LEAKY_SLOPE * vf)
            return vf.astype(jnp.bfloat16)

        xm, xt, xb = _act(xm), _act(xt), _act(xb)

    # Halo rows outside the image must be zero AFTER the activation (conv zero-padding
    # applies to the activated map).  Out-of-range halo indices were clamped in the
    # index_map, so just zero them here.
    xt = xt * jnp.where(ti == 0, 0, 1).astype(xt.dtype)
    xb = xb * jnp.where(ti == n_tiles - 1, 0, 1).astype(xb.dtype)

    xa = jnp.concatenate([xt, xm, xb], axis=0)                    # (Tr+2, W, Cin_p)
    zcol = jnp.zeros((tr + 2, 1, cin_p), xa.dtype)
    xa = jnp.concatenate([zcol, xa, zcol], axis=1)                # (Tr+2, W+2, Cin_p)

    # im2col -> a single long-K, lane-dense MXU matmul (bf16 operands, f32 accum).
    cols = []
    for dy in range(3):
        for dx in range(3):
            cols.append(xa[dy:dy + tr, dx:dx + w_dim, :])
    patch = jnp.concatenate(cols, axis=-1).reshape(tr * w_dim, 9 * cin_p)

    z = jnp.dot(patch, w_ref[...], preferred_element_type=jnp.float32)
    z = z + b_ref[...]                                            # (Tr*W, Cout_p) f32

    y_ref[...] = z.reshape(1, tr, w_dim, cout_p).astype(y_ref.dtype)

    # Per-tile BatchNorm partials (sum, sum of squares) for the global batch stats.
    ssum = jnp.sum(z, axis=0, keepdims=True)
    ssq = jnp.sum(z * z, axis=0, keepdims=True)
    pad_rows = jnp.zeros((STATS_ROWS - 2, cout_p), jnp.float32)
    stats_ref[...] = jnp.concatenate([ssum, ssq, pad_rows],
                                     axis=0).reshape(1, 1, STATS_ROWS, cout_p)


def _affine_lrelu_kernel(y_ref, scale_ref, shift_ref, o_ref):
    c = o_ref.shape[-1]
    z = (y_ref[...].astype(jnp.float32) * scale_ref[...].reshape(1, 1, 1, c)
         + shift_ref[...].reshape(1, 1, 1, c))
    o_ref[...] = jnp.where(z > 0, z, LEAKY_SLOPE * z)


# ---------------------------------------------------------------------------
# pallas_call builders
# ---------------------------------------------------------------------------
def _conv_bn_stats_call(x_nhwc, scale, shift, w_flat, b, *, apply_act, tile_rows):
    n, h, w, cin_p = x_nhwc.shape
    cout_p = w_flat.shape[1]
    tr = tile_rows
    n_tiles = h // tr

    kernel = functools.partial(_conv3x3_stats_kernel, apply_act, tr)

    y, stats = pl.pallas_call(
        kernel,
        grid=(n, n_tiles),
        in_specs=[
            # main row tile
            pl.BlockSpec((1, tr, w, cin_p), lambda ni, ti: (ni, ti, 0, 0)),
            # top / bottom 1-row halo of the same array (element row = block index
            # because the block row size is 1); clamped at image borders.
            pl.BlockSpec((1, 1, w, cin_p),
                         lambda ni, ti: (ni, jnp.maximum(ti * tr - 1, 0), 0, 0)),
            pl.BlockSpec((1, 1, w, cin_p),
                         lambda ni, ti: (ni, jnp.minimum((ti + 1) * tr, h - 1), 0, 0)),
            pl.BlockSpec((1, cin_p), lambda ni, ti: (0, 0)),          # scale (prev BN)
            pl.BlockSpec((1, cin_p), lambda ni, ti: (0, 0)),          # shift (prev BN)
            pl.BlockSpec((9 * cin_p, cout_p), lambda ni, ti: (0, 0)),  # weights
            pl.BlockSpec((1, cout_p), lambda ni, ti: (0, 0)),          # bias
        ],
        out_specs=(
            pl.BlockSpec((1, tr, w, cout_p), lambda ni, ti: (ni, ti, 0, 0)),
            pl.BlockSpec((1, 1, STATS_ROWS, cout_p), lambda ni, ti: (ni, ti, 0, 0)),
        ),
        out_shape=(
            jax.ShapeDtypeStruct((n, h, w, cout_p), jnp.bfloat16),
            jax.ShapeDtypeStruct((n, n_tiles, STATS_ROWS, cout_p), jnp.float32),
        ),
        compiler_params=pltpu.CompilerParams(
            dimension_semantics=("parallel", "parallel")),
    )(x_nhwc, x_nhwc, x_nhwc, scale, shift, w_flat, b)
    return y, stats


def _bn_lrelu_call(y, scale, shift, *, tile_rows):
    n, h, w, c = y.shape
    tr = tile_rows
    n_tiles = h // tr
    return pl.pallas_call(
        _affine_lrelu_kernel,
        grid=(n, n_tiles),
        in_specs=[
            pl.BlockSpec((1, tr, w, c), lambda ni, ti: (ni, ti, 0, 0)),
            pl.BlockSpec((1, c), lambda ni, ti: (0, 0)),
            pl.BlockSpec((1, c), lambda ni, ti: (0, 0)),
        ],
        out_specs=pl.BlockSpec((1, tr, w, c), lambda ni, ti: (ni, ti, 0, 0)),
        out_shape=jax.ShapeDtypeStruct((n, h, w, c), jnp.float32),
        compiler_params=pltpu.CompilerParams(
            dimension_semantics=("parallel", "parallel")),
    )(y, scale, shift)


# ---------------------------------------------------------------------------
# JAX glue
# ---------------------------------------------------------------------------
def bilinear_upsample_align_corners(x, out_h, out_w):
    """x: (N, C, H, W) -> (N, C, out_h, out_w), matching PyTorch align_corners=True."""
    N, C, H, W = x.shape
    ys = jnp.linspace(0.0, float(H - 1), out_h)
    xs = jnp.linspace(0.0, float(W - 1), out_w)
    y0 = jnp.clip(jnp.floor(ys).astype(jnp.int32), 0, max(H - 2, 0))
    x0 = jnp.clip(jnp.floor(xs).astype(jnp.int32), 0, max(W - 2, 0))
    y1 = jnp.minimum(y0 + 1, H - 1)
    x1 = jnp.minimum(x0 + 1, W - 1)
    wy = (ys - y0.astype(ys.dtype)).reshape(1, 1, out_h, 1)
    wx = (xs - x0.astype(xs.dtype)).reshape(1, 1, 1, out_w)
    rows = x[:, :, y0, :] * (1.0 - wy) + x[:, :, y1, :] * wy
    return rows[:, :, :, x0] * (1.0 - wx) + rows[:, :, :, x1] * wx


def _pad_channels(t, cp):
    pad = cp - t.shape[-1]
    if pad == 0:
        return t
    return jnp.pad(t, ((0, 0), (0, 0), (0, 0), (0, pad)))


def _fold_bn(stats, gamma_p, beta_p, count):
    """Combine per-tile (sum, sumsq) partials into per-channel (scale, shift)."""
    s = jnp.sum(stats, axis=(0, 1))                     # (STATS_ROWS, Cp)
    mean = s[0:1] / count
    var = jnp.maximum(s[1:2] / count - mean * mean, 0.0)   # biased variance (BN training)
    scale = gamma_p * jax.lax.rsqrt(var + BN_EPS)
    shift = beta_p - mean * scale
    return scale.astype(jnp.float32), shift.astype(jnp.float32)


def init_params(key, skip_input, output_features):
    k1, k2, k3, k4 = jax.random.split(key, 4)
    c1, c2 = skip_input, output_features
    w1 = jax.random.normal(k1, (3, 3, c1, c2), jnp.float32) * 0.1   # HWIO
    b1 = jax.random.normal(k2, (c2,), jnp.float32) * 0.01
    w2 = jax.random.normal(k3, (3, 3, c2, c2), jnp.float32) * 0.1
    b2 = jax.random.normal(k4, (c2,), jnp.float32) * 0.01
    g1 = jnp.ones((c2,), jnp.float32)
    be1 = jnp.zeros((c2,), jnp.float32)
    g2 = jnp.ones((c2,), jnp.float32)
    be2 = jnp.zeros((c2,), jnp.float32)
    return (w1, b1, g1, be1, w2, b2, g2, be2)


@jax.jit
def upsample_bn_forward(x, concat_with, params):
    """x, concat_with: NCHW float32. Returns NCHW float32."""
    w1, b1, g1, be1, w2, b2, g2, be2 = params
    n = x.shape[0]
    ho, wo = concat_with.shape[2], concat_with.shape[3]
    c1 = x.shape[1] + concat_with.shape[1]
    c2 = w1.shape[-1]
    c1p, c2p = _round_up(c1, LANE), _round_up(c2, LANE)

    # --- glue: bilinear upsample (align_corners=True) + concat + NHWC + channel pad ---
    # TODO(synk): fuse upsample/concat/transpose into the first Pallas pass (gather via
    # index_map) so `f` is never materialized in HBM.
    up_x = bilinear_upsample_align_corners(x, ho, wo)
    f = jnp.concatenate([up_x, concat_with], axis=1)           # (N, C1, Ho, Wo)
    f = jnp.transpose(f, (0, 2, 3, 1))                         # NHWC
    f = _pad_channels(f, c1p).astype(jnp.bfloat16)             # single HBM materialization

    # --- pad / flatten parameters to lane-dense, MXU-friendly layouts ---
    w1p = jnp.zeros((3, 3, c1p, c2p), jnp.float32).at[:, :, :c1, :c2].set(w1)
    w1p = w1p.reshape(9 * c1p, c2p).astype(jnp.bfloat16)
    w2p = jnp.zeros((3, 3, c2p, c2p), jnp.float32).at[:, :, :c2, :c2].set(w2)
    w2p = w2p.reshape(9 * c2p, c2p).astype(jnp.bfloat16)
    b1p = jnp.zeros((1, c2p), jnp.float32).at[0, :c2].set(b1)
    b2p = jnp.zeros((1, c2p), jnp.float32).at[0, :c2].set(b2)
    g1p = jnp.ones((1, c2p), jnp.float32).at[0, :c2].set(g1)
    g2p = jnp.ones((1, c2p), jnp.float32).at[0, :c2].set(g2)
    be1p = jnp.zeros((1, c2p), jnp.float32).at[0, :c2].set(be1)
    be2p = jnp.zeros((1, c2p), jnp.float32).at[0, :c2].set(be2)

    tr = _choose_tile_rows(ho, wo, max(c1p, c2p), c2p)
    count = float(n * ho * wo)

    # Pass 1: conv1 (+ bias) and per-tile BN1 partial statistics.
    one1 = jnp.ones((1, c1p), jnp.float32)
    zero1 = jnp.zeros((1, c1p), jnp.float32)
    y1, st1 = _conv_bn_stats_call(f, one1, zero1, w1p, b1p,
                                  apply_act=False, tile_rows=tr)
    scale1, shift1 = _fold_bn(st1, g1p, be1p, count)

    # Pass 2: fused BN1 + LeakyReLU on the fly, conv2 (+ bias), BN2 partials.
    y2, st2 = _conv_bn_stats_call(y1, scale1, shift1, w2p, b2p,
                                  apply_act=True, tile_rows=tr)
    scale2, shift2 = _fold_bn(st2, g2p, be2p, count)

    # Pass 3: BN2 + LeakyReLU epilogue (lane-dense elementwise).
    out = _bn_lrelu_call(y2, scale2, shift2, tile_rows=tr)      # (N, Ho, Wo, C2p) f32

    out = out[..., :c2]
    return jnp.transpose(out, (0, 3, 1, 2))                     # back to NCHW


# ---------------------------------------------------------------------------
# Pure-JAX f32 reference (true module semantics) for a correctness spot-check.
# ---------------------------------------------------------------------------
def reference_forward(x, concat_with, params):
    w1, b1, g1, be1, w2, b2, g2, be2 = params
    ho, wo = concat_with.shape[2], concat_with.shape[3]
    up_x = bilinear_upsample_align_corners(x, ho, wo)
    f = jnp.concatenate([up_x, concat_with], axis=1)
    f = jnp.transpose(f, (0, 2, 3, 1))

    def conv(z, w, b):
        y = jax.lax.conv_general_dilated(
            z, w, window_strides=(1, 1), padding="SAME",
            dimension_numbers=("NHWC", "HWIO", "NHWC"))
        return y + b.reshape(1, 1, 1, -1)

    def bn_lrelu(y, gamma, beta):
        m = jnp.mean(y, axis=(0, 1, 2), keepdims=True)
        v = jnp.mean((y - m) ** 2, axis=(0, 1, 2), keepdims=True)
        o = (y - m) * jax.lax.rsqrt(v + BN_EPS) * gamma.reshape(1, 1, 1, -1) \
            + beta.reshape(1, 1, 1, -1)
        return jnp.where(o > 0, o, LEAKY_SLOPE * o)

    a1 = bn_lrelu(conv(f, w1, b1), g1, be1)
    a2 = bn_lrelu(conv(a1, w2, b2), g2, be2)
    return jnp.transpose(a2, (0, 3, 1, 2))


if __name__ == "__main__":
    key = jax.random.PRNGKey(0)
    kx, kc, kp = jax.random.split(key, 3)

    # x: (N=2, Cx=4, 12, 8) upsampled to concat_with's (24, 16) spatial size (3 row tiles
    # of 8 rows -> exercises first / interior / last halo paths).
    x = jax.random.normal(kx, (2, 4, 12, 8), jnp.float32)
    concat_with = jax.random.normal(kc, (2, 4, 24, 16), jnp.float32)

    skip_input = x.shape[1] + concat_with.shape[1]     # 8
    output_features = 8
    params = init_params(kp, skip_input, output_features)

    out = jax.block_until_ready(upsample_bn_forward(x, concat_with, params))
    ref = jax.block_until_ready(reference_forward(x, concat_with, params))

    # Kernel uses bf16 MXU operands (f32 accumulation); reference is pure f32, so allow
    # the expected ~1% relative bf16 error through two conv+BN stages.
    np.testing.assert_allclose(np.asarray(out), np.asarray(ref), rtol=5e-2, atol=5e-2)

    assert out.shape == (2, output_features, 24, 16)
    print("KERNEL_OK")
</pallas_src>

<mosaic_0001>
module attributes {stable_mosaic.version = 11 : i64} {
  func.func @_conv3x3_stats_kernel(%arg0: i32, %arg1: i32, %arg2: memref<1x8x16x128xbf16, #tpu.memory_space<vmem>>, %arg3: memref<1x1x16x128xbf16, #tpu.memory_space<vmem>>, %arg4: memref<1x1x16x128xbf16, #tpu.memory_space<vmem>>, %arg5: memref<1x128xf32, #tpu.memory_space<vmem>>, %arg6: memref<1x128xf32, #tpu.memory_space<vmem>>, %arg7: memref<1152x128xbf16, #tpu.memory_space<vmem>>, %arg8: memref<1x128xf32, #tpu.memory_space<vmem>>, %arg9: memref<1x8x16x128xbf16, #tpu.memory_space<vmem>>, %arg10: memref<1x1x8x128xf32, #tpu.memory_space<vmem>>) attributes {dimension_semantics = [#tpu.dimension_semantics<parallel>, #tpu.dimension_semantics<parallel>], iteration_bounds = array<i64: 2, 3>, scalar_prefetch = 0 : i64, scratch_operands = 0 : i64, tpu.core_type = #tpu.core_type<tc>, window_params = [{transform_indices = @transform_0, window_bounds = array<i64: 1, 8, 16, 128>}, {transform_indices = @transform_1, window_bounds = array<i64: 1, 1, 16, 128>}, {transform_indices = @transform_2, window_bounds = array<i64: 1, 1, 16, 128>}, {pipeline_mode = #tpu.pipeline_mode<synchronous>, transform_indices = @transform_3, window_bounds = array<i64: 1, 128>}, {pipeline_mode = #tpu.pipeline_mode<synchronous>, transform_indices = @transform_4, window_bounds = array<i64: 1, 128>}, {pipeline_mode = #tpu.pipeline_mode<synchronous>, transform_indices = @transform_5, window_bounds = array<i64: 1152, 128>}, {pipeline_mode = #tpu.pipeline_mode<synchronous>, transform_indices = @transform_6, window_bounds = array<i64: 1, 128>}, {transform_indices = @transform_7, window_bounds = array<i64: 1, 8, 16, 128>}, {transform_indices = @transform_8, window_bounds = array<i64: 1, 1, 8, 128>}]} {
    %c0 = arith.constant 0 : index
    %c0_0 = arith.constant 0 : index
    %c0_1 = arith.constant 0 : index
    %c0_2 = arith.constant 0 : index
    %0 = vector.load %arg2[%c0, %c0_0, %c0_1, %c0_2] : memref<1x8x16x128xbf16, #tpu.memory_space<vmem>>, vector<1x8x16x128xbf16>
    %1 = vector.shape_cast %0 : vector<1x8x16x128xbf16> to vector<8x16x128xbf16>
    %c0_3 = arith.constant 0 : index
    %c0_4 = arith.constant 0 : index
    %c0_5 = arith.constant 0 : index
    %c0_6 = arith.constant 0 : index
    %2 = vector.load %arg3[%c0_3, %c0_4, %c0_5, %c0_6] : memref<1x1x16x128xbf16, #tpu.memory_space<vmem>>, vector<1x1x16x128xbf16>
    %3 = vector.shape_cast %2 : vector<1x1x16x128xbf16> to vector<1x16x128xbf16>
    %c0_7 = arith.constant 0 : index
    %c0_8 = arith.constant 0 : index
    %c0_9 = arith.constant 0 : index
    %c0_10 = arith.constant 0 : index
    %4 = vector.load %arg4[%c0_7, %c0_8, %c0_9, %c0_10] : memref<1x1x16x128xbf16, #tpu.memory_space<vmem>>, vector<1x1x16x128xbf16>
    %5 = vector.shape_cast %4 : vector<1x1x16x128xbf16> to vector<1x16x128xbf16>
    %c0_i32 = arith.constant 0 : i32
    %6 = arith.cmpi eq, %arg1, %c0_i32 : i32
    %c0_i32_11 = arith.constant 0 : i32
    %c1_i32 = arith.constant 1 : i32
    %7 = arith.select %6, %c0_i32_11, %c1_i32 : i32
    %8 = arith.sitofp %7 : i32 to bf16
    %9 = vector.broadcast %8 : bf16 to vector<1x16x128xbf16>
    %10 = arith.mulf %3, %9 : vector<1x16x128xbf16>
    %c2_i32 = arith.constant 2 : i32
    %11 = arith.cmpi eq, %arg1, %c2_i32 : i32
    %c0_i32_12 = arith.constant 0 : i32
    %c1_i32_13 = arith.constant 1 : i32
    %12 = arith.select %11, %c0_i32_12, %c1_i32_13 : i32
    %13 = arith.sitofp %12 : i32 to bf16
    %14 = vector.broadcast %13 : bf16 to vector<1x16x128xbf16>
    %15 = arith.mulf %5, %14 : vector<1x16x128xbf16>
    %16 = tpu.concatenate %10, %1, %15 in 0 : vector<1x16x128xbf16>, vector<8x16x128xbf16>, vector<1x16x128xbf16> -> vector<10x16x128xbf16>
    %cst = arith.constant 0.000000e+00 : bf16
    %17 = vector.broadcast %cst : bf16 to vector<10x1x128xbf16>
    %18 = tpu.concatenate %17, %16, %17 in 1 : vector<10x1x128xbf16>, vector<10x16x128xbf16>, vector<10x1x128xbf16> -> vector<10x18x128xbf16>
    %19 = vector.extract_strided_slice %18 {offsets = [0, 0, 0], sizes = [8, 16, 128], strides = [1, 1, 1]} : vector<10x18x128xbf16> to vector<8x16x128xbf16>
    %20 = vector.extract_strided_slice %18 {offsets = [0, 1, 0], sizes = [8, 16, 128], strides = [1, 1, 1]} : vector<10x18x128xbf16> to vector<8x16x128xbf16>
    %21 = vector.extract_strided_slice %18 {offsets = [0, 2, 0], sizes = [8, 16, 128], strides = [1, 1, 1]} : vector<10x18x128xbf16> to vector<8x16x128xbf16>
    %22 = vector.extract_strided_slice %18 {offsets = [1, 0, 0], sizes = [8, 16, 128], strides = [1, 1, 1]} : vector<10x18x128xbf16> to vector<8x16x128xbf16>
    %23 = vector.extract_strided_slice %18 {offsets = [1, 1, 0], sizes = [8, 16, 128], strides = [1, 1, 1]} : vector<10x18x128xbf16> to vector<8x16x128xbf16>
    %24 = vector.extract_strided_slice %18 {offsets = [1, 2, 0], sizes = [8, 16, 128], strides = [1, 1, 1]} : vector<10x18x128xbf16> to vector<8x16x128xbf16>
    %25 = vector.extract_strided_slice %18 {offsets = [2, 0, 0], sizes = [8, 16, 128], strides = [1, 1, 1]} : vector<10x18x128xbf16> to vector<8x16x128xbf16>
    %26 = vector.extract_strided_slice %18 {offsets = [2, 1, 0], sizes = [8, 16, 128], strides = [1, 1, 1]} : vector<10x18x128xbf16> to vector<8x16x128xbf16>
    %27 = vector.extract_strided_slice %18 {offsets = [2, 2, 0], sizes = [8, 16, 128], strides = [1, 1, 1]} : vector<10x18x128xbf16> to vector<8x16x128xbf16>
    %28 = tpu.concatenate %19, %20, %21, %22, %23, %24, %25, %26, %27 in 2 : vector<8x16x128xbf16>, vector<8x16x128xbf16>, vector<8x16x128xbf16>, vector<8x16x128xbf16>, vector<8x16x128xbf16>, vector<8x16x128xbf16>, vector<8x16x128xbf16>, vector<8x16x128xbf16>, vector<8x16x128xbf16> -> vector<8x16x1152xbf16>
    %29 = vector.shape_cast %28 : vector<8x16x1152xbf16> to vector<128x1152xbf16>
    %c0_14 = arith.constant 0 : index
    %c0_15 = arith.constant 0 : index
    %30 = vector.load %arg7[%c0_14, %c0_15] : memref<1152x128xbf16, #tpu.memory_space<vmem>>, vector<1152x128xbf16>
    %cst_16 = arith.constant dense<0.000000e+00> : vector<128x128xf32>
    %31 = tpu.matmul %29, %30, %cst_16 {dimension_numbers = #tpu.dot_dimension_numbers<[1], [0], [0], [1], [0, 0, 1, 1], [], []>} : vector<128x1152xbf16>, vector<1152x128xbf16>, vector<128x128xf32> -> vector<128x128xf32>
    %c0_17 = arith.constant 0 : index
    %c0_18 = arith.constant 0 : index
    %32 = vector.load %arg8[%c0_17, %c0_18] : memref<1x128xf32, #tpu.memory_space<vmem>>, vector<1x128xf32>
    %33 = vector.broadcast %32 : vector<1x128xf32> to vector<128x128xf32>
    %34 = arith.addf %31, %33 : vector<128x128xf32>
    %35 = vector.shape_cast %34 : vector<128x128xf32> to vector<1x8x16x128xf32>
    %36 = arith.truncf %35 : vector<1x8x16x128xf32> to vector<1x8x16x128xbf16>
    %c0_19 = arith.constant 0 : index
    %c0_20 = arith.constant 0 : index
    %c0_21 = arith.constant 0 : index
    %c0_22 = arith.constant 0 : index
    %37 = vector.load %arg9[%c0_19, %c0_20, %c0_21, %c0_22] : memref<1x8x16x128xbf16, #tpu.memory_space<vmem>>, vector<1x8x16x128xbf16>
    tpu.vector_store %arg9[%c0_19, %c0_20, %c0_21, %c0_22], %36 {strides = array<i32>} : memref<1x8x16x128xbf16, #tpu.memory_space<vmem>>, vector<1x8x16x128xbf16>,
    %cst_23 = arith.constant dense<0.000000e+00> : vector<128xf32>
    %38 = vector.multi_reduction <add>, %34, %cst_23 [0] : vector<128x128xf32> to vector<128xf32>
    %39 = vector.shape_cast %38 : vector<128xf32> to vector<1x128xf32>
    %40 = arith.mulf %34, %34 : vector<128x128xf32>
    %cst_24 = arith.constant dense<0.000000e+00> : vector<128xf32>
    %41 = vector.multi_reduction <add>, %40, %cst_24 [0] : vector<128x128xf32> to vector<128xf32>
    %42 = vector.shape_cast %41 : vector<128xf32> to vector<1x128xf32>
    %cst_25 = arith.constant 0.000000e+00 : f32
    %43 = vector.broadcast %cst_25 : f32 to vector<6x128xf32>
    %44 = tpu.concatenate %39, %42, %43 in 0 : vector<1x128xf32>, vector<1x128xf32>, vector<6x128xf32> -> vector<8x128xf32>
    %45 = vector.shape_cast %44 : vector<8x128xf32> to vector<1x1x8x128xf32>
    %c0_26 = arith.constant 0 : index
    %c0_27 = arith.constant 0 : index
    %c0_28 = arith.constant 0 : index
    %c0_29 = arith.constant 0 : index
    %46 = vector.load %arg10[%c0_26, %c0_27, %c0_28, %c0_29] : memref<1x1x8x128xf32, #tpu.memory_space<vmem>>, vector<1x1x8x128xf32>
    tpu.vector_store %arg10[%c0_26, %c0_27, %c0_28, %c0_29], %45 {strides = array<i32>} : memref<1x1x8x128xf32, #tpu.memory_space<vmem>>, vector<1x1x8x128xf32>,
    return
  }
  func.func @transform_0(%arg0: i32, %arg1: i32) -> (i32, i32, i32, i32) {
    %c0_i32 = arith.constant 0 : i32
    %c0_i32_0 = arith.constant 0 : i32
    %c0_i32_1 = arith.constant 0 : i32
    return %arg0, %arg1, %c0_i32, %c0_i32_0 : i32, i32, i32, i32
  }
  func.func @transform_1(%arg0: i32, %arg1: i32) -> (i32, i32, i32, i32) {
    %c8_i32 = arith.constant 8 : i32
    %0 = arith.muli %arg1, %c8_i32 : i32
    %c1_i32 = arith.constant 1 : i32
    %1 = arith.subi %0, %c1_i32 : i32
    %c0_i32 = arith.constant 0 : i32
    %2 = arith.maxsi %1, %c0_i32 : i32
    %c0_i32_0 = arith.constant 0 : i32
    %c0_i32_1 = arith.constant 0 : i32
    %c0_i32_2 = arith.constant 0 : i32
    return %arg0, %2, %c0_i32_0, %c0_i32_1 : i32, i32, i32, i32
  }
  func.func @transform_2(%arg0: i32, %arg1: i32) -> (i32, i32, i32, i32) {
    %c1_i32 = arith.constant 1 : i32
    %0 = arith.addi %arg1, %c1_i32 : i32
    %c8_i32 = arith.constant 8 : i32
    %1 = arith.muli %0, %c8_i32 : i32
    %c23_i32 = arith.constant 23 : i32
    %2 = arith.minsi %1, %c23_i32 : i32
    %c0_i32 = arith.constant 0 : i32
    %c0_i32_0 = arith.constant 0 : i32
    %c0_i32_1 = arith.constant 0 : i32
    return %arg0, %2, %c0_i32, %c0_i32_0 : i32, i32, i32, i32
  }
  func.func @transform_3(%arg0: i32, %arg1: i32) -> (i32, i32) {
    %c0_i32 = arith.constant 0 : i32
    %c0_i32_0 = arith.constant 0 : i32
    %c0_i32_1 = arith.constant 0 : i32
    return %c0_i32, %c0_i32_0 : i32, i32
  }
  func.func @transform_4(%arg0: i32, %arg1: i32) -> (i32, i32) {
    %c0_i32 = arith.constant 0 : i32
    %c0_i32_0 = arith.constant 0 : i32
    %c0_i32_1 = arith.constant 0 : i32
    return %c0_i32, %c0_i32_0 : i32, i32
  }
  func.func @transform_5(%arg0: i32, %arg1: i32) -> (i32, i32) {
    %c0_i32 = arith.constant 0 : i32
    %c0_i32_0 = arith.constant 0 : i32
    %c0_i32_1 = arith.constant 0 : i32
    return %c0_i32, %c0_i32_0 : i32, i32
  }
  func.func @transform_6(%arg0: i32, %arg1: i32) -> (i32, i32) {
    %c0_i32 = arith.constant 0 : i32
    %c0_i32_0 = arith.constant 0 : i32
    %c0_i32_1 = arith.constant 0 : i32
    return %c0_i32, %c0_i32_0 : i32, i32
  }
  func.func @transform_7(%arg0: i32, %arg1: i32) -> (i32, i32, i32, i32) {
    %c0_i32 = arith.constant 0 : i32
    %c0_i32_0 = arith.constant 0 : i32
    %c0_i32_1 = arith.constant 0 : i32
    return %arg0, %arg1, %c0_i32, %c0_i32_0 : i32, i32, i32, i32
  }
  func.func @transform_8(%arg0: i32, %arg1: i32) -> (i32, i32, i32, i32) {
    %c0_i32 = arith.constant 0 : i32
    %c0_i32_0 = arith.constant 0 : i32
    %c0_i32_1 = arith.constant 0 : i32
    return %arg0, %arg1, %c0_i32, %c0_i32_0 : i32, i32, i32, i32
  }
}

module attributes {stable_mosaic.version = 11 : i64} {
  func.func @_affine_lrelu_kernel(%arg0: i32, %arg1: i32, %arg2: memref<1x8x16x128xbf16, #tpu.memory_space<vmem>>, %arg3: memref<1x128xf32, #tpu.memory_space<vmem>>, %arg4: memref<1x128xf32, #tpu.memory_space<vmem>>, %arg5: memref<1x8x16x128xf32, #tpu.memory_space<vmem>>) attributes {dimension_semantics = [#tpu.dimension_semantics<parallel>, #tpu.dimension_semantics<parallel>], iteration_bounds = array<i64: 2, 3>, scalar_prefetch = 0 : i64, scratch_operands = 0 : i64, tpu.core_type = #tpu.core_type<tc>, window_params = [{transform_indices = @transform_0, window_bounds = array<i64: 1, 8, 16, 128>}, {pipeline_mode = #tpu.pipeline_mode<synchronous>, transform_indices = @transform_1, window_bounds = array<i64: 1, 128>}, {pipeline_mode = #tpu.pipeline_mode<synchronous>, transform_indices = @transform_2, window_bounds = array<i64: 1, 128>}, {transform_indices = @transform_3, window_bounds = array<i64: 1, 8, 16, 128>}]} {
    %c0 = arith.constant 0 : index
    %c0_0 = arith.constant 0 : index
    %c0_1 = arith.constant 0 : index
    %c0_2 = arith.constant 0 : index
    %0 = vector.load %arg2[%c0, %c0_0, %c0_1, %c0_2] : memref<1x8x16x128xbf16, #tpu.memory_space<vmem>>, vector<1x8x16x128xbf16>
    %1 = arith.extf %0 : vector<1x8x16x128xbf16> to vector<1x8x16x128xf32>
    %c0_3 = arith.constant 0 : index
    %c0_4 = arith.constant 0 : index
    %2 = vector.load %arg3[%c0_3, %c0_4] : memref<1x128xf32, #tpu.memory_space<vmem>>, vector<1x128xf32>
    %3 = vector.shape_cast %2 : vector<1x128xf32> to vector<1x1x1x128xf32>
    %4 = vector.broadcast %3 : vector<1x1x1x128xf32> to vector<1x8x16x128xf32>
    %5 = arith.mulf %1, %4 : vector<1x8x16x128xf32>
    %c0_5 = arith.constant 0 : index
    %c0_6 = arith.constant 0 : index
    %6 = vector.load %arg4[%c0_5, %c0_6] : memref<1x128xf32, #tpu.memory_space<vmem>>, vector<1x128xf32>
    %7 = vector.shape_cast %6 : vector<1x128xf32> to vector<1x1x1x128xf32>
    %8 = vector.broadcast %7 : vector<1x1x1x128xf32> to vector<1x8x16x128xf32>
    %9 = arith.addf %5, %8 : vector<1x8x16x128xf32>
    %cst = arith.constant 0.000000e+00 : f32
    %10 = vector.broadcast %cst : f32 to vector<1x8x16x128xf32>
    %11 = arith.cmpf ogt, %9, %10 : vector<1x8x16x128xf32>
    %cst_7 = arith.constant 0.00999999977 : f32
    %12 = vector.broadcast %cst_7 : f32 to vector<1x8x16x128xf32>
    %13 = arith.mulf %12, %9 : vector<1x8x16x128xf32>
    %14 = arith.select %11, %9, %13 : vector<1x8x16x128xi1>, vector<1x8x16x128xf32>
    %c0_8 = arith.constant 0 : index
    %c0_9 = arith.constant 0 : index
    %c0_10 = arith.constant 0 : index
    %c0_11 = arith.constant 0 : index
    %15 = vector.load %arg5[%c0_8, %c0_9, %c0_10, %c0_11] : memref<1x8x16x128xf32, #tpu.memory_space<vmem>>, vector<1x8x16x128xf32>
    tpu.vector_store %arg5[%c0_8, %c0_9, %c0_10, %c0_11], %14 {strides = array<i32>} : memref<1x8x16x128xf32, #tpu.memory_space<vmem>>, vector<1x8x16x128xf32>,
    return
  }
  func.func @transform_0(%arg0: i32, %arg1: i32) -> (i32, i32, i32, i32) {
    %c0_i32 = arith.constant 0 : i32
    %c0_i32_0 = arith.constant 0 : i32
    %c0_i32_1 = arith.constant 0 : i32
    return %arg0, %arg1, %c0_i32, %c0_i32_0 : i32, i32, i32, i32
  }
  func.func @transform_1(%arg0: i32, %arg1: i32) -> (i32, i32) {
    %c0_i32 = arith.constant 0 : i32
    %c0_i32_0 = arith.constant 0 : i32
    %c0_i32_1 = arith.constant 0 : i32
    return %c0_i32, %c0_i32_0 : i32, i32
  }
  func.func @transform_2(%arg0: i32, %arg1: i32) -> (i32, i32) {
    %c0_i32 = arith.constant 0 : i32
    %c0_i32_0 = arith.constant 0 : i32
    %c0_i32_1 = arith.constant 0 : i32
    return %c0_i32, %c0_i32_0 : i32, i32
  }
  func.func @transform_3(%arg0: i32, %arg1: i32) -> (i32, i32, i32, i32) {
    %c0_i32 = arith.constant 0 : i32
    %c0_i32_0 = arith.constant 0 : i32
    %c0_i32_1 = arith.constant 0 : i32
    return %arg0, %arg1, %c0_i32, %c0_i32_0 : i32, i32, i32, i32
  }
}

module attributes {stable_mosaic.version = 11 : i64} {
  func.func @_conv3x3_stats_kernel(%arg0: i32, %arg1: i32, %arg2: memref<1x8x16x128xbf16, #tpu.memory_space<vmem>>, %arg3: memref<1x1x16x128xbf16, #tpu.memory_space<vmem>>, %arg4: memref<1x1x16x128xbf16, #tpu.memory_space<vmem>>, %arg5: memref<1x128xf32, #tpu.memory_space<vmem>>, %arg6: memref<1x128xf32, #tpu.memory_space<vmem>>, %arg7: memref<1152x128xbf16, #tpu.memory_space<vmem>>, %arg8: memref<1x128xf32, #tpu.memory_space<vmem>>, %arg9: memref<1x8x16x128xbf16, #tpu.memory_space<vmem>>, %arg10: memref<1x1x8x128xf32, #tpu.memory_space<vmem>>) attributes {dimension_semantics = [#tpu.dimension_semantics<parallel>, #tpu.dimension_semantics<parallel>], iteration_bounds = array<i64: 2, 3>, scalar_prefetch = 0 : i64, scratch_operands = 0 : i64, tpu.core_type = #tpu.core_type<tc>, window_params = [{transform_indices = @transform_0, window_bounds = array<i64: 1, 8, 16, 128>}, {transform_indices = @transform_1, window_bounds = array<i64: 1, 1, 16, 128>}, {transform_indices = @transform_2, window_bounds = array<i64: 1, 1, 16, 128>}, {pipeline_mode = #tpu.pipeline_mode<synchronous>, transform_indices = @transform_3, window_bounds = array<i64: 1, 128>}, {pipeline_mode = #tpu.pipeline_mode<synchronous>, transform_indices = @transform_4, window_bounds = array<i64: 1, 128>}, {pipeline_mode = #tpu.pipeline_mode<synchronous>, transform_indices = @transform_5, window_bounds = array<i64: 1152, 128>}, {pipeline_mode = #tpu.pipeline_mode<synchronous>, transform_indices = @transform_6, window_bounds = array<i64: 1, 128>}, {transform_indices = @transform_7, window_bounds = array<i64: 1, 8, 16, 128>}, {transform_indices = @transform_8, window_bounds = array<i64: 1, 1, 8, 128>}]} {
    %c0 = arith.constant 0 : index
    %c0_0 = arith.constant 0 : index
    %c0_1 = arith.constant 0 : index
    %c0_2 = arith.constant 0 : index
    %0 = vector.load %arg2[%c0, %c0_0, %c0_1, %c0_2] : memref<1x8x16x128xbf16, #tpu.memory_space<vmem>>, vector<1x8x16x128xbf16>
    %1 = vector.shape_cast %0 : vector<1x8x16x128xbf16> to vector<8x16x128xbf16>
    %c0_3 = arith.constant 0 : index
    %c0_4 = arith.constant 0 : index
    %c0_5 = arith.constant 0 : index
    %c0_6 = arith.constant 0 : index
    %2 = vector.load %arg3[%c0_3, %c0_4, %c0_5, %c0_6] : memref<1x1x16x128xbf16, #tpu.memory_space<vmem>>, vector<1x1x16x128xbf16>
    %3 = vector.shape_cast %2 : vector<1x1x16x128xbf16> to vector<1x16x128xbf16>
    %c0_7 = arith.constant 0 : index
    %c0_8 = arith.constant 0 : index
    %c0_9 = arith.constant 0 : index
    %c0_10 = arith.constant 0 : index
    %4 = vector.load %arg4[%c0_7, %c0_8, %c0_9, %c0_10] : memref<1x1x16x128xbf16, #tpu.memory_space<vmem>>, vector<1x1x16x128xbf16>
    %5 = vector.shape_cast %4 : vector<1x1x16x128xbf16> to vector<1x16x128xbf16>
    %c0_11 = arith.constant 0 : index
    %c0_12 = arith.constant 0 : index
    %6 = vector.load %arg5[%c0_11, %c0_12] : memref<1x128xf32, #tpu.memory_space<vmem>>, vector<1x128xf32>
    %7 = vector.shape_cast %6 : vector<1x128xf32> to vector<1x1x128xf32>
    %c0_13 = arith.constant 0 : index
    %c0_14 = arith.constant 0 : index
    %8 = vector.load %arg6[%c0_13, %c0_14] : memref<1x128xf32, #tpu.memory_space<vmem>>, vector<1x128xf32>
    %9 = vector.shape_cast %8 : vector<1x128xf32> to vector<1x1x128xf32>
    %10 = arith.extf %1 : vector<8x16x128xbf16> to vector<8x16x128xf32>
    %11 = vector.broadcast %7 : vector<1x1x128xf32> to vector<8x16x128xf32>
    %12 = arith.mulf %10, %11 : vector<8x16x128xf32>
    %13 = vector.broadcast %9 : vector<1x1x128xf32> to vector<8x16x128xf32>
    %14 = arith.addf %12, %13 : vector<8x16x128xf32>
    %cst = arith.constant 0.000000e+00 : f32
    %15 = vector.broadcast %cst : f32 to vector<8x16x128xf32>
    %16 = arith.cmpf ogt, %14, %15 : vector<8x16x128xf32>
    %cst_15 = arith.constant 0.00999999977 : f32
    %17 = vector.broadcast %cst_15 : f32 to vector<8x16x128xf32>
    %18 = arith.mulf %17, %14 : vector<8x16x128xf32>
    %19 = arith.select %16, %14, %18 : vector<8x16x128xi1>, vector<8x16x128xf32>
    %20 = arith.truncf %19 : vector<8x16x128xf32> to vector<8x16x128xbf16>
    %21 = arith.extf %3 : vector<1x16x128xbf16> to vector<1x16x128xf32>
    %22 = vector.broadcast %7 : vector<1x1x128xf32> to vector<1x16x128xf32>
    %23 = arith.mulf %21, %22 : vector<1x16x128xf32>
    %24 = vector.broadcast %9 : vector<1x1x128xf32> to vector<1x16x128xf32>
    %25 = arith.addf %23, %24 : vector<1x16x128xf32>
    %cst_16 = arith.constant 0.000000e+00 : f32
    %26 = vector.broadcast %cst_16 : f32 to vector<1x16x128xf32>
    %27 = arith.cmpf ogt, %25, %26 : vector<1x16x128xf32>
    %cst_17 = arith.constant 0.00999999977 : f32
    %28 = vector.broadcast %cst_17 : f32 to vector<1x16x128xf32>
    %29 = arith.mulf %28, %25 : vector<1x16x128xf32>
    %30 = arith.select %27, %25, %29 : vector<1x16x128xi1>, vector<1x16x128xf32>
    %31 = arith.truncf %30 : vector<1x16x128xf32> to vector<1x16x128xbf16>
    %32 = arith.extf %5 : vector<1x16x128xbf16> to vector<1x16x128xf32>
    %33 = vector.broadcast %7 : vector<1x1x128xf32> to vector<1x16x128xf32>
    %34 = arith.mulf %32, %33 : vector<1x16x128xf32>
    %35 = vector.broadcast %9 : vector<1x1x128xf32> to vector<1x16x128xf32>
    %36 = arith.addf %34, %35 : vector<1x16x128xf32>
    %cst_18 = arith.constant 0.000000e+00 : f32
    %37 = vector.broadcast %cst_18 : f32 to vector<1x16x128xf32>
    %38 = arith.cmpf ogt, %36, %37 : vector<1x16x128xf32>
    %cst_19 = arith.constant 0.00999999977 : f32
    %39 = vector.broadcast %cst_19 : f32 to vector<1x16x128xf32>
    %40 = arith.mulf %39, %36 : vector<1x16x128xf32>
    %41 = arith.select %38, %36, %40 : vector<1x16x128xi1>, vector<1x16x128xf32>
    %42 = arith.truncf %41 : vector<1x16x128xf32> to vector<1x16x128xbf16>
    %c0_i32 = arith.constant 0 : i32
    %43 = arith.cmpi eq, %arg1, %c0_i32 : i32
    %c0_i32_20 = arith.constant 0 : i32
    %c1_i32 = arith.constant 1 : i32
    %44 = arith.select %43, %c0_i32_20, %c1_i32 : i32
    %45 = arith.sitofp %44 : i32 to bf16
    %46 = vector.broadcast %45 : bf16 to vector<1x16x128xbf16>
    %47 = arith.mulf %31, %46 : vector<1x16x128xbf16>
    %c2_i32 = arith.constant 2 : i32
    %48 = arith.cmpi eq, %arg1, %c2_i32 : i32
    %c0_i32_21 = arith.constant 0 : i32
    %c1_i32_22 = arith.constant 1 : i32
    %49 = arith.select %48, %c0_i32_21, %c1_i32_22 : i32
    %50 = arith.sitofp %49 : i32 to bf16
    %51 = vector.broadcast %50 : bf16 to vector<1x16x128xbf16>
    %52 = arith.mulf %42, %51 : vector<1x16x128xbf16>
    %53 = tpu.concatenate %47, %20, %52 in 0 : vector<1x16x128xbf16>, vector<8x16x128xbf16>, vector<1x16x128xbf16> -> vector<10x16x128xbf16>
    %cst_23 = arith.constant 0.000000e+00 : bf16
    %54 = vector.broadcast %cst_23 : bf16 to vector<10x1x128xbf16>
    %55 = tpu.concatenate %54, %53, %54 in 1 : vector<10x1x128xbf16>, vector<10x16x128xbf16>, vector<10x1x128xbf16> -> vector<10x18x128xbf16>
    %56 = vector.extract_strided_slice %55 {offsets = [0, 0, 0], sizes = [8, 16, 128], strides = [1, 1, 1]} : vector<10x18x128xbf16> to vector<8x16x128xbf16>
    %57 = vector.extract_strided_slice %55 {offsets = [0, 1, 0], sizes = [8, 16, 128], strides = [1, 1, 1]} : vector<10x18x128xbf16> to vector<8x16x128xbf16>
    %58 = vector.extract_strided_slice %55 {offsets = [0, 2, 0], sizes = [8, 16, 128], strides = [1, 1, 1]} : vector<10x18x128xbf16> to vector<8x16x128xbf16>
    %59 = vector.extract_strided_slice %55 {offsets = [1, 0, 0], sizes = [8, 16, 128], strides = [1, 1, 1]} : vector<10x18x128xbf16> to vector<8x16x128xbf16>
    %60 = vector.extract_strided_slice %55 {offsets = [1, 1, 0], sizes = [8, 16, 128], strides = [1, 1, 1]} : vector<10x18x128xbf16> to vector<8x16x128xbf16>
    %61 = vector.extract_strided_slice %55 {offsets = [1, 2, 0], sizes = [8, 16, 128], strides = [1, 1, 1]} : vector<10x18x128xbf16> to vector<8x16x128xbf16>
    %62 = vector.extract_strided_slice %55 {offsets = [2, 0, 0], sizes = [8, 16, 128], strides = [1, 1, 1]} : vector<10x18x128xbf16> to vector<8x16x128xbf16>
    %63 = vector.extract_strided_slice %55 {offsets = [2, 1, 0], sizes = [8, 16, 128], strides = [1, 1, 1]} : vector<10x18x128xbf16> to vector<8x16x128xbf16>
    %64 = vector.extract_strided_slice %55 {offsets = [2, 2, 0], sizes = [8, 16, 128], strides = [1, 1, 1]} : vector<10x18x128xbf16> to vector<8x16x128xbf16>
    %65 = tpu.concatenate %56, %57, %58, %59, %60, %61, %62, %63, %64 in 2 : vector<8x16x128xbf16>, vector<8x16x128xbf16>, vector<8x16x128xbf16>, vector<8x16x128xbf16>, vector<8x16x128xbf16>, vector<8x16x128xbf16>, vector<8x16x128xbf16>, vector<8x16x128xbf16>, vector<8x16x128xbf16> -> vector<8x16x1152xbf16>
    %66 = vector.shape_cast %65 : vector<8x16x1152xbf16> to vector<128x1152xbf16>
    %c0_24 = arith.constant 0 : index
    %c0_25 = arith.constant 0 : index
    %67 = vector.load %arg7[%c0_24, %c0_25] : memref<1152x128xbf16, #tpu.memory_space<vmem>>, vector<1152x128xbf16>
    %cst_26 = arith.constant dense<0.000000e+00> : vector<128x128xf32>
    %68 = tpu.matmul %66, %67, %cst_26 {dimension_numbers = #tpu.dot_dimension_numbers<[1], [0], [0], [1], [0, 0, 1, 1], [], []>} : vector<128x1152xbf16>, vector<1152x128xbf16>, vector<128x128xf32> -> vector<128x128xf32>
    %c0_27 = arith.constant 0 : index
    %c0_28 = arith.constant 0 : index
    %69 = vector.load %arg8[%c0_27, %c0_28] : memref<1x128xf32, #tpu.memory_space<vmem>>, vector<1x128xf32>
    %70 = vector.broadcast %69 : vector<1x128xf32> to vector<128x128xf32>
    %71 = arith.addf %68, %70 : vector<128x128xf32>
    %72 = vector.shape_cast %71 : vector<128x128xf32> to vector<1x8x16x128xf32>
    %73 = arith.truncf %72 : vector<1x8x16x128xf32> to vector<1x8x16x128xbf16>
    %c0_29 = arith.constant 0 : index
    %c0_30 = arith.constant 0 : index
    %c0_31 = arith.constant 0 : index
    %c0_32 = arith.constant 0 : index
    %74 = vector.load %arg9[%c0_29, %c0_30, %c0_31, %c0_32] : memref<1x8x16x128xbf16, #tpu.memory_space<vmem>>, vector<1x8x16x128xbf16>
    tpu.vector_store %arg9[%c0_29, %c0_30, %c0_31, %c0_32], %73 {strides = array<i32>} : memref<1x8x16x128xbf16, #tpu.memory_space<vmem>>, vector<1x8x16x128xbf16>,
    %cst_33 = arith.constant dense<0.000000e+00> : vector<128xf32>
    %75 = vector.multi_reduction <add>, %71, %cst_33 [0] : vector<128x128xf32> to vector<128xf32>
    %76 = vector.shape_cast %75 : vector<128xf32> to vector<1x128xf32>
    %77 = arith.mulf %71, %71 : vector<128x128xf32>
    %cst_34 = arith.constant dense<0.000000e+00> : vector<128xf32>
    %78 = vector.multi_reduction <add>, %77, %cst_34 [0] : vector<128x128xf32> to vector<128xf32>
    %79 = vector.shape_cast %78 : vector<128xf32> to vector<1x128xf32>
    %cst_35 = arith.constant 0.000000e+00 : f32
    %80 = vector.broadcast %cst_35 : f32 to vector<6x128xf32>
    %81 = tpu.concatenate %76, %79, %80 in 0 : vector<1x128xf32>, vector<1x128xf32>, vector<6x128xf32> -> vector<8x128xf32>
    %82 = vector.shape_cast %81 : vector<8x128xf32> to vector<1x1x8x128xf32>
    %c0_36 = arith.constant 0 : index
    %c0_37 = arith.constant 0 : index
    %c0_38 = arith.constant 0 : index
    %c0_39 = arith.constant 0 : index
    %83 = vector.load %arg10[%c0_36, %c0_37, %c0_38, %c0_39] : memref<1x1x8x128xf32, #tpu.memory_space<vmem>>, vector<1x1x8x128xf32>
    tpu.vector_store %arg10[%c0_36, %c0_37, %c0_38, %c0_39], %82 {strides = array<i32>} : memref<1x1x8x128xf32, #tpu.memory_space<vmem>>, vector<1x1x8x128xf32>,
    return
  }
  func.func @transform_0(%arg0: i32, %arg1: i32) -> (i32, i32, i32, i32) {
    %c0_i32 = arith.constant 0 : i32
    %c0_i32_0 = arith.constant 0 : i32
    %c0_i32_1 = arith.constant 0 : i32
    return %arg0, %arg1, %c0_i32, %c0_i32_0 : i32, i32, i32, i32
  }
  func.func @transform_1(%arg0: i32, %arg1: i32) -> (i32, i32, i32, i32) {
    %c8_i32 = arith.constant 8 : i32
    %0 = arith.muli %arg1, %c8_i32 : i32
    %c1_i32 = arith.constant 1 : i32
    %1 = arith.subi %0, %c1_i32 : i32
    %c0_i32 = arith.constant 0 : i32
    %2 = arith.maxsi %1, %c0_i32 : i32
    %c0_i32_0 = arith.constant 0 : i32
    %c0_i32_1 = arith.constant 0 : i32
    %c0_i32_2 = arith.constant 0 : i32
    return %arg0, %2, %c0_i32_0, %c0_i32_1 : i32, i32, i32, i32
  }
  func.func @transform_2(%arg0: i32, %arg1: i32) -> (i32, i32, i32, i32) {
    %c1_i32 = arith.constant 1 : i32
    %0 = arith.addi %arg1, %c1_i32 : i32
    %c8_i32 = arith.constant 8 : i32
    %1 = arith.muli %0, %c8_i32 : i32
    %c23_i32 = arith.constant 23 : i32
    %2 = arith.minsi %1, %c23_i32 : i32
    %c0_i32 = arith.constant 0 : i32
    %c0_i32_0 = arith.constant 0 : i32
    %c0_i32_1 = arith.constant 0 : i32
    return %arg0, %2, %c0_i32, %c0_i32_0 : i32, i32, i32, i32
  }
  func.func @transform_3(%arg0: i32, %arg1: i32) -> (i32, i32) {
    %c0_i32 = arith.constant 0 : i32
    %c0_i32_0 = arith.constant 0 : i32
    %c0_i32_1 = arith.constant 0 : i32
    return %c0_i32, %c0_i32_0 : i32, i32
  }
  func.func @transform_4(%arg0: i32, %arg1: i32) -> (i32, i32) {
    %c0_i32 = arith.constant 0 : i32
    %c0_i32_0 = arith.constant 0 : i32
    %c0_i32_1 = arith.constant 0 : i32
    return %c0_i32, %c0_i32_0 : i32, i32
  }
  func.func @transform_5(%arg0: i32, %arg1: i32) -> (i32, i32) {
    %c0_i32 = arith.constant 0 : i32
    %c0_i32_0 = arith.constant 0 : i32
    %c0_i32_1 = arith.constant 0 : i32
    return %c0_i32, %c0_i32_0 : i32, i32
  }
  func.func @transform_6(%arg0: i32, %arg1: i32) -> (i32, i32) {
    %c0_i32 = arith.constant 0 : i32
    %c0_i32_0 = arith.constant 0 : i32
    %c0_i32_1 = arith.constant 0 : i32
    return %c0_i32, %c0_i32_0 : i32, i32
  }
  func.func @transform_7(%arg0: i32, %arg1: i32) -> (i32, i32, i32, i32) {
    %c0_i32 = arith.constant 0 : i32
    %c0_i32_0 = arith.constant 0 : i32
    %c0_i32_1 = arith.constant 0 : i32
    return %arg0, %arg1, %c0_i32, %c0_i32_0 : i32, i32, i32, i32
  }
  func.func @transform_8(%arg0: i32, %arg1: i32) -> (i32, i32, i32, i32) {
    %c0_i32 = arith.constant 0 : i32
    %c0_i32_0 = arith.constant 0 : i32
    %c0_i32_1 = arith.constant 0 : i32
    return %arg0, %arg1, %c0_i32, %c0_i32_0 : i32, i32, i32, i32
  }
}

</mosaic_0001>

<bundles_post_ra>
// kernel: upsample_bn_forward.5
= control target key start
LH: loop header
LB: loop body
LE: loop exit
PB: predicated region body
PF: predicated region fallthrough
CT: control target
= control target key end

     0   :  { %s605_s12 = smov 0   ;;  %s607_s13 = smov 0   ;;  %s730_s0 = inlined_call_operand.vmem [shape: bf16[2,24,16,128], index: 0, kind: input, shape index: {}]   ;;  %s731_s1 = inlined_call_operand.vmem [shape: f32[1,128], index: 1, kind: input, shape index: {}]   ;;  %s732_s2 = inlined_call_operand.vmem [shape: f32[1,128], index: 2, kind: input, shape index: {}]   ;;  %s733_s3 = inlined_call_operand.vmem [shape: f32[2,24,16,128], index: 3, kind: output, shape index: {}]  }
   0x1   :  { %s609_s14 = smov 0   ;;  %s611_s15 = smov 0  }
   0x2   :  { %s613_s16 = smov 0  }
   0x3 LB: > { %s22_s17 = sadd.s32 1, %s575_s14  ;;  %s25_s18 = sadd.s32 1, %s579_s15  ;;  %s583_s16 = sphi %s613_s16, %s13_s16   ;;  %s579_s15 = sphi %s611_s15, %s737_s15   ;;  %s575_s14 = sphi %s609_s14, %s736_s14   ;;  %s571_s13 = sphi %s607_s13, %s735_s13   ;;  %s567_s12 = sphi %s605_s12, %s734_s12  }
   0x4   : > { %p23_p0 = scmp.ge.s32.totalorder %s22_s17, 3  ;;  %p454_p1 = scmp.ge.s32.totalorder %s583_s16, 1 }
   0x5   : > { %p159_p2 = scmp.lt.s32.totalorder %s583_s16, 7 }
   0x6   : > { %s739_s17 = smov (%p23_p0, %s22_s17), 0  ;;  %s741_s18 = smov (!%p23_p0, %s25_s18), %s579_s15 }
   0x7   : > { %p160_p3 = pnand %p454_p1, %p159_p2  ;;  %p27_p4 = scmp.ge.s32.totalorder %s741_s18, 2 }
   0x8   : > { %s455_s19 = sshll.u32 (!%p160_p3), %s567_s12, 3  ;;  %p194_p5 = scmp.lt.s32.totalorder (!%p160_p3), %s571_s13, 1 }
   0x9   : > { %s743_s18 = smov (%p27_p4, %s741_s18), 0  ;;  %163 = sbr.rel (%p160_p3) target bundleno = 50 (0x32), region = 32 }
   0xa   : > { %p196_p6 = scmp.lt.s32.totalorder (!%p160_p3), %s455_s19, 23 }
   0xe   : > { %s745_s13 = smov (!%p194_p5, %s571_s13), 1  ;;  %s747_s19 = smov (!%p196_p6, %s455_s19), 23  ;;  %v646_v0 = vld [vmem:[%s731_s1] ss:$0 sm:$0xff] }
   0xf   : > { %s502_s20 = smul.u32 48, %s745_s13  ;;  %s456_s21 = sshll.u32 %s747_s19, 1  ;;  %v654_v5 = vld [vmem:[%s732_s2] ss:$0 sm:$0xff] }
  0x11   : > { %s635_s22 = sadd.s32 %s502_s20, %s456_s21 }
  0x12   : > { %s457_s23 = sshll.u32 %s635_s22, 2  ;;  %s460_s4 = sshll.u32 %s635_s22, 3 }
  0x13   : > { %s641_s26 = scalar_lea.vmem %s730_s0, %s457_s23  ;;  %s677_s7 = scalar_lea.vmem %s733_s3, %s460_s4 }
  0x14   : > { %v464_v1 = vld [vmem:[%s641_s26] sm:$0xff]   ;;  %v495_v2 = vld [vmem:[%s641_s26 + $0x8] sm:$0xff]   ;;  %v496_v3 = vld [vmem:[%s641_s26 + $0x10] sm:$0xff]  }
  0x15   : > { %v465_v4 = vunpack.c.l.bf16 %v464_v1  ;;  %v466_v6 = vunpack.c.h.bf16 %v464_v1  ;;  %v469_v7 = vunpack.c.l.bf16 %v495_v2  ;;  %v470_v8 = vunpack.c.h.bf16 %v495_v2  ;;  %v497_v9 = vld [vmem:[%s641_s26 + $0x18] sm:$0xff]   ;;  %v498_v37 = vld [vmem:[%s641_s26 + $0x20] sm:$0xff]   ;;  %v499_v41 = vld [vmem:[%s641_s26 + $0x28] sm:$0xff]  }
  0x16   : > { %v473_v10 = vunpack.c.l.bf16 %v496_v3  ;;  %v474_v11 = vunpack.c.h.bf16 %v496_v3  ;;  %v477_v12 = vunpack.c.l.bf16 %v497_v9  ;;  %v478_v13 = vunpack.c.h.bf16 %v497_v9  ;;  %v500_v42 = vld [vmem:[%s641_s26 + $0x30] sm:$0xff]   ;;  %v501_v49 = vld [vmem:[%s641_s26 + $0x38] sm:$0xff]  }
  0x17   : > { %v251_v14 = vmul.f32 %v646_v0, %v465_v4  ;;  %v252_v15 = vmul.f32 %v646_v0, %v466_v6  ;;  %v253_v16 = vmul.f32 %v646_v0, %v469_v7  ;;  %v254_v17 = vmul.f32 %v646_v0, %v470_v8 }
  0x18   : > { %v255_v18 = vmul.f32 %v646_v0, %v473_v10  ;;  %v256_v19 = vmul.f32 %v646_v0, %v474_v11  ;;  %v257_v20 = vmul.f32 %v646_v0, %v477_v12  ;;  %v258_v21 = vmul.f32 %v646_v0, %v478_v13 }
  0x19   : > { %v271_v22 = vadd.f32 %v654_v5, %v251_v14  ;;  %v272_v23 = vadd.f32 %v654_v5, %v252_v15  ;;  %v273_v24 = vadd.f32 %v654_v5, %v253_v16  ;;  %v274_v25 = vadd.f32 %v654_v5, %v254_v17 }
  0x1a   : > { %v275_v26 = vadd.f32 %v654_v5, %v255_v18  ;;  %v276_v27 = vadd.f32 %v654_v5, %v256_v19  ;;  %v277_v28 = vadd.f32 %v654_v5, %v257_v20  ;;  %v278_v29 = vadd.f32 %v654_v5, %v258_v21 }
  0x1b   : > { %vm287_vm0 = vcmp.gt.f32.partialorder %v271_v22, 0.0  ;;  %v303_v30 = vmul.f32 0.01, %v271_v22  ;;  %vm288_vm1 = vcmp.gt.f32.partialorder %v272_v23, 0.0  ;;  %v304_v31 = vmul.f32 0.01, %v272_v23 }
  0x1c   : > { %vm289_vm2 = vcmp.gt.f32.partialorder %v273_v24, 0.0  ;;  %v305_v32 = vmul.f32 0.01, %v273_v24  ;;  %vm290_vm3 = vcmp.gt.f32.partialorder %v274_v25, 0.0  ;;  %v306_v33 = vmul.f32 0.01, %v274_v25 }
  0x1d   : > { %v319_v34 = vsel %vm287_vm0, %v271_v22, %v303_v30  ;;  %v320_v35 = vsel %vm288_vm1, %v272_v23, %v304_v31  ;;  %vm291_vm4 = vcmp.gt.f32.partialorder %v275_v26, 0.0  ;;  %v307_v36 = vmul.f32 0.01, %v275_v26 }
  0x1e   : > { %335 = vst [vmem:[%s677_s7] sm:$0xff] %v319_v34  ;;  %v321_v38 = vsel %vm289_vm2, %v273_v24, %v305_v32  ;;  %v322_v39 = vsel %vm290_vm3, %v274_v25, %v306_v33  ;;  %vm292_vm5 = vcmp.gt.f32.partialorder %v276_v27, 0.0  ;;  %v308_v40 = vmul.f32 0.01, %v276_v27 }
  0x1f   : > { %336 = vst [vmem:[%s677_s7 + $0x8] sm:$0xff] %v320_v35  ;;  %v323_v43 = vsel %vm291_vm4, %v275_v26, %v307_v36  ;;  %vm293_vm6 = vcmp.gt.f32.partialorder %v277_v28, 0.0  ;;  %v309_v44 = vmul.f32 0.01, %v277_v28  ;;  %vm294_vm7 = vcmp.gt.f32.partialorder %v278_v29, 0.0 }
  0x20   : > { %337 = vst [vmem:[%s677_s7 + $0x10] sm:$0xff] %v321_v38  ;;  %v324_v45 = vsel %vm292_vm5, %v276_v27, %v308_v40  ;;  %v310_v46 = vmul.f32 0.01, %v278_v29  ;;  %v481_v47 = vunpack.c.l.bf16 %v498_v37  ;;  %v482_v48 = vunpack.c.h.bf16 %v498_v37 }
  0x21   : > { %338 = vst [vmem:[%s677_s7 + $0x18] sm:$0xff] %v322_v39  ;;  %v325_v50 = vsel %vm293_vm6, %v277_v28, %v309_v44  ;;  %v485_v51 = vunpack.c.l.bf16 %v499_v41  ;;  %v486_v52 = vunpack.c.h.bf16 %v499_v41  ;;  %v489_v53 = vunpack.c.l.bf16 %v500_v42 }
  0x22   : > { %339 = vst [vmem:[%s677_s7 + $0x20] sm:$0xff] %v323_v43  ;;  %v326_v54 = vsel %vm294_vm7, %v278_v29, %v310_v46  ;;  %v259_v55 = vmul.f32 %v646_v0, %v481_v47  ;;  %v260_v56 = vmul.f32 %v646_v0, %v482_v48  ;;  %v490_v57 = vunpack.c.h.bf16 %v500_v42 }
  0x23   : > { %340 = vst [vmem:[%s677_s7 + $0x28] sm:$0xff] %v324_v45  ;;  %v261_v58 = vmul.f32 %v646_v0, %v485_v51  ;;  %v262_v59 = vmul.f32 %v646_v0, %v486_v52  ;;  %v263_v60 = vmul.f32 %v646_v0, %v489_v53  ;;  %v493_v61 = vunpack.c.l.bf16 %v501_v49 }
  0x24   : > { %341 = vst [vmem:[%s677_s7 + $0x30] sm:$0xff] %v325_v50  ;;  %v279_v62 = vadd.f32 %v654_v5, %v259_v55  ;;  %v280_v63 = vadd.f32 %v654_v5, %v260_v56  ;;  %v264_v1 = vmul.f32 %v646_v0, %v490_v57  ;;  %v494_v2 = vunpack.c.h.bf16 %v501_v49 }
  0x25   : > { %342 = vst [vmem:[%s677_s7 + $0x38] sm:$0xff] %v326_v54  ;;  %v281_v3 = vadd.f32 %v654_v5, %v261_v58  ;;  %v282_v4 = vadd.f32 %v654_v5, %v262_v59  ;;  %v283_v6 = vadd.f32 %v654_v5, %v263_v60  ;;  %v265_v7 = vmul.f32 %v646_v0, %v493_v61 }
  0x26   : > { %vm295_vm8 = vcmp.gt.f32.partialorder %v279_v62, 0.0  ;;  %v311_v8 = vmul.f32 0.01, %v279_v62  ;;  %vm296_vm9 = vcmp.gt.f32.partialorder %v280_v63, 0.0  ;;  %v312_v9 = vmul.f32 0.01, %v280_v63 }
  0x27   : > { %vm297_vm10 = vcmp.gt.f32.partialorder %v281_v3, 0.0  ;;  %v313_v10 = vmul.f32 0.01, %v281_v3  ;;  %vm298_vm11 = vcmp.gt.f32.partialorder %v282_v4, 0.0  ;;  %v314_v11 = vmul.f32 0.01, %v282_v4 }
  0x28   : > { %v327_v12 = vsel %vm295_vm8, %v279_v62, %v311_v8  ;;  %v328_v13 = vsel %vm296_vm9, %v280_v63, %v312_v9  ;;  %vm299_vm12 = vcmp.gt.f32.partialorder %v283_v6, 0.0  ;;  %v315_v14 = vmul.f32 0.01, %v283_v6 }
  0x29   : > { %343 = vst [vmem:[%s677_s7 + $0x40] sm:$0xff] %v327_v12  ;;  %v329_v15 = vsel %vm297_vm10, %v281_v3, %v313_v10  ;;  %v330_v16 = vsel %vm298_vm11, %v282_v4, %v314_v11  ;;  %v284_v17 = vadd.f32 %v654_v5, %v264_v1  ;;  %v285_v18 = vadd.f32 %v654_v5, %v265_v7 }
  0x2a   : > { %344 = vst [vmem:[%s677_s7 + $0x48] sm:$0xff] %v328_v13  ;;  %v331_v19 = vsel %vm299_vm12, %v283_v6, %v315_v14  ;;  %v266_v20 = vmul.f32 %v646_v0, %v494_v2 }
  0x2b   : > { %345 = vst [vmem:[%s677_s7 + $0x50] sm:$0xff] %v329_v15  ;;  %vm300_vm13 = vcmp.gt.f32.partialorder %v284_v17, 0.0  ;;  %v316_v21 = vmul.f32 0.01, %v284_v17  ;;  %vm301_vm14 = vcmp.gt.f32.partialorder %v285_v18, 0.0 }
  0x2c   : > { %346 = vst [vmem:[%s677_s7 + $0x58] sm:$0xff] %v330_v16  ;;  %v317_v22 = vmul.f32 0.01, %v285_v18  ;;  %v286_v23 = vadd.f32 %v654_v5, %v266_v20 }
  0x2d   : > { %347 = vst [vmem:[%s677_s7 + $0x60] sm:$0xff] %v331_v19  ;;  %v332_v24 = vsel %vm300_vm13, %v284_v17, %v316_v21 }
  0x2e   : > { %348 = vst [vmem:[%s677_s7 + $0x68] sm:$0xff] %v332_v24  ;;  %v333_v25 = vsel %vm301_vm14, %v285_v18, %v317_v22  ;;  %vm302_vm15 = vcmp.gt.f32.partialorder %v286_v23, 0.0  ;;  %v318_v26 = vmul.f32 0.01, %v286_v23 }
  0x2f   : > { %349 = vst [vmem:[%s677_s7 + $0x70] sm:$0xff] %v333_v25 }
  0x30   : > { %v334_v27 = vsel %vm302_vm15, %v286_v23, %v318_v26 }
  0x31   : > { %350 = vst [vmem:[%s677_s7 + $0x78] sm:$0xff] %v334_v27 }
  0x32 PF: > { %s13_s16 = sadd.s32 1, %s583_s16   ;;  %s734_s12 = smov %s575_s14 }
  0x33   : > { %p10_p7 = scmp.ge.s32.totalorder %s13_s16, 8   ;;  %s735_s13 = smov %s579_s15 }
  0x34   : > { %s736_s14 = smov %s739_s17  ;;  %s737_s15 = smov %s743_s18 }
  0x35   :  { %12 = sbr.rel (!%p10_p7) target bundleno = 3 (0x3), region = 62 }

// kernel: upsample_bn_forward.3
= control target key start
LH: loop header
LB: loop body
LE: loop exit
PB: predicated region body
PF: predicated region fallthrough
CT: control target
= control target key end

     0   :  { %s2873_s27 = smov 0   ;;  %s2875_s28 = smov 0   ;;  %s3548_s0 = inlined_call_operand.vmem [shape: bf16[2,24,16,128], index: 0, kind: input, shape index: {}, may-alias: {0,1,2}]   ;;  %s3549_s1 = inlined_call_operand.vmem [shape: bf16[2,24,16,128], index: 1, kind: input, shape index: {}, may-alias: {0,1,2}]   ;;  %s3550_s2 = inlined_call_operand.vmem [shape: bf16[2,24,16,128], index: 2, kind: input, shape index: {}, may-alias: {0,1,2}]   ;;  %s3551_s3 = inlined_call_operand.vmem [shape: f32[1,128], index: 3, kind: input, shape index: {}]   ;;  %s3552_s4 = inlined_call_operand.vmem [shape: f32[1,128], index: 4, kind: input, shape index: {}]   ;;  %s3553_s5 = inlined_call_operand.vmem [shape: bf16[1152,128], index: 5, kind: input, shape index: {}]   ;;  %s3554_s6 = inlined_call_operand.vmem [shape: f32[1,128], index: 6, kind: input, shape index: {}]   ;;  %s3555_s7 = inlined_call_operand.vmem [shape: bf16[2,24,16,128], index: 7, kind: output, shape index: {0}]   ;;  %s3556_s8 = inlined_call_operand.vmem [shape: f32[2,3,8,128], index: 8, kind: output, shape index: {1}]  }
   0x1   :  { %s2877_s3 = smov 0   ;;  %s2879_s29 = smov 0  }
   0x2   :  { %s2881_s4 = smov 0  }
   0x3 LB: > { %s28_s30 = sadd.s32 1, %s2818_s3  ;;  %s31_s9 = sadd.s32 1, %s2822_s29  ;;  %s2826_s4 = sphi %s2881_s4, %s19_s4   ;;  %s2822_s29 = sphi %s2879_s29, %s3563_s29   ;;  %s2818_s3 = sphi %s2877_s3, %s3562_s3   ;;  %s2814_s28 = sphi %s2875_s28, %s3561_s28   ;;  %s2810_s27 = sphi %s2873_s27, %s3560_s27  }
   0x4   : > { %p29_p0 = scmp.ge.s32.totalorder %s28_s30, 3  ;;  %p2233_p1 = scmp.ge.s32.totalorder %s2826_s4, 1 }
   0x5   : > { %p353_p2 = scmp.lt.s32.totalorder %s2826_s4, 7 }
   0x6   : > { %s3565_s30 = smov (%p29_p0, %s28_s30), 0  ;;  %s3567_s9 = smov (!%p29_p0, %s31_s9), %s2822_s29 }
   0x7   : > { %p354_p3 = pnand %p2233_p1, %p353_p2  ;;  %p33_p4 = scmp.ge.s32.totalorder %s3567_s9, 2 }
   0x8   : > { %s2909_s12 = sshll.u32 (!%p354_p3), %s2810_s27, 3  ;;  %p432_p5 = scmp.lt.s32.totalorder (!%p354_p3), %s2814_s28, 1 }
   0x9   : > { %s3569_s9 = smov (%p33_p4, %s3567_s9), 0  ;;  %357 = sbr.rel (%p354_p3) target bundleno = 483 (0x1e3), region = 48 }
   0xa   : > { %p434_p6 = scmp.lt.s32.totalorder (!%p354_p3), %s2909_s12, 23  ;;  %s2238_s17 = sadd.s32 (!%p354_p3), 4294967295, %s2909_s12 }
   0xb   : > { %p444_p7 = scmp.gt.s32.totalorder (!%p354_p3), %s2238_s17, 0  ;;  %p2239_p8 = scmp.lt.s32.totalorder (!%p354_p3), %s2238_s17, 23 }
   0xc   : > { %p516_p9 = scmp.ne.s32.totalorder (!%p354_p3), %s2810_s27, 0  ;;  %p540_p11 = scmp.ne.s32.totalorder (!%p354_p3), %s2810_s27, 2 }
   0xd   : > { %s2585_s10 = sadd.s32 (!%p354_p3), 8, %s2909_s12  ;;  %p489_p0 = scmp.lt.s32.totalorder (!%p354_p3), %s2810_s27, 2 }
   0xe   : > { %v2601_v0 = vld [vmem:[%s3553_s5 + $0x38] sm:$0xff]  ;;  %v2600_v1 = vld [vmem:[%s3553_s5 + $0x30] sm:$0xff]  ;;  %s3571_s28 = smov (!%p432_p5, %s2814_s28), 1  ;;  %v2599_v2 = vld [vmem:[%s3553_s5 + $0x28] sm:$0xff]  ;;  %s3573_s17 = smov (!%p444_p7, %s2238_s17), 0  ;;  %vm704_vm0 = vcmask 1040384  }
   0xf   : > { %2721 = vmatpush.bf16.msra.mxu1 %v2601_v0  ;;  %2722 = vmatpush.bf16.msra.mxu2 %v2601_v0  ;;  %s435_s15 = scalar_select %p434_p6, %s2909_s12, 23  ;;  %v2598_v3 = vld [vmem:[%s3553_s5 + $0x20] sm:$0xff]  ;;  %v2597_v4 = vld [vmem:[%s3553_s5 + $0x18] sm:$0xff]  ;;  %v2596_v8 = vld [vmem:[%s3553_s5 + $0x10] sm:$0xff]  ;;  %vm705_vm1 = vsmask.f32 256 }
  0x10   : > { %2723 = vmatpush.bf16.msra.mxu3 %v2601_v0  ;;  %1499 = vmatpush.bf16.msra.mxu0 %v2601_v0  ;;  %s2919_s16 = smul.u32 48, %s3571_s28  ;;  %s3575_s17 = smov (!%p2239_p8, %s3573_s17), 23  ;;  %v2595_v13 = vld [vmem:[%s3553_s5 + $0x8] sm:$0xff]  ;;  %v2594_v23 = vld [vmem:[%s3553_s5] sm:$0xff]  ;;  %vm2969_vm2 = vmand %vm704_vm0, %vm705_vm1  ;;  %vm727_vm3 = vsmask.f32 7424 }
  0x11   : > { %s2235_s18 = sshll.u32 %s435_s15, 1  ;;  %s2244_s14 = sshll.u32 %s3575_s17, 1  ;;  %v2617_v29 = vld [vmem:[%s3553_s5 + $0xb8] sm:$0xff]  ;;  %v2616_v45 = vld [vmem:[%s3553_s5 + $0xb0] sm:$0xff]  ;;  %v2615_v55 = vld [vmem:[%s3553_s5 + $0xa8] sm:$0xff]  ;;  %vm848_vm4 = vcmask 1046528  }
  0x12   : > { %s2926_s21 = sadd.s32 %s2919_s16, %s2235_s18  ;;  %s452_s19 = sadd.s32 %s2919_s16, %s2244_s14  ;;  %v2609_v30 = vld [vmem:[%s3553_s5 + $0x78] sm:$0xff]  ;;  %v2608_v46 = vld [vmem:[%s3553_s5 + $0x70] sm:$0xff]  ;;  %v2607_v56 = vld [vmem:[%s3553_s5 + $0x68] sm:$0xff]  ;;  %vm2032_vm5 = vcmask 1041408  }
  0x13   : > { %2724 = vmatpush.bf16.msra.mxu1 %v2600_v1  ;;  %2725 = vmatpush.bf16.msra.mxu2 %v2600_v1  ;;  %s2236_s22 = sshll.u32 %s2926_s21, 2  ;;  %s2245_s20 = sshll.u32 %s452_s19, 2  ;;  %v2633_v37 = vld [vmem:[%s3553_s5 + $0x138] sm:$0xff]  ;;  %v2632_v48 = vld [vmem:[%s3553_s5 + $0x130] sm:$0xff]  ;;  %v2631_v59 = vld [vmem:[%s3553_s5 + $0x128] sm:$0xff] }
  0x14   : > { %2726 = vmatpush.bf16.msra.mxu3 %v2600_v1  ;;  %1500 = vmatpush.bf16.msra.mxu0 %v2600_v1  ;;  %s2935_s25 = scalar_lea.vmem %s3548_s0, %s2236_s22  ;;  %s454_s14 = scalar_lea.vmem %s3549_s1, %s2245_s20  ;;  %v2625_v41 = vld [vmem:[%s3553_s5 + $0xf8] sm:$0xff]  ;;  %v2624_v51 = vld [vmem:[%s3553_s5 + $0xf0] sm:$0xff]  ;;  %v2623_v63 = vld [vmem:[%s3553_s5 + $0xe8] sm:$0xff] }
  0x15   : > { %s517_s11 = scalar_select %p516_p9, 1, 0  ;;  %v2587_v5 = vld [vmem:[%s2935_s25 + $0x8] sm:$0xff]  ;;  %v2589_v6 = vld [vmem:[%s2935_s25 + $0x18] sm:$0xff]  ;;  %v2667_v12 = vld [vmem:[%s454_s14] sm:$0xff]  }
  0x16   : > { %v2591_v7 = vld [vmem:[%s2935_s25 + $0x28] sm:$0xff]  ;;  %v629_v9 = vshrl.u32 %v2587_v5, 16  ;;  %v643_v10 = vshrl.u32 %v2589_v6, 16  ;;  %v632_v15 = vshll.u32 %v2587_v5, 16  ;;  %v646_v17 = vshll.u32 %v2589_v6, 16  ;;  %v2588_v38 = vld [vmem:[%s2935_s25 + $0x10] sm:$0xff] }
  0x17   : > { %2727 = vmatpush.bf16.msra.mxu1 %v2599_v2  ;;  %2728 = vmatpush.bf16.msra.mxu2 %v2599_v2  ;;  %s518_s13 = scvt.s32.f32 %s517_s11  ;;  %v657_v11 = vshrl.u32 %v2591_v7, 16  ;;  %v660_v19 = vshll.u32 %v2591_v7, 16  ;;  %v2668_v20 = vunpack.c.l.bf16 %v2667_v12  ;;  %v2669_v21 = vunpack.c.h.bf16 %v2667_v12  ;;  %v2590_v39 = vld [vmem:[%s2935_s25 + $0x20] sm:$0xff]  ;;  %v2592_v42 = vld [vmem:[%s2935_s25 + $0x30] sm:$0xff]  ;;  %v2613_v12 = vld [vmem:[%s3553_s5 + $0x98] sm:$0xff]  ;;  %p3419_p12 = scmp.lt.s32.totalorder %s2585_s10, 23 }
  0x18   : > { %2729 = vmatpush.bf16.msra.mxu3 %v2599_v2  ;;  %1501 = vmatpush.bf16.msra.mxu0 %v2599_v2  ;;  %v2957_v14 = vrot.slane %v629_v9, 7  ;;  %v2959_v16 = vrot.slane %v643_v10, 7  ;;  %v636_v49 = vshrl.u32 %v2588_v38, 16  ;;  %v650_v50 = vshrl.u32 %v2590_v39, 16  ;;  %v2586_v5 = vld [vmem:[%s2935_s25] sm:$0xff]  ;;  %s2746_s21 = smul.u32 3, %s3571_s28 }
  0x19   : > { %s521_s23 = sshrl.u32 %s518_s13, 16  ;;  %p520_p10 = scmp.ne.f32.partialorder %s518_s13, %s518_s13  ;;  %v2961_v18 = vrot.slane %v657_v11, 7  ;;  %v664_v52 = vshrl.u32 %v2592_v42, 16  ;;  %v639_v57 = vshll.u32 %v2588_v38, 16  ;;  %v653_v62 = vshll.u32 %v2590_v39, 16  ;;  %v2630_v7 = vld [vmem:[%s3553_s5 + $0x120] sm:$0xff] }
  0x1a   : > { %s522_s24 = sand.u32 1, %s521_s23  ;;  %v634_v24 = vor.u32 %v632_v15, %v2957_v14  ;;  %v648_v25 = vor.u32 %v646_v17, %v2959_v16  ;;  %v3025_v60 = vrot.slane %v636_v49, 7  ;;  %v3027_v61 = vrot.slane %v650_v50, 7  ;;  %v2622_v10 = vld [vmem:[%s3553_s5 + $0xe0] sm:$0xff]  ;;  %v2627_v39 = vld [vmem:[%s3553_s5 + $0x108] sm:$0xff]  ;;  %s3579_s10 = smov (!%p3419_p12, %s2585_s10), 23 }
  0x1b   : > { %2730 = vmatpush.bf16.msra.mxu1 %v2598_v3  ;;  %2731 = vmatpush.bf16.msra.mxu2 %v2598_v3  ;;  %s523_s26 = sadd.s32 32767, %s522_s24  ;;  %v662_v28 = vor.u32 %v660_v19, %v2961_v18  ;;  %v3032_v0 = vrot.slane %v664_v52, 7  ;;  %v667_v1 = vshll.u32 %v2592_v42, 16  ;;  %v622_v15 = vshrl.u32 %v2586_v5, 16  ;;  %v2619_v42 = vld [vmem:[%s3553_s5 + $0xc8] sm:$0xff]  ;;  %s3581_s10 = smov (!%p3419_p12, %s3579_s10), 23 }
  0x1c   : > { %2732 = vmatpush.bf16.msra.mxu3 %v2598_v3  ;;  %1502 = vmatpush.bf16.msra.mxu0 %v2598_v3  ;;  %s524_s18 = sadd.s32 %s523_s26, %s518_s13  ;;  %v2982_v33 = vsel %vm2969_vm2, 0, %v634_v24  ;;  %v2986_v34 = vsel %vm2969_vm2, 0, %v648_v25  ;;  %v2614_v3 = vld [vmem:[%s3553_s5 + $0xa0] sm:$0xff]  ;;  %v655_v9 = vor.u32 %v653_v62, %v3027_v61  ;;  %v625_v24 = vshll.u32 %v2586_v5, 16  ;;  %v2612_v25 = vld [vmem:[%s3553_s5 + $0x90] sm:$0xff]  ;;  %s2250_s23 = sshll.u32 %s3581_s10, 1 }
  0x1d   : > { %s525_s19 = sand.u32 4294901760, %s524_s18  ;;  %v2995_v40 = vsel %vm2969_vm2, 0, %v662_v28  ;;  %v669_v11 = vor.u32 %v667_v1, %v3032_v0  ;;  %v2648_v62 = vld [vmem:[%s3553_s5 + $0x1b0] sm:$0xff]  ;;  %s3585_s27 = smov (!%p489_p0, %s2810_s27), 2 }
  0x1e   : > { %s3577_s19 = smov (%p520_p10, %s525_s19), 2143289344  ;;  %v3067_v19 = vsel %vm2969_vm2, 0, %v655_v9  ;;  %v2664_v1 = vld [vmem:[%s3553_s5 + $0x230] sm:$0xff] }
  0x1f   : > { %2733 = vmatpush.bf16.msra.mxu1 %v2597_v4  ;;  %2734 = vmatpush.bf16.msra.mxu2 %v2597_v4  ;;  %s528_s20 = sshrl.u32 %s3577_s19, 16  ;;  %v2656_v5 = vld [vmem:[%s3553_s5 + $0x1f0] sm:$0xff] }
  0x20   : > { %2735 = vmatpush.bf16.msra.mxu3 %v2597_v4  ;;  %1503 = vmatpush.bf16.msra.mxu0 %v2597_v4  ;;  %s529_s13 = sshll.u32 %s528_s20, 16  ;;  %v2606_v4 = vld [vmem:[%s3553_s5 + $0x60] sm:$0xff] }
  0x21   : > { %s530_s26 = sor.u32 %s529_s13, %s528_s20 }
  0x22   : > { %v531_v22 = vstv %s530_s26  ;;  %s541_s26 = scalar_select %p540_p11, 1, 0 }
  0x23   : > { %2736 = vmatpush.bf16.msra.mxu1 %v2596_v8  ;;  %2737 = vmatpush.bf16.msra.mxu2 %v2596_v8  ;;  %v535_v26 = vunpack.c.l.bf16 %v531_v22  ;;  %v2621_v22 = vld [vmem:[%s3553_s5 + $0xd8] sm:$0xff] }
  0x24   : > { %2738 = vmatpush.bf16.msra.mxu3 %v2596_v8  ;;  %1504 = vmatpush.bf16.msra.mxu0 %v2596_v8  ;;  %v641_v8 = vor.u32 %v639_v57, %v3025_v60  ;;  %s3408_s17 = scvt.s32.f32 %s541_s26 }
  0x25   : > { %v536_v31 = vmul.f32 %v2668_v20, %v535_v26  ;;  %v537_v32 = vmul.f32 %v2669_v21, %v535_v26  ;;  %v2629_v20 = vld [vmem:[%s3553_s5 + $0x118] sm:$0xff]  ;;  %v3074_v21 = vsel %vm2969_vm2, 0, %v669_v11  ;;  %v2604_v26 = vld [vmem:[%s3553_s5 + $0x50] sm:$0xff] }
  0x26   : > { %v3063_v17 = vsel %vm2969_vm2, 0, %v641_v8  ;;  %s545_s11 = sshrl.u32 %s3408_s17, 16  ;;  %p544_p13 = scmp.ne.f32.partialorder %s3408_s17, %s3408_s17 }
  0x27   : > { %2739 = vmatpush.bf16.msra.mxu1 %v2595_v13  ;;  %2740 = vmatpush.bf16.msra.mxu2 %v2595_v13  ;;  %v538_v35 = vpack.c.bf16 %v536_v31, %v536_v31  ;;  %v539_v36 = vpack.c.bf16 %v537_v32, %v537_v32  ;;  %s546_s14 = sand.u32 1, %s545_s11 }
  0x28   : > { %2741 = vmatpush.bf16.msra.mxu3 %v2595_v13  ;;  %1505 = vmatpush.bf16.msra.mxu0 %v2595_v13  ;;  %v2605_v13 = vld [vmem:[%s3553_s5 + $0x58] sm:$0xff]  ;;  %s547_s12 = sadd.s32 32767, %s546_s14  ;;  %s3502_s14 = scalar_lea.vmem %s3555_s7, %s2236_s22 }
  0x29   : > { %v584_v43 = vunpack.c.l.b16 %v538_v35  ;;  %v585_v44 = vunpack.c.l.b16 %v539_v36  ;;  %v2611_v35 = vld [vmem:[%s3553_s5 + $0x88] sm:$0xff]  ;;  %s548_s18 = sadd.s32 %s547_s12, %s3408_s17  ;;  %s492_s22 = sadd.s32 %s2746_s21, %s3585_s27 }
  0x2a   : > { %v2603_v36 = vld [vmem:[%s3553_s5 + $0x48] sm:$0xff]  ;;  %s549_s19 = sand.u32 4294901760, %s548_s18  ;;  %s2255_s12 = sshll.u32 %s492_s22, 3 }
  0x2b   : > { %2742 = vmatpush.bf16.msra.mxu1 %v2594_v23  ;;  %2743 = vmatpush.bf16.msra.mxu2 %v2594_v23  ;;  %v604_v47 = vpack.c.b16 %v585_v44, %v584_v43  ;;  %v2610_v44 = vld [vmem:[%s3553_s5 + $0x80] sm:$0xff]  ;;  %s3583_s19 = smov (%p544_p13, %s549_s19), 2143289344 }
  0x2c   : > { %2744 = vmatpush.bf16.msra.mxu3 %v2594_v23  ;;  %1506 = vmatpush.bf16.msra.mxu0 %v2594_v23  ;;  %v624_v23 = vrot.slane %v622_v15, 7  ;;  %v2663_v15 = vld [vmem:[%s3553_s5 + $0x228] sm:$0xff]  ;;  %s552_s24 = sshrl.u32 %s3583_s19, 16 }
  0x2d   : > { %v615_v53 = vshrl.u32 %v604_v47, 16  ;;  %v618_v54 = vshll.u32 %v604_v47, 16  ;;  %v2641_v47 = vld [vmem:[%s3553_s5 + $0x178] sm:$0xff]  ;;  %s553_s13 = sshll.u32 %s552_s24, 16 }
  0x2e   : > { %1517 = vmatmul.bf16.vlgmr.msra.gmra.mxu1 %v2982_v33  ;;  %1527 = vmatmul.bf16.vlgmr.msra.gmra.mxu2 %v2986_v34  ;;  %v627_v32 = vor.u32 %v625_v24, %v624_v23  ;;  %v718_v57 = vsel %vm2969_vm2, %v624_v23, 0  ;;  %v753_v24 = vshrl.u32 %v2982_v33, 16  ;;  %s554_s11 = sor.u32 %s553_s13, %s552_s24 }
  0x2f   : > { %1597 = vmatpush.bf16.msrb.mxu2 %v2617_v29  ;;  %1548 = vmatpush.bf16.msrb.mxu1 %v2609_v30  ;;  %v617_v58 = vrot.slane %v615_v53, 7  ;;  %v2628_v29 = vld [vmem:[%s3553_s5 + $0x110] sm:$0xff]  ;;  %v2618_v53 = vld [vmem:[%s3553_s5 + $0xc0] sm:$0xff]  ;;  %v853_v11 = vrot.slane %v718_v57, 1 }
  0x30   : > { %1537 = vmatmul.bf16.vlgmr.msra.gmra.mxu3 %v2995_v40  ;;  %1695 = vmatpush.bf16.msrb.mxu0 %v2633_v37  ;;  %v2620_v30 = vld [vmem:[%s3553_s5 + $0xd0] sm:$0xff]  ;;  %v3112_v43 = vsel %vm2969_vm2, 0, %v627_v32 }
  0x31   : > { %1646 = vmatpush.bf16.msrb.mxu3 %v2625_v41  ;;  %v620_v2 = vor.u32 %v618_v54, %v617_v58  ;;  %v717_v31 = vsel %vm2969_vm2, %v617_v58, 0  ;;  %v2665_v54 = vld [vmem:[%s3553_s5 + $0x238] sm:$0xff] }
  0x32   : > { %v736_v41 = vshll.u32 %v717_v31, 16  ;;  %v850_v52 = vrot.slane %v717_v31, 1  ;;  %v855_v31 = vrot.slane %v2982_v33, 1 }
  0x33   : > { %1598 = vmatpush.bf16.msrb.mxu2 %v2616_v45  ;;  %1549 = vmatpush.bf16.msrb.mxu1 %v2608_v46  ;;  %v3043_v6 = vsel %vm2969_vm2, 0, %v620_v2  ;;  %v2602_v45 = vld [vmem:[%s3553_s5 + $0x40] sm:$0xff]  ;;  %v2649_v46 = vld [vmem:[%s3553_s5 + $0x1b8] sm:$0xff]  ;;  %v741_v2 = vshrl.u32 %v3112_v43, 16 }
  0x34   : > { %1696 = vmatpush.bf16.msrb.mxu0 %v2632_v48  ;;  %v731_v28 = vshll.u32 %v3043_v6, 16  ;;  %v729_v37 = vshrl.u32 %v3043_v6, 16  ;;  %v2626_v48 = vld [vmem:[%s3553_s5 + $0x100] sm:$0xff]  ;;  %v738_v50 = vrot.slane %v736_v41, 1 }
  0x35   : > { %1647 = vmatpush.bf16.msrb.mxu3 %v2624_v51  ;;  %1507 = vmatmul.bf16.vlgmr.msra.gmra.mxu0 %v3043_v6  ;;  %v849_v51 = vrot.slane %v3043_v6, 1  ;;  %v2647_v6 = vld [vmem:[%s3553_s5 + $0x1a8] sm:$0xff] }
  0x36   : > { %v733_v38 = vrot.slane %v731_v28, 1  ;;  %v2646_v28 = vld [vmem:[%s3553_s5 + $0x1a0] sm:$0xff] }
  0x37   : > { %1599 = vmatpush.bf16.msrb.mxu2 %v2615_v55  ;;  %1550 = vmatpush.bf16.msrb.mxu1 %v2607_v56  ;;  %v743_v55 = vshll.u32 %v3112_v43, 16  ;;  %v2657_v56 = vld [vmem:[%s3553_s5 + $0x1f8] sm:$0xff] }
  0x38   : > { %1697 = vmatpush.bf16.msrb.mxu0 %v2631_v59  ;;  %v734_v49 = vor.u32 %v733_v38, %v729_v37  ;;  %v851_v59 = vsel %vm848_vm4, %v849_v51, %v850_v52  ;;  %v2662_v37 = vld [vmem:[%s3553_s5 + $0x220] sm:$0xff]  ;;  %v767_v38 = vshll.u32 %v3063_v17, 16  ;;  %v2637_v51 = vld [vmem:[%s3553_s5 + $0x158] sm:$0xff] }
  0x39   : > { %1648 = vmatpush.bf16.msrb.mxu3 %v2623_v63  ;;  %v2640_v63 = vld [vmem:[%s3553_s5 + $0x170] sm:$0xff]  ;;  %v2661_v52 = vld [vmem:[%s3553_s5 + $0x218] sm:$0xff] }
  0x3a   : > { %v739_v58 = vsel %vm727_vm3, %v734_v49, %v738_v50  ;;  %v2653_v50 = vld [vmem:[%s3553_s5 + $0x1d8] sm:$0xff] }
  0x3b   : > { %1600 = vmatpush.bf16.msrb.mxu2 %v2614_v3  ;;  %1551 = vmatpush.bf16.msrb.mxu1 %v2606_v4  ;;  %v745_v3 = vrot.slane %v743_v55, 1  ;;  %v748_v4 = vshll.u32 %v718_v57, 16 }
  0x3c   : > { %1698 = vmatpush.bf16.msrb.mxu0 %v2630_v7 }
  0x3d   : > { %1649 = vmatpush.bf16.msrb.mxu3 %v2622_v10  ;;  %v746_v7 = vor.u32 %v745_v3, %v741_v2  ;;  %v750_v8 = vrot.slane %v748_v4, 1  ;;  %v852_v10 = vrot.slane %v3112_v43, 1  ;;  %v2652_v3 = vld [vmem:[%s3553_s5 + $0x1d0] sm:$0xff] }
  0x3e   : > { %1522 = vmatmul.bf16.gmra.mxu1 %v3063_v17  ;;  %1532 = vmatmul.bf16.gmra.mxu2 %v3067_v19  ;;  %v2636_v4 = vld [vmem:[%s3553_s5 + $0x150] sm:$0xff] }
  0x3f   : > { %1601 = vmatpush.bf16.msrb.mxu2 %v2613_v12  ;;  %1552 = vmatpush.bf16.msrb.mxu1 %v2605_v13  ;;  %v751_v9 = vsel %vm727_vm3, %v746_v7, %v750_v8  ;;  %v2655_v12 = vld [vmem:[%s3553_s5 + $0x1e8] sm:$0xff]  ;;  %v3178_v23 = vsel %vm848_vm4, %v852_v10, %v853_v11  ;;  %v722_v7 = vsel %vm2969_vm2, %v3027_v61, 0 }
  0x40   : > { %1542 = vmatmul.bf16.gmra.mxu3 %v3074_v21  ;;  %1699 = vmatpush.bf16.msrb.mxu0 %v2629_v20  ;;  %v2639_v13 = vld [vmem:[%s3553_s5 + $0x168] sm:$0xff]  ;;  %v755_v20 = vshll.u32 %v2982_v33, 16  ;;  %v796_v11 = vshll.u32 %v722_v7, 16 }
  0x41   : > { %1650 = vmatpush.bf16.msrb.mxu3 %v2621_v22  ;;  %v719_v22 = vsel %vm2969_vm2, %v2957_v14, 0 }
  0x42   : > { %v856_v32 = vrot.slane %v719_v22, 1 }
  0x43   : > { %1602 = vmatpush.bf16.msrb.mxu2 %v2612_v25  ;;  %1553 = vmatpush.bf16.msrb.mxu1 %v2604_v26  ;;  %v757_v25 = vrot.slane %v755_v20, 1  ;;  %v760_v26 = vshll.u32 %v719_v22, 16  ;;  %v864_v20 = vrot.slane %v3067_v19, 1  ;;  %v865_v22 = vrot.slane %v722_v7, 1 }
  0x44   : > { %1700 = vmatpush.bf16.msrb.mxu0 %v2628_v29  ;;  %v3205_v41 = vsel %vm848_vm4, %v855_v31, %v856_v32 }
  0x45   : > { %1651 = vmatpush.bf16.msrb.mxu3 %v2620_v30  ;;  %1512 = vmatmul.bf16.gmra.mxu0 %v3112_v43  ;;  %v758_v14 = vor.u32 %v757_v25, %v753_v24  ;;  %v762_v29 = vrot.slane %v760_v26, 1  ;;  %v2651_v24 = vld [vmem:[%s3553_s5 + $0x1c8] sm:$0xff]  ;;  %v803_v26 = vshll.u32 %v2995_v40, 16 }
  0x46   : > { %v2635_v25 = vld [vmem:[%s3553_s5 + $0x148] sm:$0xff] }
  0x47   : > { %1603 = vmatpush.bf16.msrb.mxu2 %v2611_v35  ;;  %1554 = vmatpush.bf16.msrb.mxu1 %v2603_v36  ;;  %v3187_v30 = vsel %vm727_vm3, %v758_v14, %v762_v29  ;;  %v2654_v35 = vld [vmem:[%s3553_s5 + $0x1e0] sm:$0xff]  ;;  %v3286_v14 = vsel %vm848_vm4, %v864_v20, %v865_v22  ;;  %v801_v29 = vshrl.u32 %v2995_v40, 16  ;;  %v805_v31 = vrot.slane %v803_v26, 1 }
  0x48   : > { %1701 = vmatpush.bf16.msrb.mxu0 %v2627_v39  ;;  %v2638_v36 = vld [vmem:[%s3553_s5 + $0x160] sm:$0xff]  ;;  %v720_v39 = vsel %vm2969_vm2, %v3025_v60, 0  ;;  %v2645_v60 = vld [vmem:[%s3553_s5 + $0x198] sm:$0xff] }
  0x49   : > { %1652 = vmatpush.bf16.msrb.mxu3 %v2619_v42  ;;  %v765_v42 = vshrl.u32 %v3063_v17, 16  ;;  %v859_v49 = vrot.slane %v720_v39, 1 }
  0x4b   : > { %1604 = vmatpush.bf16.msrb.mxu2 %v2610_v44  ;;  %1555 = vmatpush.bf16.msrb.mxu1 %v2602_v45  ;;  %v772_v44 = vshll.u32 %v720_v39, 16  ;;  %v2642_v39 = vld [vmem:[%s3553_s5 + $0x180] sm:$0xff] }
  0x4c   : > { %1702 = vmatpush.bf16.msrb.mxu0 %v2626_v48  ;;  %v858_v48 = vrot.slane %v3063_v17, 1 }
  0x4d   : > { %1653 = vmatpush.bf16.msrb.mxu3 %v2618_v53  ;;  %v779_v53 = vshll.u32 %v2986_v34, 16 }
  0x4e   : > { %1556 = vmatmul.bf16.vlgmr.msrb.gmra.mxu1 %v739_v58  ;;  %1605 = vmatmul.bf16.vlgmr.msrb.gmra.mxu2 %v851_v59  ;;  %v3233_v55 = vsel %vm848_vm4, %v858_v48, %v859_v49 }
  0x4f   : > { %1793 = vmatpush.bf16.msra.mxu2 %v2649_v46  ;;  %1744 = vmatpush.bf16.msra.mxu1 %v2641_v47  ;;  %v774_v46 = vrot.slane %v772_v44, 1  ;;  %v781_v57 = vrot.slane %v779_v53, 1  ;;  %v2650_v44 = vld [vmem:[%s3553_s5 + $0x1c0] sm:$0xff] }
  0x50   : > { %1891 = vmatpush.bf16.msra.mxu0 %v2665_v54  ;;  %1654 = vmatmul.bf16.vlgmr.msrb.gmra.mxu3 %v3112_v43  ;;  %v769_v43 = vrot.slane %v767_v38, 1  ;;  %v721_v54 = vsel %vm2969_vm2, %v2959_v16, 0  ;;  %v2644_v16 = vld [vmem:[%s3553_s5 + $0x190] sm:$0xff]  ;;  %v2593_v38 = vld [vmem:[%s2935_s25 + $0x38] sm:$0xff]  ;;  %s469_s25 = sadd.s32 %s2919_s16, %s2250_s23  ;;  %s494_s23 = scalar_lea.vmem %s3556_s8, %s2255_s12 }
  0x51   : > { %1842 = vmatpush.bf16.msra.mxu3 %v2657_v56  ;;  %v777_v56 = vshrl.u32 %v2986_v34, 16  ;;  %v784_v58 = vshll.u32 %v721_v54, 16  ;;  %v862_v2 = vrot.slane %v721_v54, 1  ;;  %v671_v48 = vshrl.u32 %v2593_v38, 16  ;;  %s2251_s20 = sshll.u32 %s469_s25, 2 }
  0x52   : > { %v770_v45 = vor.u32 %v769_v43, %v765_v42  ;;  %v867_v42 = vrot.slane %v2995_v40, 1  ;;  %s471_s10 = scalar_lea.vmem %s3550_s2, %s2251_s20 }
  0x53   : > { %1794 = vmatpush.bf16.msra.mxu2 %v2648_v62  ;;  %1745 = vmatpush.bf16.msra.mxu1 %v2640_v63  ;;  %v782_v59 = vor.u32 %v781_v57, %v777_v56  ;;  %v786_v62 = vrot.slane %v784_v58, 1  ;;  %v673_v54 = vrot.slane %v671_v48, 7  ;;  %v674_v56 = vshll.u32 %v2593_v38, 16  ;;  %v3329_v57 = vld [vmem:[%s3554_s6] ss:$0 sm:$0xff] }
  0x54   : > { %1892 = vmatpush.bf16.msra.mxu0 %v2664_v1  ;;  %v3215_v47 = vsel %vm727_vm3, %v770_v45, %v774_v46  ;;  %v861_v1 = vrot.slane %v2986_v34, 1  ;;  %v815_v45 = vshll.u32 %v3074_v21, 16  ;;  %v724_v46 = vsel %vm2969_vm2, %v3032_v0, 0  ;;  %v2658_v0 = vld [vmem:[%s3553_s5 + $0x200] sm:$0xff] }
  0x55   : > { %1843 = vmatpush.bf16.msra.mxu3 %v2656_v5  ;;  %1703 = vmatmul.bf16.vlgmr.msrb.gmra.mxu0 %v751_v9  ;;  %v3243_v63 = vsel %vm727_vm3, %v782_v59, %v786_v62  ;;  %v2660_v5 = vld [vmem:[%s3553_s5 + $0x210] sm:$0xff]  ;;  %v820_v53 = vshll.u32 %v724_v46, 16  ;;  %v3354_v20 = vsel %vm2969_vm2, %v673_v54, 0 }
  0x56   : > { %v3261_v8 = vsel %vm848_vm4, %v861_v1, %v862_v2  ;;  %v676_v2 = vor.u32 %v674_v56, %v673_v54 }
  0x57   : > { %1795 = vmatpush.bf16.msra.mxu2 %v2647_v6  ;;  %1746 = vmatpush.bf16.msra.mxu1 %v2639_v13  ;;  %v791_v6 = vshll.u32 %v3067_v19, 16  ;;  %v798_v13 = vrot.slane %v796_v11, 1 }
  0x58   : > { %1893 = vmatpush.bf16.msra.mxu0 %v2663_v15  ;;  %v2643_v15 = vld [vmem:[%s3553_s5 + $0x188] sm:$0xff]  ;;  %v3344_v7 = vsel %vm2969_vm2, 0, %v676_v2 }
  0x59   : > { %1844 = vmatpush.bf16.msra.mxu3 %v2655_v12  ;;  %v793_v10 = vrot.slane %v791_v6, 1 }
  0x5b   : > { %1796 = vmatpush.bf16.msra.mxu2 %v2646_v28  ;;  %1747 = vmatpush.bf16.msra.mxu1 %v2638_v36  ;;  %v723_v28 = vsel %vm2969_vm2, %v2961_v18, 0  ;;  %v806_v18 = vor.u32 %v805_v31, %v801_v29  ;;  %v889_v31 = vshll.u32 %v3354_v20, 16 }
  0x5c   : > { %1894 = vmatpush.bf16.msra.mxu0 %v2662_v37  ;;  %v808_v32 = vshll.u32 %v723_v28, 16  ;;  %v868_v43 = vrot.slane %v723_v28, 1  ;;  %v882_v28 = vshrl.u32 %v3344_v7, 16 }
  0x5d   : > { %1845 = vmatpush.bf16.msra.mxu3 %v2654_v35  ;;  %v2659_v35 = vld [vmem:[%s3553_s5 + $0x208] sm:$0xff] }
  0x5e   : > { %1561 = vmatmul.bf16.gmra.mxu1 %v751_v9  ;;  %1610 = vmatmul.bf16.gmra.mxu2 %v3178_v23  ;;  %v789_v9 = vshrl.u32 %v3067_v19, 16  ;;  %v810_v36 = vrot.slane %v808_v32, 1 }
  0x5f   : > { %1797 = vmatpush.bf16.msra.mxu2 %v2645_v60  ;;  %1748 = vmatpush.bf16.msra.mxu1 %v2637_v51  ;;  %v2634_v60 = vld [vmem:[%s3553_s5 + $0x140] sm:$0xff]  ;;  %v813_v51 = vshrl.u32 %v3074_v21, 16 }
  0x60   : > { %1659 = vmatmul.bf16.gmra.mxu3 %v2982_v33  ;;  %1895 = vmatpush.bf16.msra.mxu0 %v2661_v52  ;;  %v794_v12 = vor.u32 %v793_v10, %v789_v9  ;;  %v3296_v37 = vsel %vm727_vm3, %v806_v18, %v810_v36  ;;  %v817_v52 = vrot.slane %v815_v45, 1  ;;  %v870_v9 = vrot.slane %v3074_v21, 1 }
  0x61   : > { %1846 = vmatpush.bf16.msra.mxu3 %v2653_v50  ;;  %v3317_v50 = vsel %vm848_vm4, %v867_v42, %v868_v43  ;;  %v871_v10 = vrot.slane %v724_v46, 1 }
  0x62   : > { %v3268_v61 = vsel %vm727_vm3, %v794_v12, %v798_v13  ;;  %v818_v58 = vor.u32 %v817_v52, %v813_v51  ;;  %v884_v12 = vshll.u32 %v3344_v7, 16 }
  0x63   : > { %1798 = vmatpush.bf16.msra.mxu2 %v2644_v16  ;;  %1749 = vmatpush.bf16.msra.mxu1 %v2636_v4  ;;  %v822_v16 = vrot.slane %v820_v53, 1 }
  0x64   : > { %1896 = vmatpush.bf16.msra.mxu0 %v2660_v5  ;;  %v886_v29 = vrot.slane %v884_v12, 1 }
  0x65   : > { %1708 = vmatmul.bf16.gmra.mxu0 %v3187_v30  ;;  %1847 = vmatpush.bf16.msra.mxu3 %v2652_v3  ;;  %v3340_v6 = vsel %vm727_vm3, %v818_v58, %v822_v16 }
  0x66   : > { %v887_v32 = vor.u32 %v886_v29, %v882_v28 }
  0x67   : > { %1799 = vmatpush.bf16.msra.mxu2 %v2643_v15  ;;  %1750 = vmatpush.bf16.msra.mxu1 %v2635_v25  ;;  %v3362_v25 = vsel %vm848_vm4, %v870_v9, %v871_v10 }
  0x68   : > { %1897 = vmatpush.bf16.msra.mxu0 %v2659_v35  ;;  %v891_v35 = vrot.slane %v889_v31, 1 }
  0x69   : > { %1848 = vmatpush.bf16.msra.mxu3 %v2651_v24 }
  0x6b   : > { %1800 = vmatpush.bf16.msra.mxu2 %v2642_v39  ;;  %1751 = vmatpush.bf16.msra.mxu1 %v2634_v60 }
  0x6c   : > { %1898 = vmatpush.bf16.msra.mxu0 %v2658_v0 }
  0x6d   : > { %1849 = vmatpush.bf16.msra.mxu3 %v2650_v44  ;;  %v3378_v44 = vsel %vm727_vm3, %v887_v32, %v891_v35 }
  0x6e   : > { %1566 = vmatmul.bf16.gmra.mxu1 %v3187_v30  ;;  %1615 = vmatmul.bf16.gmra.mxu2 %v3205_v41 }
  0x70   : > { %1664 = vmatmul.bf16.gmra.mxu3 %v3063_v17 }
  0x75   : > { %1713 = vmatmul.bf16.gmra.mxu0 %v3215_v47 }
  0x7e   : > { %1571 = vmatmul.bf16.gmra.mxu1 %v3215_v47  ;;  %1620 = vmatmul.bf16.gmra.mxu2 %v3233_v55 }
  0x80   : > { %1669 = vmatmul.bf16.gmra.mxu3 %v2986_v34 }
  0x85   : > { %1718 = vmatmul.bf16.gmra.mxu0 %v3243_v63 }
  0x8e   : > { %1576 = vmatmul.bf16.gmra.mxu1 %v3243_v63  ;;  %1625 = vmatmul.bf16.gmra.mxu2 %v3261_v8 }
  0x90   : > { %1674 = vmatmul.bf16.gmra.mxu3 %v3067_v19 }
  0x95   : > { %1723 = vmatmul.bf16.gmra.mxu0 %v3268_v61 }
  0x9e   : > { %1581 = vmatmul.bf16.gmra.mxu1 %v3268_v61  ;;  %1630 = vmatmul.bf16.gmra.mxu2 %v3286_v14 }
  0xa0   : > { %1679 = vmatmul.bf16.gmra.mxu3 %v2995_v40 }
  0xa5   : > { %1728 = vmatmul.bf16.gmra.mxu0 %v3296_v37 }
  0xab   : > { %v3314_v49 = vpop.f32.mrf.mxu1 }
  0xae   : > { %1586 = vmatmul.bf16.gmra.mxu1 %v3296_v37  ;;  %1635 = vmatmul.bf16.gmra.mxu2 %v3317_v50 }
  0xb0   : > { %1684 = vmatmul.bf16.gmra.mxu3 %v3074_v21 }
  0xb1   : > { %v1528_v59 = vpop.f32.mrf.mxu2 }
  0xb2   : > { %v3332_v62 = vadd.f32 %v3329_v57, %v1528_v59  ;;  %v1508_v5 = vpop.f32.mrf.mxu0 }
  0xb3   : > { %v1538_v1 = vpop.f32.mrf.mxu3  ;;  %v3337_v4 = vpop.f32.mrf.mxu1  ;;  %v1509_v45 = vadd.f32 %v3329_v57, %v1508_v5 }
  0xb4   : > { %v3335_v3 = vadd.f32 %v3329_v57, %v1538_v1 }
  0xb5   : > { %1733 = vmatmul.bf16.gmra.mxu0 %v3340_v6 }
  0xb9   : > { %v1530_v11 = vpop.f32.mrf.mxu2 }
  0xba   : > { %v3350_v13 = vadd.f32 %v3329_v57, %v1530_v11  ;;  %v1510_v26 = vpop.f32.mrf.mxu0 }
  0xbb   : > { %v1540_v15 = vpop.f32.mrf.mxu3  ;;  %v3359_v24 = vpop.f32.mrf.mxu1  ;;  %v1511_v0 = vadd.f32 %v3329_v57, %v1510_v26 }
  0xbc   : > { %v3357_v22 = vadd.f32 %v3329_v57, %v1540_v15 }
  0xbe   : > { %1591 = vmatmul.bf16.gmra.mxu1 %v3340_v6  ;;  %1640 = vmatmul.bf16.gmra.mxu2 %v3362_v25 }
  0xc0   : > { %1689 = vmatmul.bf16.gmra.mxu3 %v3344_v7 }
  0xc1   : > { %v1533_v18 = vpop.f32.mrf.mxu2 }
  0xc2   : > { %v3370_v36 = vadd.f32 %v3329_v57, %v1533_v18  ;;  %v1513_v43 = vpop.f32.mrf.mxu0 }
  0xc3   : > { %v1543_v38 = vpop.f32.mrf.mxu3  ;;  %v3375_v42 = vpop.f32.mrf.mxu1 }
  0xc4   : > { %v3373_v39 = vadd.f32 %v3329_v57, %v1543_v38 }
  0xc5   : > { %1738 = vmatmul.bf16.gmra.mxu0 %v3378_v44 }
  0xc9   : > { %v1535_v60 = vpop.f32.mrf.mxu2 }
  0xca   : > { %v3383_v46 = vadd.f32 %v3329_v57, %v1535_v60  ;;  %v1515_v54 = vpop.f32.mrf.mxu0 }
  0xcb   : > { %v1545_v48 = vpop.f32.mrf.mxu3  ;;  %v1557_v52 = vpop.f32.mrf.mxu1  ;;  %v1516_v31 = vadd.f32 %v3329_v57, %v1515_v54 }
  0xcc   : > { %v3386_v51 = vadd.f32 %v3329_v57, %v1545_v48  ;;  %v1558_v53 = vadd.f32 %v1557_v52, %v1509_v45 }
  0xce   : > { %1752 = vmatmul.bf16.vlgmr.msra.gmra.mxu1 %v3178_v23  ;;  %1801 = vmatmul.bf16.vlgmr.msra.gmra.mxu2 %v2982_v33  ;;  %v1514_v23 = vadd.f32 %v3329_v57, %v1513_v43 }
  0xd0   : > { %1850 = vmatmul.bf16.vlgmr.msra.gmra.mxu3 %v3187_v30 }
  0xd1   : > { %v1606_v56 = vpop.f32.mrf.mxu2 }
  0xd2   : > { %v1607_v58 = vadd.f32 %v1606_v56, %v1558_v53  ;;  %v1704_v5 = vpop.f32.mrf.mxu0 }
  0xd3   : > { %v1655_v16 = vpop.f32.mrf.mxu3  ;;  %v1559_v59 = vpop.f32.mrf.mxu1 }
  0xd4   : > { %v1656_v1 = vadd.f32 %v1655_v16, %v1607_v58  ;;  %v1560_v2 = vadd.f32 %v1559_v59, %v1511_v0 }
  0xd5   : > { %1899 = vmatmul.bf16.vlgmr.msra.gmra.mxu0 %v3205_v41 }
  0xd6   : > { %v3392_v9 = vadd.f32 %v1704_v5, %v1656_v1 }
  0xd9   : > { %v1608_v10 = vpop.f32.mrf.mxu2 }
  0xda   : > { %v1609_v11 = vadd.f32 %v1608_v10, %v1560_v2  ;;  %v1706_v26 = vpop.f32.mrf.mxu0 }
  0xdb   : > { %v1657_v33 = vpop.f32.mrf.mxu3  ;;  %v1562_v12 = vpop.f32.mrf.mxu1 }
  0xdc   : > { %v1658_v30 = vadd.f32 %v1657_v33, %v1609_v11  ;;  %v1563_v15 = vadd.f32 %v1562_v12, %v1514_v23 }
  0xde   : > { %1757 = vmatmul.bf16.gmra.mxu1 %v3205_v41  ;;  %1806 = vmatmul.bf16.gmra.mxu2 %v3063_v17  ;;  %v3398_v28 = vadd.f32 %v1706_v26, %v1658_v30  ;;  %v1519_v41 = vadd.f32 %v3329_v57, %v3314_v49  ;;  %v1521_v49 = vadd.f32 %v3329_v57, %v3337_v4 }
  0xdf   : > { %v1524_v4 = vadd.f32 %v3329_v57, %v3359_v24  ;;  %v1526_v26 = vadd.f32 %v3329_v57, %v3375_v42 }
  0xe0   : > { %1855 = vmatmul.bf16.gmra.mxu3 %v3215_v47 }
  0xe1   : > { %v1611_v29 = vpop.f32.mrf.mxu2 }
  0xe2   : > { %v1612_v32 = vadd.f32 %v1611_v29, %v1563_v15  ;;  %v1709_v60 = vpop.f32.mrf.mxu0 }
  0xe3   : > { %v1660_v35 = vpop.f32.mrf.mxu3  ;;  %v1564_v18 = vpop.f32.mrf.mxu1 }
  0xe4   : > { %v1661_v38 = vadd.f32 %v1660_v35, %v1612_v32  ;;  %v1565_v43 = vadd.f32 %v1564_v18, %v1516_v31 }
  0xe5   : > { %1904 = vmatmul.bf16.gmra.mxu0 %v3233_v55 }
  0xe6   : > { %v3403_v45 = vadd.f32 %v1709_v60, %v1661_v38 }
  0xe9   : > { %v1613_v17 = vpop.f32.mrf.mxu2 }
  0xea   : > { %v1614_v47 = vadd.f32 %v1613_v17, %v1565_v43  ;;  %v1711_v56 = vpop.f32.mrf.mxu0 }
  0xeb   : > { %v1662_v48 = vpop.f32.mrf.mxu3  ;;  %v1567_v52 = vpop.f32.mrf.mxu1 }
  0xec   : > { %v1663_v53 = vadd.f32 %v1662_v48, %v1614_v47  ;;  %v1568_v54 = vadd.f32 %v1567_v52, %v1519_v41  ;;  %v2671_v41 = vld [vmem:[%s471_s10] sm:$0xff]   ;;  %v555_v47 = vstv %s554_s11 }
  0xed   : > { %v2672_v48 = vunpack.c.l.bf16 %v2671_v41  ;;  %v2673_v52 = vunpack.c.h.bf16 %v2671_v41 }
  0xee   : > { %1762 = vmatmul.bf16.gmra.mxu1 %v3233_v55  ;;  %1811 = vmatmul.bf16.gmra.mxu2 %v2986_v34  ;;  %v3412_v0 = vadd.f32 %v1711_v56, %v1663_v53  ;;  %v559_v53 = vunpack.c.l.bf16 %v555_v47 }
  0xf0   : > { %1860 = vmatmul.bf16.gmra.mxu3 %v3243_v63 }
  0xf1   : > { %v1616_v58 = vpop.f32.mrf.mxu2 }
  0xf2   : > { %v1617_v16 = vadd.f32 %v1616_v58, %v1568_v54  ;;  %v1714_v34 = vpop.f32.mrf.mxu0  ;;  %v560_v58 = vmul.f32 %v2672_v48, %v559_v53 }
  0xf3   : > { %v1665_v59 = vpop.f32.mrf.mxu3  ;;  %v1569_v1 = vpop.f32.mrf.mxu1 }
  0xf4   : > { %v1666_v2 = vadd.f32 %v1665_v59, %v1617_v16  ;;  %v1570_v5 = vadd.f32 %v1569_v1, %v1521_v49  ;;  %v561_v49 = vmul.f32 %v2673_v52, %v559_v53  ;;  %v896_v52 = vrot.slane %v3344_v7, 1 }
  0xf5   : > { %1909 = vmatmul.bf16.gmra.mxu0 %v3261_v8  ;;  %v897_v53 = vrot.slane %v3354_v20, 1 }
  0xf6   : > { %v3423_v55 = vadd.f32 %v1714_v34, %v1666_v2  ;;  %v563_v34 = vpack.c.bf16 %v561_v49, %v561_v49 }
  0xf9   : > { %v1618_v63 = vpop.f32.mrf.mxu2 }
  0xfa   : > { %v1619_v10 = vadd.f32 %v1618_v63, %v1570_v5  ;;  %v1716_v30 = vpop.f32.mrf.mxu0 }
  0xfb   : > { %v1667_v23 = vpop.f32.mrf.mxu3  ;;  %v1572_v11 = vpop.f32.mrf.mxu1 }
  0xfc   : > { %v1668_v33 = vadd.f32 %v1667_v23, %v1619_v10  ;;  %v1573_v12 = vadd.f32 %v1572_v11, %v1524_v4  ;;  %v603_v10 = vunpack.c.l.b16 %v563_v34 }
  0xfe   : > { %1767 = vmatmul.bf16.gmra.mxu1 %v3261_v8  ;;  %1816 = vmatmul.bf16.gmra.mxu2 %v3067_v19  ;;  %v3437_v15 = vadd.f32 %v1716_v30, %v1668_v33 }
 0x100   : > { %1865 = vmatmul.bf16.gmra.mxu3 %v3268_v61 }
 0x101   : > { %v1621_v24 = vpop.f32.mrf.mxu2 }
 0x102   : > { %v1622_v29 = vadd.f32 %v1621_v24, %v1573_v12  ;;  %v1719_v8 = vpop.f32.mrf.mxu0 }
 0x103   : > { %v1670_v31 = vpop.f32.mrf.mxu3  ;;  %v1574_v32 = vpop.f32.mrf.mxu1 }
 0x104   : > { %v1671_v35 = vadd.f32 %v1670_v31, %v1622_v29  ;;  %v1575_v18 = vadd.f32 %v1574_v32, %v1526_v26 }
 0x105   : > { %1914 = vmatmul.bf16.gmra.mxu0 %v3286_v14 }
 0x106   : > { %v3443_v38 = vadd.f32 %v1719_v8, %v1671_v35 }
 0x109   : > { %v1623_v19 = vpop.f32.mrf.mxu2 }
 0x10a   : > { %v1624_v61 = vadd.f32 %v1623_v19, %v1575_v18  ;;  %v1721_v17 = vpop.f32.mrf.mxu0 }
 0x10b   : > { %v1672_v43 = vpop.f32.mrf.mxu3  ;;  %v1577_v57 = vpop.f32.mrf.mxu1 }
 0x10c   : > { %v1673_v42 = vadd.f32 %v1672_v43, %v1624_v61  ;;  %v1578_v60 = vadd.f32 %v1577_v57, %v3332_v62 }
 0x10e   : > { %1772 = vmatmul.bf16.gmra.mxu1 %v3286_v14  ;;  %1821 = vmatmul.bf16.gmra.mxu2 %v2995_v40  ;;  %v3452_v54 = vadd.f32 %v1721_v17, %v1673_v42  ;;  %v562_v14 = vpack.c.bf16 %v560_v58, %v560_v58 }
 0x110   : > { %1870 = vmatmul.bf16.gmra.mxu3 %v3296_v37  ;;  %v602_v4 = vunpack.c.l.b16 %v562_v14 }
 0x111   : > { %v1626_v56 = vpop.f32.mrf.mxu2 }
 0x112   : > { %v1627_v16 = vadd.f32 %v1626_v56, %v1578_v60  ;;  %v1724_v5 = vpop.f32.mrf.mxu0  ;;  %v613_v24 = vpack.c.b16 %v603_v10, %v602_v4 }
 0x113   : > { %v1675_v59 = vpop.f32.mrf.mxu3  ;;  %v1579_v62 = vpop.f32.mrf.mxu1 }
 0x114   : > { %v1676_v1 = vadd.f32 %v1675_v59, %v1627_v16  ;;  %v1580_v2 = vadd.f32 %v1579_v62, %v3350_v13  ;;  %v678_v29 = vshrl.u32 %v613_v24, 16  ;;  %v681_v61 = vshll.u32 %v613_v24, 16 }
 0x115   : > { %1919 = vmatmul.bf16.gmra.mxu0 %v3317_v50 }
 0x116   : > { %v3456_v40 = vadd.f32 %v1724_v5, %v1676_v1 }
 0x119   : > { %v1628_v63 = vpop.f32.mrf.mxu2 }
 0x11a   : > { %v1629_v37 = vadd.f32 %v1628_v63, %v1580_v2  ;;  %v1726_v30 = vpop.f32.mrf.mxu0 }
 0x11b   : > { %v1677_v23 = vpop.f32.mrf.mxu3  ;;  %v1582_v11 = vpop.f32.mrf.mxu1 }
 0x11c   : > { %v1678_v33 = vadd.f32 %v1677_v23, %v1629_v37  ;;  %v1583_v12 = vadd.f32 %v1582_v11, %v3370_v36  ;;  %v680_v36 = vrot.slane %v678_v29, 7 }
 0x11e   : > { %1777 = vmatmul.bf16.gmra.mxu1 %v3317_v50  ;;  %1826 = vmatmul.bf16.gmra.mxu2 %v3074_v21  ;;  %v3462_v13 = vadd.f32 %v1726_v30, %v1678_v33  ;;  %v683_v50 = vor.u32 %v681_v61, %v680_v36 }
 0x120   : > { %1875 = vmatmul.bf16.gmra.mxu3 %v3340_v6  ;;  %v716_v47 = vsel %vm2969_vm2, 0, %v683_v50 }
 0x121   : > { %v1631_v26 = vpop.f32.mrf.mxu2  ;;  %v903_v48 = vshll.u32 %v716_v47, 16  ;;  %v901_v59 = vshrl.u32 %v716_v47, 16  ;;  %v915_v33 = vrot.slane %v716_v47, 1 }
 0x122   : > { %v1632_v31 = vadd.f32 %v1631_v26, %v1583_v12  ;;  %v1729_v19 = vpop.f32.mrf.mxu0 }
 0x123   : > { %v1680_v32 = vpop.f32.mrf.mxu3  ;;  %v1584_v35 = vpop.f32.mrf.mxu1  ;;  %v905_v1 = vrot.slane %v903_v48, 1 }
 0x124   : > { %v1681_v18 = vadd.f32 %v1680_v32, %v1632_v31  ;;  %v1585_v8 = vadd.f32 %v1584_v35, %v3383_v46 }
 0x125   : > { %1924 = vmatmul.bf16.gmra.mxu0 %v3362_v25 }
 0x126   : > { %v3466_v43 = vadd.f32 %v1729_v19, %v1681_v18 }
 0x129   : > { %v1633_v21 = vpop.f32.mrf.mxu2 }
 0x12a   : > { %v1634_v57 = vadd.f32 %v1633_v21, %v1585_v8  ;;  %v1731_v41 = vpop.f32.mrf.mxu0 }
 0x12b   : > { %v1682_v42 = vpop.f32.mrf.mxu3  ;;  %v1587_v6 = vpop.f32.mrf.mxu1 }
 0x12c   : > { %v1683_v60 = vadd.f32 %v1682_v42, %v1634_v57  ;;  %v1588_v17 = vadd.f32 %v1587_v6, %v3335_v3  ;;  %v726_v3 = vsel %vm2969_vm2, %v680_v36, 0 }
 0x12d   : > { %v908_v2 = vshll.u32 %v726_v3, 16  ;;  %v916_v12 = vrot.slane %v726_v3, 1 }
 0x12e   : > { %1782 = vmatmul.bf16.gmra.mxu1 %v3362_v25  ;;  %1831 = vmatmul.bf16.gmra.mxu2 %v3344_v7  ;;  %v3474_v46 = vadd.f32 %v1731_v41, %v1683_v60  ;;  %v906_v7 = vor.u32 %v905_v1, %v901_v59 }
 0x12f   : > { %v910_v20 = vrot.slane %v908_v2, 1 }
 0x130   : > { %1880 = vmatmul.bf16.gmra.mxu3 %v3378_v44  ;;  %v898_v44 = vsel %vm848_vm4, %v896_v52, %v897_v53 }
 0x131   : > { %v1636_v56 = vpop.f32.mrf.mxu2  ;;  %v911_v23 = vsel %vm727_vm3, %v906_v7, %v910_v20 }
 0x132   : > { %v1637_v58 = vadd.f32 %v1636_v56, %v1588_v17  ;;  %v1734_v5 = vpop.f32.mrf.mxu0 }
 0x133   : > { %v1685_v49 = vpop.f32.mrf.mxu3  ;;  %v1589_v16 = vpop.f32.mrf.mxu1 }
 0x134   : > { %v1686_v25 = vadd.f32 %v1685_v49, %v1637_v58  ;;  %v1590_v62 = vadd.f32 %v1589_v16, %v3357_v22 }
 0x135   : > { %1929 = vmatmul.bf16.gmra.mxu0 %v898_v44 }
 0x136   : > { %v3483_v14 = vadd.f32 %v1734_v5, %v1686_v25 }
 0x139   : > { %v1638_v34 = vpop.f32.mrf.mxu2 }
 0x13a   : > { %v1639_v27 = vadd.f32 %v1638_v34, %v1590_v62  ;;  %v1736_v22 = vpop.f32.mrf.mxu0 }
 0x13b   : > { %v1687_v63 = vpop.f32.mrf.mxu3  ;;  %v1592_v4 = vpop.f32.mrf.mxu1 }
 0x13c   : > { %v1688_v10 = vadd.f32 %v1687_v63, %v1639_v27  ;;  %v1593_v37 = vadd.f32 %v1592_v4, %v3373_v39  ;;  %v917_v39 = vsel %vm848_vm4, %v915_v33, %v916_v12 }
 0x13e   : > { %1787 = vmatmul.bf16.gmra.mxu1 %v898_v44  ;;  %1836 = vmatmul.bf16.gmra.mxu2 %v716_v47  ;;  %v3487_v11 = vadd.f32 %v1736_v22, %v1688_v10 }
 0x140   : > { %1885 = vmatmul.bf16.gmra.mxu3 %v911_v23 }
 0x141   : > { %v1641_v30 = vpop.f32.mrf.mxu2 }
 0x142   : > { %v1642_v24 = vadd.f32 %v1641_v30, %v1593_v37  ;;  %v1739_v35 = vpop.f32.mrf.mxu0 }
 0x143   : > { %v1690_v26 = vpop.f32.mrf.mxu3  ;;  %v1594_v29 = vpop.f32.mrf.mxu1 }
 0x144   : > { %v1691_v31 = vadd.f32 %v1690_v26, %v1642_v24  ;;  %v1595_v32 = vadd.f32 %v1594_v29, %v3386_v51 }
 0x145   : > { %1934 = vmatmul.bf16.gmra.mxu0 %v917_v39 }
 0x146   : > { %v3491_v18 = vadd.f32 %v1739_v35, %v1691_v31 }
 0x149   : > { %v1643_v8 = vpop.f32.mrf.mxu2 }
 0x14a   : > { %v1644_v19 = vadd.f32 %v1643_v8, %v1595_v32  ;;  %v1741_v50 = vpop.f32.mrf.mxu0 }
 0x14b   : > { %v1692_v36 = vpop.f32.mrf.mxu3  ;;  %v1753_v61 = vpop.f32.mrf.mxu1 }
 0x14c   : > { %v1693_v21 = vadd.f32 %v1692_v36, %v1644_v19  ;;  %v1754_v42 = vadd.f32 %v1753_v61, %v3392_v9 }
 0x14e   : > { %v3493_v57 = vadd.f32 %v1741_v50, %v1693_v21 }
 0x151   : > { %v1802_v6 = vpop.f32.mrf.mxu2 }
 0x152   : > { %v1803_v51 = vadd.f32 %v1802_v6, %v1754_v42  ;;  %v1900_v41 = vpop.f32.mrf.mxu0 }
 0x153   : > { %v1851_v60 = vpop.f32.mrf.mxu3  ;;  %v1755_v17 = vpop.f32.mrf.mxu1 }
 0x154   : > { %v1852_v47 = vadd.f32 %v1851_v60, %v1803_v51  ;;  %v1756_v48 = vadd.f32 %v1755_v17, %v3398_v28 }
 0x156   : > { %v1901_v3 = vadd.f32 %v1900_v41, %v1852_v47 }
 0x158   : > { %v1993_v25 = vmul.f32 %v1901_v3, %v1901_v3 }
 0x159   : > { %v1804_v52 = vpop.f32.mrf.mxu2 }
 0x15a   : > { %v1805_v53 = vadd.f32 %v1804_v52, %v1756_v48  ;;  %v1902_v16 = vpop.f32.mrf.mxu0 }
 0x15b   : > { %v1853_v56 = vpop.f32.mrf.mxu3  ;;  %v1758_v58 = vpop.f32.mrf.mxu1 }
 0x15c   : > { %v1854_v49 = vadd.f32 %v1853_v56, %v1805_v53  ;;  %v1759_v28 = vadd.f32 %v1758_v58, %v3403_v45 }
 0x15e   : > { %v1903_v59 = vadd.f32 %v1902_v16, %v1854_v49 }
 0x160   : > { %v2677_v9 = vpack.c.bf16 %v1903_v59, %v1901_v3  ;;  %v1972_v62 = vadd.f32 %v1903_v59, %v1901_v3  ;;  %v1994_v1 = vmul.f32 %v1903_v59, %v1903_v59 }
 0x161   : > { %v1807_v2 = vpop.f32.mrf.mxu2 }
 0x162   : > { %2678 = vst [vmem:[%s3502_s14] sm:$0xff] %v2677_v9   ;;  %v2009_v5 = vadd.f32 %v1994_v1, %v1993_v25  ;;  %v1808_v44 = vadd.f32 %v1807_v2, %v1759_v28  ;;  %v1905_v27 = vpop.f32.mrf.mxu0 }
 0x163   : > { %v1856_v7 = vpop.f32.mrf.mxu3  ;;  %v1760_v20 = vpop.f32.mrf.mxu1 }
 0x164   : > { %v1857_v34 = vadd.f32 %v1856_v7, %v1808_v44  ;;  %v1761_v37 = vadd.f32 %v1760_v20, %v3412_v0 }
 0x166   : > { %v1906_v63 = vadd.f32 %v1905_v27, %v1857_v34 }
 0x168   : > { %v1973_v4 = vadd.f32 %v1972_v62, %v1906_v63  ;;  %v1995_v10 = vmul.f32 %v1906_v63, %v1906_v63 }
 0x169   : > { %v1809_v23 = vpop.f32.mrf.mxu2 }
 0x16a   : > { %v2010_v22 = vadd.f32 %v2009_v5, %v1995_v10  ;;  %v1810_v33 = vadd.f32 %v1809_v23, %v1761_v37  ;;  %v1907_v24 = vpop.f32.mrf.mxu0 }
 0x16b   : > { %v1858_v12 = vpop.f32.mrf.mxu3  ;;  %v1763_v30 = vpop.f32.mrf.mxu1 }
 0x16c   : > { %v1859_v45 = vadd.f32 %v1858_v12, %v1810_v33  ;;  %v1764_v35 = vadd.f32 %v1763_v30, %v3423_v55 }
 0x16e   : > { %v1908_v26 = vadd.f32 %v1907_v24, %v1859_v45 }
 0x170   : > { %v2682_v29 = vpack.c.bf16 %v1908_v26, %v1906_v63  ;;  %v1974_v31 = vadd.f32 %v1973_v4, %v1908_v26  ;;  %v1996_v32 = vmul.f32 %v1908_v26, %v1908_v26 }
 0x171   : > { %v1812_v39 = vpop.f32.mrf.mxu2 }
 0x172   : > { %2714 = vst [vmem:[%s3502_s14 + $0x8] sm:$0xff] %v2682_v29   ;;  %v2011_v8 = vadd.f32 %v2010_v22, %v1996_v32  ;;  %v1813_v19 = vadd.f32 %v1812_v39, %v1764_v35  ;;  %v1910_v21 = vpop.f32.mrf.mxu0 }
 0x173   : > { %v1861_v36 = vpop.f32.mrf.mxu3  ;;  %v1765_v61 = vpop.f32.mrf.mxu1 }
 0x174   : > { %v1862_v0 = vadd.f32 %v1861_v36, %v1813_v19  ;;  %v1766_v60 = vadd.f32 %v1765_v61, %v3437_v15 }
 0x176   : > { %v1911_v50 = vadd.f32 %v1910_v21, %v1862_v0 }
 0x178   : > { %v1975_v42 = vadd.f32 %v1974_v31, %v1911_v50  ;;  %v1997_v6 = vmul.f32 %v1911_v50, %v1911_v50 }
 0x179   : > { %v1814_v51 = vpop.f32.mrf.mxu2 }
 0x17a   : > { %v2012_v17 = vadd.f32 %v2011_v8, %v1997_v6  ;;  %v1815_v41 = vadd.f32 %v1814_v51, %v1766_v60  ;;  %v1912_v52 = vpop.f32.mrf.mxu0 }
 0x17b   : > { %v1863_v47 = vpop.f32.mrf.mxu3  ;;  %v1768_v48 = vpop.f32.mrf.mxu1 }
 0x17c   : > { %v1864_v55 = vadd.f32 %v1863_v47, %v1815_v41  ;;  %v1769_v49 = vadd.f32 %v1768_v48, %v3443_v38 }
 0x17e   : > { %v1913_v53 = vadd.f32 %v1912_v52, %v1864_v55 }
 0x180   : > { %v2687_v56 = vpack.c.bf16 %v1913_v53, %v1911_v50  ;;  %v1976_v3 = vadd.f32 %v1975_v42, %v1913_v53  ;;  %v1998_v58 = vmul.f32 %v1913_v53, %v1913_v53 }
 0x181   : > { %v1817_v16 = vpop.f32.mrf.mxu2 }
 0x182   : > { %2715 = vst [vmem:[%s3502_s14 + $0x10] sm:$0xff] %v2687_v56   ;;  %v2013_v59 = vadd.f32 %v2012_v17, %v1998_v58  ;;  %v1818_v25 = vadd.f32 %v1817_v16, %v1769_v49  ;;  %v1915_v1 = vpop.f32.mrf.mxu0 }
 0x183   : > { %v1866_v9 = vpop.f32.mrf.mxu3  ;;  %v1770_v62 = vpop.f32.mrf.mxu1 }
 0x184   : > { %v1867_v15 = vadd.f32 %v1866_v9, %v1818_v25  ;;  %v1771_v44 = vadd.f32 %v1770_v62, %v3452_v54 }
 0x186   : > { %v1916_v28 = vadd.f32 %v1915_v1, %v1867_v15 }
 0x188   : > { %v1977_v2 = vadd.f32 %v1976_v3, %v1916_v28  ;;  %v1999_v5 = vmul.f32 %v1916_v28, %v1916_v28 }
 0x189   : > { %v1819_v7 = vpop.f32.mrf.mxu2 }
 0x18a   : > { %v2014_v20 = vadd.f32 %v2013_v59, %v1999_v5  ;;  %v1820_v34 = vadd.f32 %v1819_v7, %v1771_v44  ;;  %v1917_v4 = vpop.f32.mrf.mxu0 }
 0x18b   : > { %v1868_v27 = vpop.f32.mrf.mxu3  ;;  %v1773_v63 = vpop.f32.mrf.mxu1 }
 0x18c   : > { %v1869_v38 = vadd.f32 %v1868_v27, %v1820_v34  ;;  %v1774_v33 = vadd.f32 %v1773_v63, %v3456_v40 }
 0x18e   : > { %v1918_v10 = vadd.f32 %v1917_v4, %v1869_v38 }
 0x190   : > { %v2692_v37 = vpack.c.bf16 %v1918_v10, %v1916_v28  ;;  %v1978_v23 = vadd.f32 %v1977_v2, %v1918_v10  ;;  %v2000_v22 = vmul.f32 %v1918_v10, %v1918_v10 }
 0x191   : > { %v1822_v12 = vpop.f32.mrf.mxu2 }
 0x192   : > { %2716 = vst [vmem:[%s3502_s14 + $0x18] sm:$0xff] %v2692_v37   ;;  %v2015_v30 = vadd.f32 %v2014_v20, %v2000_v22  ;;  %v1823_v45 = vadd.f32 %v1822_v12, %v1774_v33  ;;  %v1920_v29 = vpop.f32.mrf.mxu0 }
 0x193   : > { %v1871_v24 = vpop.f32.mrf.mxu3  ;;  %v1775_v26 = vpop.f32.mrf.mxu1 }
 0x194   : > { %v1872_v54 = vadd.f32 %v1871_v24, %v1823_v45  ;;  %v1776_v39 = vadd.f32 %v1775_v26, %v3462_v13 }
 0x196   : > { %v1921_v31 = vadd.f32 %v1920_v29, %v1872_v54 }
 0x198   : > { %v1979_v32 = vadd.f32 %v1978_v23, %v1921_v31  ;;  %v2001_v35 = vmul.f32 %v1921_v31, %v1921_v31 }
 0x199   : > { %v1824_v8 = vpop.f32.mrf.mxu2 }
 0x19a   : > { %v2016_v19 = vadd.f32 %v2015_v30, %v2001_v35  ;;  %v1825_v36 = vadd.f32 %v1824_v8, %v1776_v39  ;;  %v1922_v21 = vpop.f32.mrf.mxu0 }
 0x19b   : > { %v1873_v61 = vpop.f32.mrf.mxu3  ;;  %v1778_v0 = vpop.f32.mrf.mxu1 }
 0x19c   : > { %v1874_v40 = vadd.f32 %v1873_v61, %v1825_v36  ;;  %v1779_v51 = vadd.f32 %v1778_v0, %v3466_v43 }
 0x19e   : > { %v1923_v50 = vadd.f32 %v1922_v21, %v1874_v40 }
 0x1a0   : > { %v2697_v42 = vpack.c.bf16 %v1923_v50, %v1921_v31  ;;  %v1980_v6 = vadd.f32 %v1979_v32, %v1923_v50  ;;  %v2002_v60 = vmul.f32 %v1923_v50, %v1923_v50 }
 0x1a1   : > { %v1827_v17 = vpop.f32.mrf.mxu2 }
 0x1a2   : > { %2717 = vst [vmem:[%s3502_s14 + $0x20] sm:$0xff] %v2697_v42   ;;  %v2017_v41 = vadd.f32 %v2016_v19, %v2002_v60  ;;  %v1828_v47 = vadd.f32 %v1827_v17, %v1779_v51  ;;  %v1925_v52 = vpop.f32.mrf.mxu0 }
 0x1a3   : > { %v1876_v48 = vpop.f32.mrf.mxu3  ;;  %v1780_v55 = vpop.f32.mrf.mxu1 }
 0x1a4   : > { %v1877_v13 = vadd.f32 %v1876_v48, %v1828_v47  ;;  %v1781_v58 = vadd.f32 %v1780_v55, %v3474_v46 }
 0x1a6   : > { %v1926_v53 = vadd.f32 %v1925_v52, %v1877_v13 }
 0x1a8   : > { %v1981_v56 = vadd.f32 %v1980_v6, %v1926_v53  ;;  %v2003_v3 = vmul.f32 %v1926_v53, %v1926_v53 }
 0x1a9   : > { %v1829_v49 = vpop.f32.mrf.mxu2 }
 0x1aa   : > { %v2018_v16 = vadd.f32 %v2017_v41, %v2003_v3  ;;  %v1830_v59 = vadd.f32 %v1829_v49, %v1781_v58  ;;  %v1927_v62 = vpop.f32.mrf.mxu0 }
 0x1ab   : > { %v1878_v25 = vpop.f32.mrf.mxu3  ;;  %v1783_v9 = vpop.f32.mrf.mxu1 }
 0x1ac   : > { %v1879_v43 = vadd.f32 %v1878_v25, %v1830_v59  ;;  %v1784_v5 = vadd.f32 %v1783_v9, %v3483_v14 }
 0x1ae   : > { %v1928_v15 = vadd.f32 %v1927_v62, %v1879_v43 }
 0x1b0   : > { %v2702_v1 = vpack.c.bf16 %v1928_v15, %v1926_v53  ;;  %v1982_v28 = vadd.f32 %v1981_v56, %v1928_v15  ;;  %v2004_v2 = vmul.f32 %v1928_v15, %v1928_v15 }
 0x1b1   : > { %v1832_v44 = vpop.f32.mrf.mxu2 }
 0x1b2   : > { %2718 = vst [vmem:[%s3502_s14 + $0x28] sm:$0xff] %v2702_v1   ;;  %v2019_v7 = vadd.f32 %v2018_v16, %v2004_v2  ;;  %v1833_v20 = vadd.f32 %v1832_v44, %v1784_v5  ;;  %v1930_v63 = vpop.f32.mrf.mxu0 }
 0x1b3   : > { %v1881_v34 = vpop.f32.mrf.mxu3  ;;  %v1785_v27 = vpop.f32.mrf.mxu1 }
 0x1b4   : > { %v1882_v46 = vadd.f32 %v1881_v34, %v1833_v20  ;;  %v1786_v37 = vadd.f32 %v1785_v27, %v3487_v11 }
 0x1b6   : > { %v1931_v38 = vadd.f32 %v1930_v63, %v1882_v46 }
 0x1b8   : > { %v1983_v4 = vadd.f32 %v1982_v28, %v1931_v38  ;;  %v2005_v10 = vmul.f32 %v1931_v38, %v1931_v38 }
 0x1b9   : > { %v1834_v23 = vpop.f32.mrf.mxu2 }
 0x1ba   : > { %v2020_v22 = vadd.f32 %v2019_v7, %v2005_v10  ;;  %v1835_v33 = vadd.f32 %v1834_v23, %v1786_v37  ;;  %v1932_v45 = vpop.f32.mrf.mxu0 }
 0x1bb   : > { %v1883_v12 = vpop.f32.mrf.mxu3  ;;  %v1788_v30 = vpop.f32.mrf.mxu1 }
 0x1bc   : > { %v1884_v14 = vadd.f32 %v1883_v12, %v1835_v33  ;;  %v1789_v31 = vadd.f32 %v1788_v30, %v3491_v18 }
 0x1be   : > { %v1933_v24 = vadd.f32 %v1932_v45, %v1884_v14 }
 0x1c0   : > { %v2707_v26 = vpack.c.bf16 %v1933_v24, %v1931_v38  ;;  %v1984_v54 = vadd.f32 %v1983_v4, %v1933_v24  ;;  %v2006_v29 = vmul.f32 %v1933_v24, %v1933_v24 }
 0x1c1   : > { %v1837_v32 = vpop.f32.mrf.mxu2 }
 0x1c2   : > { %2719 = vst [vmem:[%s3502_s14 + $0x30] sm:$0xff] %v2707_v26   ;;  %v2021_v35 = vadd.f32 %v2020_v22, %v2006_v29  ;;  %v1838_v39 = vadd.f32 %v1837_v32, %v1789_v31  ;;  %v1935_v11 = vpop.f32.mrf.mxu0 }
 0x1c3   : > { %v1886_v8 = vpop.f32.mrf.mxu3  ;;  %v1790_v36 = vpop.f32.mrf.mxu1 }
 0x1c4   : > { %v1887_v19 = vadd.f32 %v1886_v8, %v1838_v39  ;;  %v1791_v21 = vadd.f32 %v1790_v36, %v3493_v57 }
 0x1c6   : > { %v1936_v61 = vadd.f32 %v1935_v11, %v1887_v19 }
 0x1c8   : > { %v1985_v0 = vadd.f32 %v1984_v54, %v1936_v61  ;;  %v2007_v40 = vmul.f32 %v1936_v61, %v1936_v61 }
 0x1c9   : > { %v1839_v50 = vpop.f32.mrf.mxu2 }
 0x1ca   : > { %v2022_v42 = vadd.f32 %v2021_v35, %v2007_v40  ;;  %v1840_v18 = vadd.f32 %v1839_v50, %v1791_v21  ;;  %v1937_v51 = vpop.f32.mrf.mxu0 }
 0x1cb   : > { %v1888_v6 = vpop.f32.mrf.mxu3 }
 0x1cc   : > { %v1889_v60 = vadd.f32 %v1888_v6, %v1840_v18 }
 0x1ce   : > { %v1938_v17 = vadd.f32 %v1937_v51, %v1889_v60 }
 0x1d0   : > { %v2712_v41 = vpack.c.bf16 %v1938_v17, %v1936_v61  ;;  %v1986_v47 = vadd.f32 %v1985_v0, %v1938_v17  ;;  %v2008_v48 = vmul.f32 %v1938_v17, %v1938_v17 }
 0x1d2   : > { %2720 = vst [vmem:[%s3502_s14 + $0x38] sm:$0xff] %v2712_v41   ;;  %v1987_v55 = vrot.slane %v1986_v47, 4  ;;  %v2023_v13 = vadd.f32 %v2022_v42, %v2008_v48 }
 0x1d4   : > { %v1988_v52 = vadd.f32 %v1987_v55, %v1986_v47  ;;  %v2024_v53 = vrot.slane %v2023_v13, 4 }
 0x1d6   : > { %v1989_v57 = vrot.slane %v1988_v52, 2  ;;  %v2025_v56 = vadd.f32 %v2024_v53, %v2023_v13 }
 0x1d8   : > { %v1990_v3 = vadd.f32 %v1989_v57, %v1988_v52  ;;  %v2026_v58 = vrot.slane %v2025_v56, 2 }
 0x1da   : > { %v1991_v49 = vrot.slane %v1990_v3, 1  ;;  %v2027_v16 = vadd.f32 %v2026_v58, %v2025_v56 }
 0x1dc   : > { %v2028_v59 = vrot.slane %v2027_v16, 1  ;;  %v1992_v25 = vadd.f32 %v1991_v49, %v1990_v3 }
 0x1de   : > { %v2029_v9 = vadd.f32 %v2028_v59, %v2027_v16 }
 0x1e0   : > { %v2031_v43 = vsel %vm704_vm0, %v1992_v25, %v2029_v9 }
 0x1e1   : > { %v2033_v62 = vsel %vm2032_vm5, %v2031_v43, 0.0 }
 0x1e2   : > { %2034 = vst [vmem:[%s494_s23] sm:$0xff] %v2033_v62 }
 0x1e3 PF: > { %s19_s4 = sadd.s32 1, %s2826_s4   ;;  %s3560_s27 = smov %s2818_s3 }
 0x1e4   : > { %p16_p1 = scmp.ge.s32.totalorder %s19_s4, 8   ;;  %s3561_s28 = smov %s2822_s29 }
 0x1e5   : > { %s3562_s3 = smov %s3565_s30  ;;  %s3563_s29 = smov %s3569_s9 }
 0x1e6   :  { %18 = sbr.rel (!%p16_p1) target bundleno = 3 (0x3), region = 96 }

// kernel: upsample_bn_forward.4
= control target key start
LH: loop header
LB: loop body
LE: loop exit
PB: predicated region body
PF: predicated region fallthrough
CT: control target
= control target key end

     0   :  { %s3024_s27 = smov 0   ;;  %s3026_s28 = smov 0   ;;  %s3798_s0 = inlined_call_operand.vmem [shape: bf16[2,24,16,128], index: 0, kind: input, shape index: {}, may-alias: {0,1,2}]   ;;  %s3799_s1 = inlined_call_operand.vmem [shape: bf16[2,24,16,128], index: 1, kind: input, shape index: {}, may-alias: {0,1,2}]   ;;  %s3800_s2 = inlined_call_operand.vmem [shape: bf16[2,24,16,128], index: 2, kind: input, shape index: {}, may-alias: {0,1,2}]   ;;  %s3801_s3 = inlined_call_operand.vmem [shape: f32[1,128], index: 3, kind: input, shape index: {}]   ;;  %s3802_s4 = inlined_call_operand.vmem [shape: f32[1,128], index: 4, kind: input, shape index: {}]   ;;  %s3803_s5 = inlined_call_operand.vmem [shape: bf16[1152,128], index: 5, kind: input, shape index: {}]   ;;  %s3804_s6 = inlined_call_operand.vmem [shape: f32[1,128], index: 6, kind: input, shape index: {}]   ;;  %s3805_s7 = inlined_call_operand.vmem [shape: bf16[2,24,16,128], index: 7, kind: output, shape index: {0}]   ;;  %s3806_s8 = inlined_call_operand.vmem [shape: f32[2,3,8,128], index: 8, kind: output, shape index: {1}]  }
   0x1   :  { %s3028_s29 = smov 0   ;;  %s3030_s30 = smov 0  }
   0x2   :  { %s3032_s9 = smov 0  }
   0x3 LB: > { %s28_s10 = sadd.s32 1, %s2969_s29  ;;  %s31_s11 = sadd.s32 1, %s2973_s30  ;;  %s2977_s9 = sphi %s3032_s9, %s19_s9   ;;  %s2973_s30 = sphi %s3030_s30, %s3813_s30   ;;  %s2969_s29 = sphi %s3028_s29, %s3812_s29   ;;  %s2965_s28 = sphi %s3026_s28, %s3811_s28   ;;  %s2961_s27 = sphi %s3024_s27, %s3810_s27  }
   0x4   : > { %p29_p0 = scmp.ge.s32.totalorder %s28_s10, 3  ;;  %p2381_p1 = scmp.ge.s32.totalorder %s2977_s9, 1 }
   0x5   : > { %p353_p2 = scmp.lt.s32.totalorder %s2977_s9, 7 }
   0x6   : > { %s3815_s10 = smov (%p29_p0, %s28_s10), 0  ;;  %s3817_s11 = smov (!%p29_p0, %s31_s11), %s2973_s30 }
   0x7   : > { %p354_p3 = pnand %p2381_p1, %p353_p2  ;;  %p33_p4 = scmp.ge.s32.totalorder %s3817_s11, 2 }
   0x8   : > { %s3060_s14 = sshll.u32 (!%p354_p3), %s2961_s27, 3  ;;  %p432_p5 = scmp.lt.s32.totalorder (!%p354_p3), %s2965_s28, 1 }
   0x9   : > { %s3819_s11 = smov (%p33_p4, %s3817_s11), 0  ;;  %357 = sbr.rel (%p354_p3) target bundleno = 493 (0x1ed), region = 48 }
   0xa   : > { %p434_p6 = scmp.lt.s32.totalorder (!%p354_p3), %s3060_s14, 23  ;;  %s3073_s19 = sadd.s32 (!%p354_p3), 4294967295, %s3060_s14 }
   0xb   : > { %p444_p7 = scmp.gt.s32.totalorder (!%p354_p3), %s3073_s19, 0  ;;  %p2387_p8 = scmp.lt.s32.totalorder (!%p354_p3), %s3073_s19, 23 }
   0xc   : > { %p664_p9 = scmp.ne.s32.totalorder (!%p354_p3), %s2961_s27, 0  ;;  %s2701_s13 = sadd.s32 (!%p354_p3), 8, %s3060_s14 }
   0xd   : > { %p688_p11 = scmp.ne.s32.totalorder (!%p354_p3), %s2961_s27, 2  ;;  %p3651_p12 = scmp.lt.s32.totalorder (!%p354_p3), %s2701_s13, 23 }
   0xe   : > { %v2709_v0 = vld [vmem:[%s3803_s5 + $0x38] sm:$0xff]  ;;  %v2708_v1 = vld [vmem:[%s3803_s5 + $0x30] sm:$0xff]  ;;  %s3821_s28 = smov (!%p432_p5, %s2965_s28), 1  ;;  %v2707_v2 = vld [vmem:[%s3803_s5 + $0x28] sm:$0xff]  ;;  %vm852_vm2 = vcmask 1040384   ;;  %p489_p0 = scmp.lt.s32.totalorder %s2961_s27, 2 }
   0xf   : > { %2868 = vmatpush.bf16.msra.mxu1 %v2709_v0  ;;  %2869 = vmatpush.bf16.msra.mxu2 %v2709_v0  ;;  %s435_s17 = scalar_select %p434_p6, %s3060_s14, 23  ;;  %v3095_v3 = vld [vmem:[%s3801_s3] ss:$0 sm:$0xff]  ;;  %v2705_v27 = vld [vmem:[%s3803_s5 + $0x18] sm:$0xff]  ;;  %vm853_vm3 = vsmask.f32 256 }
  0x10   : > { %2870 = vmatpush.bf16.msra.mxu3 %v2709_v0  ;;  %1647 = vmatpush.bf16.msra.mxu0 %v2709_v0  ;;  %s3070_s18 = smul.u32 48, %s3821_s28  ;;  %v2706_v7 = vld [vmem:[%s3803_s5 + $0x20] sm:$0xff]  ;;  %v2704_v40 = vld [vmem:[%s3803_s5 + $0x10] sm:$0xff]  ;;  %v2703_v56 = vld [vmem:[%s3803_s5 + $0x8] sm:$0xff]  ;;  %s3827_s13 = smov (!%p3651_p12, %s2701_s13), 23 }
  0x11   : > { %s2383_s20 = sshll.u32 %s435_s17, 1  ;;  %v3109_v10 = vld [vmem:[%s3802_s4] ss:$0 sm:$0xff]  ;;  %vm3195_vm10 = vmand %vm852_vm2, %vm853_vm3  ;;  %s3829_s13 = smov (!%p3651_p12, %s3827_s13), 23 }
  0x12   : > { %s3080_s23 = sadd.s32 %s3070_s18, %s2383_s20  ;;  %s3833_s27 = smov (!%p489_p0, %s2961_s27), 2 }
  0x13   : > { %2871 = vmatpush.bf16.msra.mxu1 %v2708_v1  ;;  %2872 = vmatpush.bf16.msra.mxu2 %v2708_v1  ;;  %s2384_s24 = sshll.u32 %s3080_s23, 2  ;;  %s2893_s23 = smul.u32 3, %s3821_s28 }
  0x14   : > { %2873 = vmatpush.bf16.msra.mxu3 %v2708_v1  ;;  %1648 = vmatpush.bf16.msra.mxu0 %v2708_v1  ;;  %s3090_s12 = scalar_lea.vmem %s3798_s0, %s2384_s24 }
  0x15   : > { %v2854_v4 = vld [vmem:[%s3090_s12 + $0x8] sm:$0xff]   ;;  %v2856_v5 = vld [vmem:[%s3090_s12 + $0x18] sm:$0xff]   ;;  %s445_s16 = scalar_select %p444_p7, %s3073_s19, 0  ;;  %v2855_v13 = vld [vmem:[%s3090_s12 + $0x10] sm:$0xff]  }
  0x16   : > { %v2858_v6 = vld [vmem:[%s3090_s12 + $0x28] sm:$0xff]   ;;  %v2780_v8 = vunpack.c.l.bf16 %v2854_v4  ;;  %v2781_v9 = vunpack.c.h.bf16 %v2854_v4  ;;  %v2788_v11 = vunpack.c.l.bf16 %v2856_v5  ;;  %v2789_v12 = vunpack.c.h.bf16 %v2856_v5  ;;  %s665_s25 = scalar_select %p664_p9, 1, 0  ;;  %v3117_v18 = vld [vmem:[%s3090_s12 + $0x20] sm:$0xff]  }
  0x17   : > { %2874 = vmatpush.bf16.msra.mxu1 %v2707_v2  ;;  %2875 = vmatpush.bf16.msra.mxu2 %v2707_v2  ;;  %v2796_v14 = vunpack.c.l.bf16 %v2858_v6  ;;  %v2797_v15 = vunpack.c.h.bf16 %v2858_v6  ;;  %s3823_s16 = smov (!%p2387_p8, %s445_s16), 23  ;;  %v2784_v16 = vunpack.c.l.bf16 %v2855_v13  ;;  %v2785_v17 = vunpack.c.h.bf16 %v2855_v13 }
  0x18   : > { %2876 = vmatpush.bf16.msra.mxu3 %v2707_v2  ;;  %1649 = vmatpush.bf16.msra.mxu0 %v2707_v2  ;;  %v539_v19 = vmul.f32 %v3095_v3, %v2780_v8  ;;  %v540_v20 = vmul.f32 %v3095_v3, %v2781_v9  ;;  %v543_v21 = vmul.f32 %v3095_v3, %v2788_v11  ;;  %s3123_s26 = scvt.s32.f32 %s665_s25  ;;  %s2392_s19 = sshll.u32 %s3823_s16, 1  ;;  %v2792_v31 = vunpack.c.l.bf16 %v3117_v18  ;;  %v2702_v11 = vld [vmem:[%s3803_s5] sm:$0xff] }
  0x19   : > { %v544_v22 = vmul.f32 %v3095_v3, %v2789_v12  ;;  %v547_v23 = vmul.f32 %v3095_v3, %v2796_v14  ;;  %v548_v24 = vmul.f32 %v3095_v3, %v2797_v15  ;;  %v3128_v25 = vmul.f32 %v3095_v3, %v2784_v16  ;;  %s452_s16 = sadd.s32 %s3070_s18, %s2392_s19 }
  0x1a   : > { %v3131_v26 = vmul.f32 %v3095_v3, %v2785_v17  ;;  %v558_v28 = vadd.f32 %v3109_v10, %v539_v19  ;;  %v559_v29 = vadd.f32 %v3109_v10, %v540_v20  ;;  %v562_v30 = vadd.f32 %v3109_v10, %v543_v21  ;;  %s2393_s17 = sshll.u32 %s452_s16, 2  ;;  %s669_s20 = sshrl.u32 %s3123_s26, 16  ;;  %v2725_v19 = vld [vmem:[%s3803_s5 + $0xb8] sm:$0xff] }
  0x1b   : > { %2877 = vmatpush.bf16.msra.mxu1 %v2706_v7  ;;  %2878 = vmatpush.bf16.msra.mxu2 %v2706_v7  ;;  %v563_v32 = vadd.f32 %v3109_v10, %v544_v22  ;;  %v566_v33 = vadd.f32 %v3109_v10, %v547_v23  ;;  %v567_v34 = vadd.f32 %v3109_v10, %v548_v24  ;;  %v2793_v35 = vunpack.c.h.bf16 %v3117_v18  ;;  %s454_s25 = scalar_lea.vmem %s3799_s1, %s2393_s17  ;;  %p668_p10 = scmp.ne.f32.partialorder %s3123_s26, %s3123_s26  ;;  %v2717_v20 = vld [vmem:[%s3803_s5 + $0x78] sm:$0xff]  ;;  %v2715_v18 = vld [vmem:[%s3803_s5 + $0x68] sm:$0xff] }
  0x1c   : > { %2879 = vmatpush.bf16.msra.mxu3 %v2706_v7  ;;  %1650 = vmatpush.bf16.msra.mxu0 %v2706_v7  ;;  %vm574_vm0 = vcmp.gt.f32.partialorder %v558_v28, 0.0  ;;  %vm575_vm1 = vcmp.gt.f32.partialorder %v559_v29, 0.0  ;;  %v590_v36 = vmul.f32 0.01, %v558_v28  ;;  %v591_v37 = vmul.f32 0.01, %v559_v29 }
  0x1d   : > { %vm578_vm4 = vcmp.gt.f32.partialorder %v562_v30, 0.0  ;;  %vm579_vm5 = vcmp.gt.f32.partialorder %v563_v32, 0.0  ;;  %v594_v38 = vmul.f32 0.01, %v562_v30  ;;  %v595_v39 = vmul.f32 0.01, %v563_v32 }
  0x1e   : > { %v606_v41 = vsel %vm574_vm0, %v558_v28, %v590_v36  ;;  %v607_v42 = vsel %vm575_vm1, %v559_v29, %v591_v37  ;;  %vm582_vm6 = vcmp.gt.f32.partialorder %v566_v33, 0.0  ;;  %vm583_vm7 = vcmp.gt.f32.partialorder %v567_v34, 0.0  ;;  %v2807_v43 = vld [vmem:[%s454_s25] sm:$0xff]   ;;  %s670_s15 = sand.u32 1, %s669_s20  ;;  %v2733_v21 = vld [vmem:[%s3803_s5 + $0xf8] sm:$0xff] }
  0x1f   : > { %2880 = vmatpush.bf16.msra.mxu1 %v2705_v27  ;;  %2881 = vmatpush.bf16.msra.mxu2 %v2705_v27  ;;  %v622_v44 = vpack.c.bf16 %v606_v41, %v606_v41  ;;  %v623_v45 = vpack.c.bf16 %v607_v42, %v607_v42  ;;  %v610_v46 = vsel %vm578_vm4, %v562_v30, %v594_v38  ;;  %v598_v47 = vmul.f32 0.01, %v566_v33  ;;  %s671_s16 = sadd.s32 32767, %s670_s15  ;;  %v2716_v41 = vld [vmem:[%s3803_s5 + $0x70] sm:$0xff] }
  0x20   : > { %2882 = vmatpush.bf16.msra.mxu3 %v2705_v27  ;;  %1651 = vmatpush.bf16.msra.mxu0 %v2705_v27  ;;  %v611_v48 = vsel %vm579_vm5, %v563_v32, %v595_v39  ;;  %v626_v49 = vpack.c.bf16 %v610_v46, %v610_v46  ;;  %v599_v50 = vmul.f32 0.01, %v567_v34  ;;  %v2808_v51 = vunpack.c.l.bf16 %v2807_v43  ;;  %s672_s17 = sadd.s32 %s671_s16, %s3123_s26  ;;  %v2724_v39 = vld [vmem:[%s3803_s5 + $0xb0] sm:$0xff] }
  0x21   : > { %v736_v52 = vunpack.c.l.b16 %v622_v44  ;;  %v737_v53 = vunpack.c.l.b16 %v623_v45  ;;  %v627_v54 = vpack.c.bf16 %v611_v48, %v611_v48  ;;  %v614_v55 = vsel %vm582_vm6, %v566_v33, %v598_v47  ;;  %s673_s20 = sand.u32 4294901760, %s672_s17  ;;  %v2741_v33 = vld [vmem:[%s3803_s5 + $0x138] sm:$0xff]  ;;  %v2732_v48 = vld [vmem:[%s3803_s5 + $0xf0] sm:$0xff] }
  0x22   : > { %v740_v57 = vunpack.c.l.b16 %v626_v49  ;;  %v615_v58 = vsel %vm583_vm7, %v567_v34, %v599_v50  ;;  %v630_v59 = vpack.c.bf16 %v614_v55, %v614_v55  ;;  %v2809_v60 = vunpack.c.h.bf16 %v2807_v43  ;;  %s3825_s20 = smov (%p668_p10, %s673_s20), 2143289344 }
  0x23   : > { %2883 = vmatpush.bf16.msra.mxu1 %v2704_v40  ;;  %2884 = vmatpush.bf16.msra.mxu2 %v2704_v40  ;;  %v754_v61 = vpack.c.b16 %v737_v53, %v736_v52  ;;  %v741_v62 = vunpack.c.l.b16 %v627_v54  ;;  %v631_v63 = vpack.c.bf16 %v615_v58, %v615_v58  ;;  %v638_v0 = vmul.f32 %v3095_v3, %v2808_v51  ;;  %s676_s25 = sshrl.u32 %s3825_s20, 16  ;;  %v2859_v51 = vld [vmem:[%s3090_s12 + $0x30] sm:$0xff]   ;;  %s2398_s20 = sshll.u32 %s3829_s13, 1 }
  0x24   : > { %2885 = vmatpush.bf16.msra.mxu3 %v2704_v40  ;;  %1652 = vmatpush.bf16.msra.mxu0 %v2704_v40  ;;  %v744_v1 = vunpack.c.l.b16 %v630_v59  ;;  %v639_v2 = vmul.f32 %v3095_v3, %v2809_v60  ;;  %v560_v4 = vadd.f32 %v3109_v10, %v3128_v25  ;;  %v3174_v5 = vadd.f32 %v3109_v10, %v3131_v26  ;;  %s677_s26 = sshll.u32 %s676_s25, 16  ;;  %v2740_v53 = vld [vmem:[%s3803_s5 + $0x130] sm:$0xff]  ;;  %v2723_v60 = vld [vmem:[%s3803_s5 + $0xa8] sm:$0xff]  ;;  %s469_s22 = sadd.s32 %s3070_s18, %s2398_s20 }
  0x25   : > { %v777_v6 = vshrl.u32 %v754_v61, 16  ;;  %v780_v7 = vshll.u32 %v754_v61, 16  ;;  %v756_v8 = vpack.c.b16 %v741_v62, %v740_v57  ;;  %v745_v9 = vunpack.c.l.b16 %v631_v63  ;;  %s678_s19 = sor.u32 %s677_s26, %s676_s25  ;;  %v2775_v57 = vld [vmem:[%s3090_s12] sm:$0xff]   ;;  %s3753_s26 = scalar_lea.vmem %s3805_s7, %s2384_s24 }
  0x26   : > { %v640_v12 = vadd.f32 %v3109_v10, %v638_v0  ;;  %v641_v13 = vadd.f32 %v3109_v10, %v639_v2  ;;  %vm576_vm8 = vcmp.gt.f32.partialorder %v560_v4, 0.0  ;;  %vm577_vm9 = vcmp.gt.f32.partialorder %v3174_v5, 0.0  ;;  %v2731_v2 = vld [vmem:[%s3803_s5 + $0xe8] sm:$0xff]  ;;  %s689_s14 = scalar_select %p688_p11, 1, 0 }
  0x27   : > { %2886 = vmatpush.bf16.msra.mxu1 %v2703_v56  ;;  %2887 = vmatpush.bf16.msra.mxu2 %v2703_v56  ;;  %v3182_v14 = vrot.slane %v777_v6, 7  ;;  %v791_v15 = vshrl.u32 %v756_v8, 16  ;;  %v794_v16 = vshll.u32 %v756_v8, 16  ;;  %v758_v17 = vpack.c.b16 %v745_v9, %v744_v1  ;;  %v2739_v9 = vld [vmem:[%s3803_s5 + $0x128] sm:$0xff]  ;;  %s492_s24 = sadd.s32 %s2893_s23, %s3833_s27 }
  0x28   : > { %2888 = vmatpush.bf16.msra.mxu3 %v2703_v56  ;;  %1653 = vmatpush.bf16.msra.mxu0 %v2703_v56  ;;  %vm642_vm11 = vcmp.gt.f32.partialorder %v640_v12, 0.0  ;;  %vm643_vm12 = vcmp.gt.f32.partialorder %v641_v13, 0.0  ;;  %v644_v23 = vmul.f32 0.01, %v640_v12  ;;  %v645_v24 = vmul.f32 0.01, %v641_v13  ;;  %s3663_s16 = scvt.s32.f32 %s689_s14 }
  0x29   : > { %v782_v25 = vor.u32 %v780_v7, %v3182_v14  ;;  %v3200_v26 = vrot.slane %v791_v15, 7  ;;  %v805_v27 = vshrl.u32 %v758_v17, 16  ;;  %v808_v28 = vshll.u32 %v758_v17, 16  ;;  %s2403_s13 = sshll.u32 %s492_s24, 3 }
  0x2a   : > { %v646_v29 = vsel %vm642_vm11, %v640_v12, %v644_v23  ;;  %v647_v30 = vsel %vm643_vm12, %v641_v13, %v645_v24  ;;  %v679_v32 = vstv %s678_s19  ;;  %v592_v34 = vmul.f32 0.01, %v560_v4  ;;  %v2722_v12 = vld [vmem:[%s3803_s5 + $0xa0] sm:$0xff]  ;;  %s693_s17 = sshrl.u32 %s3663_s16, 16  ;;  %p692_p13 = scmp.ne.f32.partialorder %s3663_s16, %s3663_s16 }
  0x2b   : > { %2889 = vmatpush.bf16.msra.mxu1 %v2702_v11  ;;  %2890 = vmatpush.bf16.msra.mxu2 %v2702_v11  ;;  %v3207_v36 = vsel %vm3195_vm10, 0, %v782_v25  ;;  %v796_v37 = vor.u32 %v794_v16, %v3200_v26  ;;  %v3210_v38 = vrot.slane %v805_v27, 7  ;;  %v648_v40 = vpack.c.bf16 %v646_v29, %v646_v29  ;;  %v2730_v24 = vld [vmem:[%s3803_s5 + $0xe0] sm:$0xff]  ;;  %s694_s21 = sand.u32 1, %s693_s17  ;;  %s494_s14 = scalar_lea.vmem %s3806_s8, %s2403_s13 }
  0x2c   : > { %2891 = vmatpush.bf16.msra.mxu3 %v2702_v11  ;;  %v649_v42 = vpack.c.bf16 %v647_v30, %v647_v30  ;;  %v683_v43 = vunpack.c.l.bf16 %v679_v32  ;;  %v593_v44 = vmul.f32 0.01, %v3174_v5  ;;  %v608_v45 = vsel %vm576_vm8, %v560_v4, %v592_v34  ;;  %1654 = vmatpush.bf16.msra.mxu0 %v2702_v11  ;;  %s695_s19 = sadd.s32 32767, %s694_s21 }
  0x2d   : > { %v3223_v46 = vsel %vm3195_vm10, 0, %v796_v37  ;;  %v810_v47 = vor.u32 %v808_v28, %v3210_v38  ;;  %v681_v49 = vunpack.c.l.bf16 %v648_v40  ;;  %v624_v50 = vpack.c.bf16 %v608_v45, %v608_v45  ;;  %v2738_v37 = vld [vmem:[%s3803_s5 + $0x120] sm:$0xff]  ;;  %s696_s25 = sadd.s32 %s695_s19, %s3663_s16 }
  0x2e   : > { %1665 = vmatmul.bf16.vlgmr.msra.gmra.mxu1 %v3207_v36  ;;  %1675 = vmatmul.bf16.vlgmr.msra.gmra.mxu2 %v3223_v46  ;;  %v682_v52 = vunpack.c.l.bf16 %v649_v42  ;;  %v609_v54 = vsel %vm577_vm9, %v3174_v5, %v593_v44  ;;  %v545_v55 = vmul.f32 %v3095_v3, %v2792_v31  ;;  %v546_v56 = vmul.f32 %v3095_v3, %v2793_v35  ;;  %s697_s15 = sand.u32 4294901760, %s696_s25 }
  0x2f   : > { %1745 = vmatpush.bf16.msrb.mxu2 %v2725_v19  ;;  %1696 = vmatpush.bf16.msrb.mxu1 %v2717_v20  ;;  %v3246_v58 = vsel %vm3195_vm10, 0, %v810_v47  ;;  %v684_v59 = vmul.f32 %v683_v43, %v681_v49  ;;  %v625_v61 = vpack.c.bf16 %v609_v54, %v609_v54  ;;  %v738_v62 = vunpack.c.l.b16 %v624_v50  ;;  %v2714_v19 = vld [vmem:[%s3803_s5 + $0x60] sm:$0xff]  ;;  %s3831_s15 = smov (%p692_p13, %s697_s15), 2143289344 }
  0x30   : > { %1794 = vmatpush.bf16.msrb.mxu3 %v2733_v21  ;;  %1843 = vmatpush.bf16.msrb.mxu0 %v2741_v33  ;;  %v685_v31 = vmul.f32 %v683_v43, %v682_v52  ;;  %v564_v35 = vadd.f32 %v3109_v10, %v545_v55  ;;  %v565_v63 = vadd.f32 %v3109_v10, %v546_v56  ;;  %v2800_v0 = vunpack.c.l.bf16 %v2859_v51  ;;  %v2729_v52 = vld [vmem:[%s3803_s5 + $0xd8] sm:$0xff]  ;;  %s700_s21 = sshrl.u32 %s3831_s15, 16 }
  0x31   : > { %1685 = vmatmul.bf16.vlgmr.msra.gmra.mxu3 %v3246_v58  ;;  %v686_v1 = vpack.c.bf16 %v684_v59, %v684_v59  ;;  %v739_v4 = vunpack.c.l.b16 %v625_v61  ;;  %v2801_v5 = vunpack.c.h.bf16 %v2859_v51  ;;  %v2776_v6 = vunpack.c.l.bf16 %v2775_v57 }
  0x32   : > { %v687_v7 = vpack.c.bf16 %v685_v31, %v685_v31  ;;  %vm580_vm13 = vcmp.gt.f32.partialorder %v564_v35, 0.0  ;;  %vm581_vm14 = vcmp.gt.f32.partialorder %v565_v63, 0.0  ;;  %v596_v8 = vmul.f32 0.01, %v564_v35 }
  0x33   : > { %1746 = vmatpush.bf16.msrb.mxu2 %v2724_v39  ;;  %1697 = vmatpush.bf16.msrb.mxu1 %v2716_v41  ;;  %v732_v11 = vunpack.c.l.b16 %v686_v1  ;;  %v755_v13 = vpack.c.b16 %v739_v4, %v738_v62  ;;  %v597_v15 = vmul.f32 0.01, %v565_v63  ;;  %v549_v16 = vmul.f32 %v3095_v3, %v2800_v0  ;;  %v2721_v41 = vld [vmem:[%s3803_s5 + $0x98] sm:$0xff]  ;;  %v2720_v62 = vld [vmem:[%s3803_s5 + $0x90] sm:$0xff] }
  0x34   : > { %1795 = vmatpush.bf16.msrb.mxu3 %v2732_v48  ;;  %1844 = vmatpush.bf16.msrb.mxu0 %v2740_v53  ;;  %v733_v17 = vunpack.c.l.b16 %v687_v7  ;;  %v612_v20 = vsel %vm580_vm13, %v564_v35, %v596_v8  ;;  %v550_v21 = vmul.f32 %v3095_v3, %v2801_v5  ;;  %v2777_v23 = vunpack.c.h.bf16 %v2775_v57  ;;  %v2713_v48 = vld [vmem:[%s3803_s5 + $0x58] sm:$0xff]  ;;  %v2712_v0 = vld [vmem:[%s3803_s5 + $0x50] sm:$0xff] }
  0x35   : > { %v784_v25 = vshrl.u32 %v755_v13, 16  ;;  %v787_v27 = vshll.u32 %v755_v13, 16  ;;  %v613_v28 = vsel %vm581_vm14, %v565_v63, %v597_v15  ;;  %v628_v29 = vpack.c.bf16 %v612_v20, %v612_v20  ;;  %v2737_v57 = vld [vmem:[%s3803_s5 + $0x118] sm:$0xff]  ;;  %v2711_v20 = vld [vmem:[%s3803_s5 + $0x48] sm:$0xff] }
  0x36   : > { %v752_v30 = vpack.c.b16 %v733_v17, %v732_v11  ;;  %v629_v32 = vpack.c.bf16 %v613_v28, %v613_v28  ;;  %v568_v33 = vadd.f32 %v3109_v10, %v549_v16  ;;  %v569_v34 = vadd.f32 %v3109_v10, %v550_v21 }
  0x37   : > { %1747 = vmatpush.bf16.msrb.mxu2 %v2723_v60  ;;  %1698 = vmatpush.bf16.msrb.mxu1 %v2715_v18  ;;  %v3280_v39 = vrot.slane %v784_v25, 7  ;;  %v742_v40 = vunpack.c.l.b16 %v628_v29  ;;  %v537_v42 = vmul.f32 %v3095_v3, %v2776_v6  ;;  %v538_v43 = vmul.f32 %v3095_v3, %v2777_v23 }
  0x38   : > { %1796 = vmatpush.bf16.msrb.mxu3 %v2731_v2  ;;  %1845 = vmatpush.bf16.msrb.mxu0 %v2739_v9  ;;  %v763_v44 = vshrl.u32 %v752_v30, 16  ;;  %v766_v45 = vshll.u32 %v752_v30, 16  ;;  %v743_v47 = vunpack.c.l.b16 %v629_v32  ;;  %vm584_vm15 = vcmp.gt.f32.partialorder %v568_v33, 0.0  ;;  %v2728_v2 = vld [vmem:[%s3803_s5 + $0xd0] sm:$0xff] }
  0x39   : > { %v789_v49 = vor.u32 %v787_v27, %v3280_v39  ;;  %vm585_vm0 = vcmp.gt.f32.partialorder %v569_v34, 0.0  ;;  %v600_v50 = vmul.f32 0.01, %v568_v33  ;;  %v601_v51 = vmul.f32 0.01, %v569_v34  ;;  %v2736_v9 = vld [vmem:[%s3803_s5 + $0x110] sm:$0xff] }
  0x3a   : > { %v765_v53 = vrot.slane %v763_v44, 7  ;;  %v757_v54 = vpack.c.b16 %v743_v47, %v742_v40  ;;  %v556_v55 = vadd.f32 %v3109_v10, %v537_v42  ;;  %v557_v56 = vadd.f32 %v3109_v10, %v538_v43  ;;  %v2727_v27 = vld [vmem:[%s3803_s5 + $0xc8] sm:$0xff]  ;;  %v2710_v42 = vld [vmem:[%s3803_s5 + $0x40] sm:$0xff]  ;;  %v2757_v47 = vld [vmem:[%s3803_s5 + $0x1b8] sm:$0xff] }
  0x3b   : > { %1748 = vmatpush.bf16.msrb.mxu2 %v2722_v12  ;;  %1699 = vmatpush.bf16.msrb.mxu1 %v2714_v19  ;;  %v3301_v59 = vsel %vm3195_vm10, 0, %v789_v49  ;;  %v616_v60 = vsel %vm584_vm15, %v568_v33, %v600_v50  ;;  %v617_v61 = vsel %vm585_vm0, %v569_v34, %v601_v51  ;;  %v2719_v19 = vld [vmem:[%s3803_s5 + $0x88] sm:$0xff]  ;;  %v2734_v50 = vld [vmem:[%s3803_s5 + $0x100] sm:$0xff]  ;;  %vm875_vm4 = vsmask.f32 7424 }
  0x3c   : > { %1797 = vmatpush.bf16.msrb.mxu3 %v2730_v24  ;;  %1846 = vmatpush.bf16.msrb.mxu0 %v2738_v37  ;;  %v768_v31 = vor.u32 %v766_v45, %v765_v53  ;;  %v798_v18 = vshrl.u32 %v757_v54, 16  ;;  %v801_v35 = vshll.u32 %v757_v54, 16  ;;  %v632_v63 = vpack.c.bf16 %v616_v60, %v616_v60  ;;  %v2735_v33 = vld [vmem:[%s3803_s5 + $0x108] sm:$0xff]  ;;  %v2726_v45 = vld [vmem:[%s3803_s5 + $0xc0] sm:$0xff]  ;;  %v2765_v54 = vld [vmem:[%s3803_s5 + $0x1f8] sm:$0xff] }
  0x3d   : > { %v633_v1 = vpack.c.bf16 %v617_v61, %v617_v61  ;;  %vm572_vm1 = vcmp.gt.f32.partialorder %v556_v55, 0.0  ;;  %vm573_vm3 = vcmp.gt.f32.partialorder %v557_v56, 0.0  ;;  %v588_v4 = vmul.f32 0.01, %v556_v55 }
  0x3e   : > { %1670 = vmatmul.bf16.gmra.mxu1 %v3301_v59  ;;  %v3315_v5 = vsel %vm3195_vm10, 0, %v768_v31  ;;  %v3317_v6 = vrot.slane %v798_v18, 7  ;;  %v746_v7 = vunpack.c.l.b16 %v632_v63  ;;  %v589_v8 = vmul.f32 0.01, %v557_v56  ;;  %v2764_v18 = vld [vmem:[%s3803_s5 + $0x1f0] sm:$0xff] }
  0x3f   : > { %1749 = vmatpush.bf16.msrb.mxu2 %v2721_v41  ;;  %1700 = vmatpush.bf16.msrb.mxu1 %v2713_v48  ;;  %v879_v11 = vshll.u32 %v3315_v5, 16  ;;  %v747_v12 = vunpack.c.l.b16 %v633_v1  ;;  %v604_v13 = vsel %vm572_vm1, %v556_v55, %v588_v4  ;;  %v3333_v21 = vsel %vm3195_vm10, %v765_v53, 0  ;;  %v2718_v41 = vld [vmem:[%s3803_s5 + $0x80] sm:$0xff]  ;;  %v2749_v55 = vld [vmem:[%s3803_s5 + $0x178] sm:$0xff] }
  0x40   : > { %1798 = vmatpush.bf16.msrb.mxu3 %v2729_v52  ;;  %1847 = vmatpush.bf16.msrb.mxu0 %v2737_v57  ;;  %v803_v15 = vor.u32 %v801_v35, %v3317_v6  ;;  %v605_v16 = vsel %vm573_vm3, %v557_v56, %v589_v8  ;;  %v620_v17 = vpack.c.bf16 %v604_v13, %v604_v13  ;;  %v877_v23 = vshrl.u32 %v3315_v5, 16  ;;  %v2773_v56 = vld [vmem:[%s3803_s5 + $0x238] sm:$0xff] }
  0x41   : > { %1655 = vmatmul.bf16.vlgmr.msra.gmra.mxu0 %v3315_v5  ;;  %v759_v24 = vpack.c.b16 %v747_v12, %v746_v7  ;;  %v621_v25 = vpack.c.bf16 %v605_v16, %v605_v16  ;;  %v881_v28 = vrot.slane %v879_v11, 1  ;;  %v884_v32 = vshll.u32 %v3333_v21, 16  ;;  %v2763_v16 = vld [vmem:[%s3803_s5 + $0x1e8] sm:$0xff] }
  0x42   : > { %v3341_v29 = vsel %vm3195_vm10, 0, %v803_v15  ;;  %v734_v30 = vunpack.c.l.b16 %v620_v17  ;;  %v997_v35 = vrot.slane %v3315_v5, 1  ;;  %v998_v63 = vrot.slane %v3333_v21, 1  ;;  %v2755_v15 = vld [vmem:[%s3803_s5 + $0x1a8] sm:$0xff] }
  0x43   : > { %1750 = vmatpush.bf16.msrb.mxu2 %v2720_v62  ;;  %1701 = vmatpush.bf16.msrb.mxu1 %v2712_v0  ;;  %v812_v34 = vshrl.u32 %v759_v24, 16  ;;  %v815_v37 = vshll.u32 %v759_v24, 16  ;;  %v735_v40 = vunpack.c.l.b16 %v621_v25  ;;  %v882_v48 = vor.u32 %v881_v28, %v877_v23  ;;  %v2756_v62 = vld [vmem:[%s3803_s5 + $0x1b0] sm:$0xff]  ;;  %v2747_v17 = vld [vmem:[%s3803_s5 + $0x168] sm:$0xff] }
  0x44   : > { %1799 = vmatpush.bf16.msrb.mxu3 %v2728_v2  ;;  %1848 = vmatpush.bf16.msrb.mxu0 %v2736_v9  ;;  %v886_v49 = vrot.slane %v884_v32, 1  ;;  %v2748_v0 = vld [vmem:[%s3803_s5 + $0x170] sm:$0xff]  ;;  %vm996_vm5 = vcmask 1046528   ;;  %v2771_v23 = vld [vmem:[%s3803_s5 + $0x228] sm:$0xff]  ;;  %v903_v25 = vshll.u32 %v3207_v36, 16  ;;  %v901_v28 = vshrl.u32 %v3207_v36, 16 }
  0x45   : > { %1680 = vmatmul.bf16.gmra.mxu2 %v3341_v29  ;;  %v3354_v43 = vrot.slane %v812_v34, 7  ;;  %v753_v44 = vpack.c.b16 %v735_v40, %v734_v30  ;;  %v2772_v2 = vld [vmem:[%s3803_s5 + $0x230] sm:$0xff]  ;;  %v999_v4 = vsel %vm996_vm5, %v997_v35, %v998_v63  ;;  %v2762_v40 = vld [vmem:[%s3803_s5 + $0x1e0] sm:$0xff]  ;;  %v927_v35 = vshll.u32 %v3223_v46, 16 }
  0x46   : > { %v887_v61 = vsel %vm875_vm4, %v882_v48, %v886_v49  ;;  %v905_v30 = vrot.slane %v903_v25, 1  ;;  %v915_v48 = vshll.u32 %v3301_v59, 16  ;;  %v868_v49 = vsel %vm3195_vm10, %v3280_v39, 0  ;;  %v2745_v39 = vld [vmem:[%s3803_s5 + $0x158] sm:$0xff] }
  0x47   : > { %1751 = vmatpush.bf16.msrb.mxu2 %v2719_v19  ;;  %1702 = vmatpush.bf16.msrb.mxu1 %v2711_v20  ;;  %v817_v51 = vor.u32 %v815_v37, %v3354_v43  ;;  %v770_v52 = vshrl.u32 %v753_v44, 16  ;;  %v773_v53 = vshll.u32 %v753_v44, 16  ;;  %v2754_v37 = vld [vmem:[%s3803_s5 + $0x1a0] sm:$0xff]  ;;  %v869_v63 = vsel %vm3195_vm10, %v3200_v26, 0  ;;  %v2744_v26 = vld [vmem:[%s3803_s5 + $0x150] sm:$0xff] }
  0x48   : > { %1800 = vmatpush.bf16.msrb.mxu3 %v2727_v27  ;;  %1849 = vmatpush.bf16.msrb.mxu0 %v2735_v33  ;;  %v867_v27 = vsel %vm3195_vm10, %v3182_v14, 0  ;;  %v906_v33 = vor.u32 %v905_v30, %v901_v28  ;;  %v2746_v14 = vld [vmem:[%s3803_s5 + $0x160] sm:$0xff] }
  0x49   : > { %v3377_v57 = vsel %vm3195_vm10, 0, %v817_v51  ;;  %v772_v60 = vrot.slane %v770_v52, 7  ;;  %v908_v32 = vshll.u32 %v867_v27, 16  ;;  %v1004_v44 = vrot.slane %v867_v27, 1 }
  0x4a   : > { %1690 = vmatmul.bf16.gmra.mxu3 %v3377_v57  ;;  %v917_v51 = vrot.slane %v915_v48, 1  ;;  %v920_v52 = vshll.u32 %v868_v49, 16 }
  0x4b   : > { %1752 = vmatpush.bf16.msrb.mxu2 %v2718_v41  ;;  %1703 = vmatpush.bf16.msrb.mxu1 %v2710_v42  ;;  %v775_v31 = vor.u32 %v773_v53, %v772_v60  ;;  %v866_v7 = vsel %vm3195_vm10, %v772_v60, 0  ;;  %v910_v34 = vrot.slane %v908_v32, 1  ;;  %v1003_v42 = vrot.slane %v3207_v36, 1 }
  0x4c   : > { %1801 = vmatpush.bf16.msrb.mxu3 %v2726_v45  ;;  %1850 = vmatpush.bf16.msrb.mxu0 %v2734_v50  ;;  %v896_v11 = vshll.u32 %v866_v7, 16  ;;  %v1001_v21 = vrot.slane %v866_v7, 1  ;;  %v2770_v45 = vld [vmem:[%s3803_s5 + $0x220] sm:$0xff]  ;;  %v913_v50 = vshrl.u32 %v3301_v59, 16  ;;  %v2752_v7 = vld [vmem:[%s3803_s5 + $0x190] sm:$0xff] }
  0x4d   : > { %v856_v1 = vsel %vm3195_vm10, 0, %v775_v31  ;;  %v3433_v41 = vsel %vm875_vm4, %v906_v33, %v910_v34  ;;  %v2769_v31 = vld [vmem:[%s3803_s5 + $0x218] sm:$0xff]  ;;  %v2759_v34 = vld [vmem:[%s3803_s5 + $0x1c8] sm:$0xff] }
  0x4e   : > { %1704 = vmatmul.bf16.vlgmr.msrb.gmra.mxu1 %v887_v61  ;;  %v891_v5 = vshll.u32 %v856_v1, 16  ;;  %v889_v8 = vshrl.u32 %v856_v1, 16  ;;  %v898_v13 = vrot.slane %v896_v11, 1  ;;  %v1000_v20 = vrot.slane %v856_v1, 1 }
  0x4f   : > { %1941 = vmatpush.bf16.msra.mxu2 %v2757_v47  ;;  %1892 = vmatpush.bf16.msra.mxu1 %v2749_v55  ;;  %v3442_v47 = vsel %vm996_vm5, %v1003_v42, %v1004_v44  ;;  %v918_v53 = vor.u32 %v917_v51, %v913_v50  ;;  %v2753_v55 = vld [vmem:[%s3803_s5 + $0x198] sm:$0xff]  ;;  %v1006_v61 = vrot.slane %v3301_v59, 1  ;;  %v1009_v11 = vrot.slane %v3223_v46, 1  ;;  %v2743_v44 = vld [vmem:[%s3803_s5 + $0x148] sm:$0xff] }
  0x50   : > { %1990 = vmatpush.bf16.msra.mxu3 %v2765_v54  ;;  %2039 = vmatpush.bf16.msra.mxu0 %v2773_v56  ;;  %v893_v9 = vrot.slane %v891_v5, 1  ;;  %v3414_v24 = vsel %vm996_vm5, %v1000_v20, %v1001_v21  ;;  %v922_v54 = vrot.slane %v920_v52, 1  ;;  %v2761_v56 = vld [vmem:[%s3803_s5 + $0x1d8] sm:$0xff]  ;;  %v951_v50 = vshll.u32 %v3246_v58, 16 }
  0x51   : > { %1660 = vmatmul.bf16.gmra.mxu0 %v856_v1  ;;  %v2860_v20 = vld [vmem:[%s3090_s12 + $0x38] sm:$0xff]   ;;  %v871_v51 = vsel %vm3195_vm10, %v3210_v38, 0  ;;  %v2750_v38 = vld [vmem:[%s3803_s5 + $0x180] sm:$0xff]  ;;  %s2399_s12 = sshll.u32 %s469_s22, 2  ;;  %s701_s22 = sshll.u32 %s700_s21, 16 }
  0x52   : > { %v894_v12 = vor.u32 %v893_v9, %v889_v8  ;;  %v3461_v60 = vsel %vm875_vm4, %v918_v53, %v922_v54  ;;  %v2760_v8 = vld [vmem:[%s3803_s5 + $0x1d0] sm:$0xff]  ;;  %v2804_v25 = vunpack.c.l.bf16 %v2860_v20  ;;  %v2805_v27 = vunpack.c.h.bf16 %v2860_v20  ;;  %s471_s18 = scalar_lea.vmem %s3800_s2, %s2399_s12  ;;  %s702_s19 = sor.u32 %s701_s22, %s700_s21 }
  0x53   : > { %1942 = vmatpush.bf16.msra.mxu2 %v2756_v62  ;;  %1893 = vmatpush.bf16.msra.mxu1 %v2748_v0  ;;  %v1007_v62 = vrot.slane %v868_v49, 1  ;;  %v925_v0 = vshrl.u32 %v3223_v46, 16  ;;  %v949_v54 = vshrl.u32 %v3246_v58, 16 }
  0x54   : > { %1991 = vmatpush.bf16.msra.mxu3 %v2764_v18  ;;  %2040 = vmatpush.bf16.msra.mxu0 %v2772_v2  ;;  %v899_v19 = vsel %vm875_vm4, %v894_v12, %v898_v13  ;;  %v932_v2 = vshll.u32 %v869_v63, 16  ;;  %v1010_v12 = vrot.slane %v869_v63, 1  ;;  %v2768_v13 = vld [vmem:[%s3803_s5 + $0x210] sm:$0xff]  ;;  %v551_v28 = vmul.f32 %v3095_v3, %v2804_v25 }
  0x55   : > { %1753 = vmatmul.bf16.vlgmr.msrb.gmra.mxu2 %v999_v4  ;;  %v3470_v18 = vsel %vm996_vm5, %v1006_v61, %v1007_v62  ;;  %v552_v30 = vmul.f32 %v3095_v3, %v2805_v27  ;;  %v1012_v3 = vrot.slane %v3341_v29, 1  ;;  %v961_v27 = vshrl.u32 %v3377_v57, 16 }
  0x56   : > { %v934_v5 = vrot.slane %v932_v2, 1 }
  0x57   : > { %1943 = vmatpush.bf16.msra.mxu2 %v2755_v15  ;;  %1894 = vmatpush.bf16.msra.mxu1 %v2747_v17  ;;  %v3498_v15 = vsel %vm996_vm5, %v1009_v11, %v1010_v12  ;;  %v870_v17 = vsel %vm3195_vm10, %v3317_v6, 0  ;;  %v2751_v6 = vld [vmem:[%s3803_s5 + $0x188] sm:$0xff]  ;;  %v3563_v11 = vld [vmem:[%s3804_s6] ss:$0 sm:$0xff] }
  0x58   : > { %1992 = vmatpush.bf16.msra.mxu3 %v2763_v16  ;;  %2041 = vmatpush.bf16.msra.mxu0 %v2771_v23  ;;  %v939_v16 = vshll.u32 %v3341_v29, 16  ;;  %v944_v23 = vshll.u32 %v870_v17, 16  ;;  %v1013_v42 = vrot.slane %v870_v17, 1  ;;  %v872_v17 = vsel %vm3195_vm10, %v3354_v43, 0 }
  0x5a   : > { %1802 = vmatmul.bf16.vlgmr.msrb.gmra.mxu3 %v856_v1  ;;  %v929_v1 = vrot.slane %v927_v35, 1  ;;  %v941_v21 = vrot.slane %v939_v16, 1  ;;  %v946_v33 = vrot.slane %v944_v23, 1  ;;  %v3531_v49 = vsel %vm996_vm5, %v1012_v3, %v1013_v42 }
  0x5b   : > { %1944 = vmatpush.bf16.msra.mxu2 %v2754_v37  ;;  %1895 = vmatpush.bf16.msra.mxu1 %v2746_v14  ;;  %v570_v37 = vadd.f32 %v3109_v10, %v551_v28 }
  0x5c   : > { %1993 = vmatpush.bf16.msra.mxu3 %v2762_v40  ;;  %2042 = vmatpush.bf16.msra.mxu0 %v2770_v45  ;;  %v930_v4 = vor.u32 %v929_v1, %v925_v0  ;;  %v571_v40 = vadd.f32 %v3109_v10, %v552_v30  ;;  %v2767_v10 = vld [vmem:[%s3803_s5 + $0x208] sm:$0xff]  ;;  %v2758_v1 = vld [vmem:[%s3803_s5 + $0x1c0] sm:$0xff]  ;;  %v968_v30 = vshll.u32 %v872_v17, 16 }
  0x5d   : > { %v602_v45 = vmul.f32 0.01, %v570_v37  ;;  %vm586_vm6 = vcmp.gt.f32.partialorder %v570_v37, 0.0 }
  0x5e   : > { %1709 = vmatmul.bf16.gmra.mxu1 %v899_v19  ;;  %v3489_v9 = vsel %vm875_vm4, %v930_v4, %v934_v5  ;;  %v603_v48 = vmul.f32 0.01, %v571_v40  ;;  %vm587_vm7 = vcmp.gt.f32.partialorder %v571_v40, 0.0  ;;  %v1015_v4 = vrot.slane %v3246_v58, 1 }
  0x5f   : > { %1945 = vmatpush.bf16.msra.mxu2 %v2753_v55  ;;  %1896 = vmatpush.bf16.msra.mxu1 %v2745_v39  ;;  %v618_v52 = vsel %vm586_vm6, %v570_v37, %v602_v45  ;;  %v953_v55 = vrot.slane %v951_v50, 1  ;;  %v1016_v5 = vrot.slane %v871_v51, 1  ;;  %v1019_v50 = vrot.slane %v872_v17, 1 }
  0x60   : > { %1994 = vmatpush.bf16.msra.mxu3 %v2761_v56  ;;  %2043 = vmatpush.bf16.msra.mxu0 %v2769_v31  ;;  %v619_v53 = vsel %vm587_vm7, %v571_v40, %v603_v48  ;;  %v956_v56 = vshll.u32 %v871_v51, 16  ;;  %v634_v39 = vpack.c.bf16 %v618_v52, %v618_v52 }
  0x61   : > { %1851 = vmatmul.bf16.vlgmr.msrb.gmra.mxu0 %v899_v19  ;;  %v937_v19 = vshrl.u32 %v3341_v29, 16  ;;  %v635_v61 = vpack.c.bf16 %v619_v53, %v619_v53  ;;  %v954_v62 = vor.u32 %v953_v55, %v949_v54  ;;  %v3566_v12 = vsel %vm996_vm5, %v1015_v4, %v1016_v5 }
  0x62   : > { %v958_v31 = vrot.slane %v956_v56, 1  ;;  %v748_v35 = vunpack.c.l.b16 %v634_v39 }
  0x63   : > { %1946 = vmatpush.bf16.msra.mxu2 %v2752_v7  ;;  %1897 = vmatpush.bf16.msra.mxu1 %v2744_v26  ;;  %v942_v32 = vor.u32 %v941_v21, %v937_v19  ;;  %v749_v63 = vunpack.c.l.b16 %v635_v61  ;;  %v2766_v26 = vld [vmem:[%s3803_s5 + $0x200] sm:$0xff] }
  0x64   : > { %1995 = vmatpush.bf16.msra.mxu3 %v2760_v8  ;;  %2044 = vmatpush.bf16.msra.mxu0 %v2768_v13  ;;  %v3549_v2 = vsel %vm875_vm4, %v954_v62, %v958_v31  ;;  %v2742_v8 = vld [vmem:[%s3803_s5 + $0x140] sm:$0xff]  ;;  %v963_v13 = vshll.u32 %v3377_v57, 16 }
  0x65   : > { %1758 = vmatmul.bf16.gmra.mxu2 %v3414_v24  ;;  %v3519_v14 = vsel %vm875_vm4, %v942_v32, %v946_v33  ;;  %v760_v7 = vpack.c.b16 %v749_v63, %v748_v35 }
  0x66   : > { %v965_v28 = vrot.slane %v963_v13, 1 }
  0x67   : > { %1947 = vmatpush.bf16.msra.mxu2 %v2751_v6  ;;  %1898 = vmatpush.bf16.msra.mxu1 %v2743_v44  ;;  %v819_v19 = vshrl.u32 %v760_v7, 16  ;;  %v822_v33 = vshll.u32 %v760_v7, 16  ;;  %v970_v6 = vrot.slane %v968_v30, 1 }
  0x68   : > { %1996 = vmatpush.bf16.msra.mxu3 %v2759_v34  ;;  %2045 = vmatpush.bf16.msra.mxu0 %v2767_v10  ;;  %v966_v43 = vor.u32 %v965_v28, %v961_v27  ;;  %v1018_v10 = vrot.slane %v3377_v57, 1 }
  0x69   : > { %v821_v32 = vrot.slane %v819_v19, 7 }
  0x6a   : > { %1807 = vmatmul.bf16.gmra.mxu3 %v3207_v36  ;;  %v3589_v45 = vsel %vm875_vm4, %v966_v43, %v970_v6  ;;  %v3602_v52 = vsel %vm996_vm5, %v1018_v10, %v1019_v50 }
  0x6b   : > { %1948 = vmatpush.bf16.msra.mxu2 %v2750_v38  ;;  %1899 = vmatpush.bf16.msra.mxu1 %v2742_v8  ;;  %v824_v37 = vor.u32 %v822_v33, %v821_v32  ;;  %v3607_v54 = vsel %vm3195_vm10, %v821_v32, 0 }
  0x6c   : > { %1997 = vmatpush.bf16.msra.mxu3 %v2758_v1  ;;  %2046 = vmatpush.bf16.msra.mxu0 %v2766_v26  ;;  %v1037_v62 = vshll.u32 %v3607_v54, 16 }
  0x6d   : > { %v3598_v51 = vsel %vm3195_vm10, 0, %v824_v37 }
  0x6e   : > { %1714 = vmatmul.bf16.gmra.mxu1 %v3433_v41  ;;  %v1032_v53 = vshll.u32 %v3598_v51, 16  ;;  %v1030_v39 = vshrl.u32 %v3598_v51, 16  ;;  %v1039_v38 = vrot.slane %v1037_v62, 1 }
  0x70   : > { %v1034_v61 = vrot.slane %v1032_v53, 1 }
  0x71   : > { %1856 = vmatmul.bf16.gmra.mxu0 %v3433_v41 }
  0x72   : > { %v1035_v63 = vor.u32 %v1034_v61, %v1030_v39 }
  0x74   : > { %v3620_v8 = vsel %vm875_vm4, %v1035_v63, %v1039_v38 }
  0x75   : > { %1763 = vmatmul.bf16.gmra.mxu2 %v3442_v47 }
  0x7a   : > { %1812 = vmatmul.bf16.gmra.mxu3 %v3301_v59 }
  0x7e   : > { %1719 = vmatmul.bf16.gmra.mxu1 %v3461_v60 }
  0x81   : > { %1861 = vmatmul.bf16.gmra.mxu0 %v3461_v60 }
  0x85   : > { %1768 = vmatmul.bf16.gmra.mxu2 %v3470_v18 }
  0x8a   : > { %1817 = vmatmul.bf16.gmra.mxu3 %v3223_v46 }
  0x8e   : > { %1724 = vmatmul.bf16.gmra.mxu1 %v3489_v9 }
  0x91   : > { %1866 = vmatmul.bf16.gmra.mxu0 %v3489_v9 }
  0x95   : > { %1773 = vmatmul.bf16.gmra.mxu2 %v3498_v15 }
  0x9a   : > { %1822 = vmatmul.bf16.gmra.mxu3 %v3341_v29 }
  0x9e   : > { %1729 = vmatmul.bf16.gmra.mxu1 %v3519_v14 }
  0xa1   : > { %1871 = vmatmul.bf16.gmra.mxu0 %v3519_v14 }
  0xa5   : > { %1778 = vmatmul.bf16.gmra.mxu2 %v3531_v49 }
  0xaa   : > { %1827 = vmatmul.bf16.gmra.mxu3 %v3246_v58 }
  0xab   : > { %v3540_v0 = vpop.f32.mrf.mxu1 }
  0xae   : > { %1734 = vmatmul.bf16.gmra.mxu1 %v3549_v2 }
  0xb1   : > { %1876 = vmatmul.bf16.gmra.mxu0 %v3549_v2  ;;  %v1676_v16 = vpop.f32.mrf.mxu2 }
  0xb2   : > { %v3573_v20 = vadd.f32 %v3563_v11, %v1676_v16 }
  0xb3   : > { %v3575_v21 = vpop.f32.mrf.mxu1 }
  0xb4   : > { %v1686_v23 = vpop.f32.mrf.mxu3 }
  0xb5   : > { %1783 = vmatmul.bf16.gmra.mxu2 %v3566_v12  ;;  %v3579_v25 = vadd.f32 %v3563_v11, %v1686_v23 }
  0xb9   : > { %v1678_v34 = vpop.f32.mrf.mxu2 }
  0xba   : > { %1832 = vmatmul.bf16.gmra.mxu3 %v3377_v57  ;;  %v3584_v40 = vadd.f32 %v3563_v11, %v1678_v34 }
  0xbb   : > { %v3586_v3 = vpop.f32.mrf.mxu1 }
  0xbc   : > { %v1688_v42 = vpop.f32.mrf.mxu3 }
  0xbd   : > { %v3592_v48 = vadd.f32 %v3563_v11, %v1688_v42 }
  0xbe   : > { %v1656_v44 = vpop.f32.mrf.mxu0  ;;  %1739 = vmatmul.bf16.gmra.mxu1 %v3589_v45 }
  0xbf   : > { %v1657_v1 = vadd.f32 %v3563_v11, %v1656_v44 }
  0xc1   : > { %1881 = vmatmul.bf16.gmra.mxu0 %v3589_v45 }
  0xc3   : > { %v3609_v55 = vpop.f32.mrf.mxu1 }
  0xc5   : > { %1788 = vmatmul.bf16.gmra.mxu2 %v3602_v52 }
  0xc6   : > { %v1658_v56 = vpop.f32.mrf.mxu0 }
  0xc7   : > { %v1659_v19 = vadd.f32 %v3563_v11, %v1658_v56 }
  0xc8   : > { %v1681_v31 = vpop.f32.mrf.mxu2 }
  0xc9   : > { %v3615_v35 = vadd.f32 %v3563_v11, %v1681_v31 }
  0xca   : > { %1837 = vmatmul.bf16.gmra.mxu3 %v3598_v51 }
  0xcb   : > { %v1705_v4 = vpop.f32.mrf.mxu1 }
  0xcc   : > { %v1706_v5 = vadd.f32 %v1705_v4, %v1657_v1 }
  0xcd   : > { %v1691_v26 = vpop.f32.mrf.mxu3 }
  0xce   : > { %v1661_v7 = vpop.f32.mrf.mxu0  ;;  %1900 = vmatmul.bf16.vlgmr.msra.gmra.mxu1 %v3414_v24  ;;  %v3624_v13 = vadd.f32 %v3563_v11, %v1691_v26 }
  0xcf   : > { %v1662_v43 = vadd.f32 %v3563_v11, %v1661_v7 }
  0xd0   : > { %v1683_v16 = vpop.f32.mrf.mxu2 }
  0xd1   : > { %1886 = vmatmul.bf16.gmra.mxu0 %v3620_v8  ;;  %v3628_v17 = vadd.f32 %v3563_v11, %v1683_v16  ;;  %v1669_v16 = vadd.f32 %v3563_v11, %v3575_v21  ;;  %v1672_v21 = vadd.f32 %v3563_v11, %v3586_v3 }
  0xd3   : > { %v1707_v23 = vpop.f32.mrf.mxu1 }
  0xd4   : > { %v1708_v27 = vadd.f32 %v1707_v23, %v1659_v19 }
  0xd5   : > { %1949 = vmatmul.bf16.vlgmr.msra.gmra.mxu2 %v3207_v36  ;;  %v1693_v30 = vpop.f32.mrf.mxu3 }
  0xd6   : > { %v1663_v28 = vpop.f32.mrf.mxu0  ;;  %v3633_v32 = vadd.f32 %v3563_v11, %v1693_v30 }
  0xd7   : > { %v1664_v53 = vadd.f32 %v3563_v11, %v1663_v28 }
  0xd8   : > { %v1754_v24 = vpop.f32.mrf.mxu2 }
  0xd9   : > { %v1755_v33 = vadd.f32 %v1754_v24, %v1706_v5 }
  0xda   : > { %1998 = vmatmul.bf16.vlgmr.msra.gmra.mxu3 %v3433_v41 }
  0xdb   : > { %v1710_v6 = vpop.f32.mrf.mxu1 }
  0xdc   : > { %v1711_v34 = vadd.f32 %v1710_v6, %v1662_v43 }
  0xdd   : > { %v1803_v42 = vpop.f32.mrf.mxu3 }
  0xde   : > { %v1852_v37 = vpop.f32.mrf.mxu0  ;;  %1905 = vmatmul.bf16.gmra.mxu1 %v3442_v47  ;;  %v1804_v44 = vadd.f32 %v1803_v42, %v1755_v33 }
  0xe0   : > { %v1756_v36 = vpop.f32.mrf.mxu2  ;;  %v3639_v50 = vadd.f32 %v1852_v37, %v1804_v44 }
  0xe1   : > { %2047 = vmatmul.bf16.vlgmr.msra.gmra.mxu0 %v3442_v47  ;;  %v1757_v10 = vadd.f32 %v1756_v36, %v1708_v27  ;;  %v1667_v47 = vadd.f32 %v3563_v11, %v3540_v0 }
  0xe3   : > { %v1712_v56 = vpop.f32.mrf.mxu1 }
  0xe4   : > { %v1713_v41 = vadd.f32 %v1712_v56, %v1664_v53 }
  0xe5   : > { %1954 = vmatmul.bf16.gmra.mxu2 %v3301_v59  ;;  %v1805_v61 = vpop.f32.mrf.mxu3 }
  0xe6   : > { %v1854_v39 = vpop.f32.mrf.mxu0  ;;  %v1806_v62 = vadd.f32 %v1805_v61, %v1757_v10 }
  0xe8   : > { %v1759_v31 = vpop.f32.mrf.mxu2  ;;  %v3643_v38 = vadd.f32 %v1854_v39, %v1806_v62  ;;  %v2811_v39 = vld [vmem:[%s471_s18] sm:$0xff]  }
  0xe9   : > { %v1760_v63 = vadd.f32 %v1759_v31, %v1711_v34  ;;  %v2812_v62 = vunpack.c.l.bf16 %v2811_v39 }
  0xea   : > { %2003 = vmatmul.bf16.gmra.mxu3 %v3461_v60 }
  0xeb   : > { %v1715_v1 = vpop.f32.mrf.mxu1 }
  0xec   : > { %v1716_v4 = vadd.f32 %v1715_v1, %v1667_v47 }
  0xed   : > { %v1808_v7 = vpop.f32.mrf.mxu3 }
  0xee   : > { %v1857_v5 = vpop.f32.mrf.mxu0  ;;  %1910 = vmatmul.bf16.gmra.mxu1 %v3470_v18  ;;  %v1809_v59 = vadd.f32 %v1808_v7, %v1760_v63 }
  0xf0   : > { %v1761_v26 = vpop.f32.mrf.mxu2  ;;  %v3656_v60 = vadd.f32 %v1857_v5, %v1809_v59 }
  0xf1   : > { %2052 = vmatmul.bf16.gmra.mxu0 %v3470_v18  ;;  %v1762_v0 = vadd.f32 %v1761_v26, %v1713_v41 }
  0xf3   : > { %v1717_v19 = vpop.f32.mrf.mxu1 }
  0xf4   : > { %v1718_v23 = vadd.f32 %v1717_v19, %v1669_v16 }
  0xf5   : > { %1959 = vmatmul.bf16.gmra.mxu2 %v3223_v46  ;;  %v1810_v28 = vpop.f32.mrf.mxu3 }
  0xf6   : > { %v1859_v27 = vpop.f32.mrf.mxu0  ;;  %v1811_v18 = vadd.f32 %v1810_v28, %v1762_v0 }
  0xf8   : > { %v1764_v30 = vpop.f32.mrf.mxu2  ;;  %v3667_v33 = vadd.f32 %v1859_v27, %v1811_v18 }
  0xf9   : > { %v1765_v24 = vadd.f32 %v1764_v30, %v1716_v4  ;;  %v2938_v4 = vld [vmem:[%s3802_s4] ss:$0 sm:$0xff] }
  0xfa   : > { %2008 = vmatmul.bf16.gmra.mxu3 %v3489_v9  ;;  %v1674_v9 = vadd.f32 %v3563_v11, %v3609_v55  ;;  %v2813_v11 = vunpack.c.h.bf16 %v2811_v39 }
  0xfb   : > { %v1720_v46 = vpop.f32.mrf.mxu1 }
  0xfc   : > { %v1721_v43 = vadd.f32 %v1720_v46, %v1672_v21 }
  0xfd   : > { %v1813_v34 = vpop.f32.mrf.mxu3 }
  0xfe   : > { %v1862_v6 = vpop.f32.mrf.mxu0  ;;  %1915 = vmatmul.bf16.gmra.mxu1 %v3498_v15  ;;  %v1814_v37 = vadd.f32 %v1813_v34, %v1765_v24 }
 0x100   : > { %v1766_v42 = vpop.f32.mrf.mxu2  ;;  %v3676_v3 = vadd.f32 %v1862_v6, %v1814_v37  ;;  %v703_v6 = vstv %s702_s19 }
 0x101   : > { %2057 = vmatmul.bf16.gmra.mxu0 %v3498_v15  ;;  %v1767_v44 = vadd.f32 %v1766_v42, %v1718_v23 }
 0x103   : > { %v1722_v36 = vpop.f32.mrf.mxu1 }
 0x104   : > { %v1723_v10 = vadd.f32 %v1722_v36, %v1674_v9  ;;  %v707_v36 = vunpack.c.l.bf16 %v703_v6 }
 0x105   : > { %1964 = vmatmul.bf16.gmra.mxu2 %v3341_v29  ;;  %v1815_v15 = vpop.f32.mrf.mxu3  ;;  %v2937_v29 = vld [vmem:[%s3801_s3] ss:$0 sm:$0xff] }
 0x106   : > { %v1864_v53 = vpop.f32.mrf.mxu0  ;;  %v1816_v56 = vadd.f32 %v1815_v15, %v1767_v44  ;;  %v652_v31 = vmul.f32 %v2937_v29, %v2812_v62  ;;  %v653_v63 = vmul.f32 %v2937_v29, %v2813_v11 }
 0x108   : > { %v1769_v41 = vpop.f32.mrf.mxu2  ;;  %v3687_v55 = vadd.f32 %v1864_v53, %v1816_v56  ;;  %v654_v5 = vadd.f32 %v2938_v4, %v652_v31  ;;  %v655_v7 = vadd.f32 %v2938_v4, %v653_v63 }
 0x109   : > { %v1770_v61 = vadd.f32 %v1769_v41, %v1721_v43 }
 0x10a   : > { %2013 = vmatmul.bf16.gmra.mxu3 %v3519_v14  ;;  %v658_v0 = vmul.f32 0.01, %v654_v5  ;;  %v659_v16 = vmul.f32 0.01, %v655_v7  ;;  %vm656_vm8 = vcmp.gt.f32.partialorder %v654_v5, 0.0  ;;  %vm657_vm9 = vcmp.gt.f32.partialorder %v655_v7, 0.0 }
 0x10b   : > { %v1725_v47 = vpop.f32.mrf.mxu1 }
 0x10c   : > { %v1726_v1 = vadd.f32 %v1725_v47, %v3573_v20  ;;  %v660_v27 = vsel %vm656_vm8, %v654_v5, %v658_v0  ;;  %v661_v28 = vsel %vm657_vm9, %v655_v7, %v659_v16 }
 0x10d   : > { %v1818_v26 = vpop.f32.mrf.mxu3  ;;  %v662_v21 = vpack.c.bf16 %v660_v27, %v660_v27  ;;  %v663_v46 = vpack.c.bf16 %v661_v28, %v661_v28 }
 0x10e   : > { %v1867_v59 = vpop.f32.mrf.mxu0  ;;  %1920 = vmatmul.bf16.gmra.mxu1 %v3531_v49  ;;  %v1819_v19 = vadd.f32 %v1818_v26, %v1770_v61 }
 0x10f   : > { %v705_v44 = vunpack.c.l.bf16 %v662_v21  ;;  %v706_v9 = vunpack.c.l.bf16 %v663_v46 }
 0x110   : > { %v1771_v23 = vpop.f32.mrf.mxu2  ;;  %v3699_v20 = vadd.f32 %v1867_v59, %v1819_v19 }
 0x111   : > { %2062 = vmatmul.bf16.gmra.mxu0 %v3531_v49  ;;  %v1772_v14 = vadd.f32 %v1771_v23, %v1723_v10  ;;  %v709_v15 = vmul.f32 %v707_v36, %v706_v9 }
 0x113   : > { %v1727_v18 = vpop.f32.mrf.mxu1  ;;  %v711_v29 = vpack.c.bf16 %v709_v15, %v709_v15 }
 0x114   : > { %v1728_v30 = vadd.f32 %v1727_v18, %v3584_v40  ;;  %v708_v40 = vmul.f32 %v707_v36, %v705_v44 }
 0x115   : > { %1969 = vmatmul.bf16.gmra.mxu2 %v3246_v58  ;;  %v1820_v43 = vpop.f32.mrf.mxu3  ;;  %v751_v47 = vunpack.c.l.b16 %v711_v29 }
 0x116   : > { %v1869_v24 = vpop.f32.mrf.mxu0  ;;  %v1821_v34 = vadd.f32 %v1820_v43, %v1772_v14  ;;  %v710_v11 = vpack.c.bf16 %v708_v40, %v708_v40 }
 0x118   : > { %v1774_v37 = vpop.f32.mrf.mxu2  ;;  %v3703_v42 = vadd.f32 %v1869_v24, %v1821_v34  ;;  %v750_v63 = vunpack.c.l.b16 %v710_v11 }
 0x119   : > { %v1775_v49 = vadd.f32 %v1774_v37, %v1726_v1  ;;  %v1045_v37 = vrot.slane %v3607_v54, 1 }
 0x11a   : > { %2018 = vmatmul.bf16.gmra.mxu3 %v3549_v2 }
 0x11b   : > { %v1730_v10 = vpop.f32.mrf.mxu1 }
 0x11c   : > { %v1731_v58 = vadd.f32 %v1730_v10, %v3615_v35 }
 0x11d   : > { %v1823_v56 = vpop.f32.mrf.mxu3 }
 0x11e   : > { %v1872_v53 = vpop.f32.mrf.mxu0  ;;  %1925 = vmatmul.bf16.gmra.mxu1 %v3566_v12  ;;  %v1824_v41 = vadd.f32 %v1823_v56, %v1775_v49 }
 0x120   : > { %v1776_v39 = vpop.f32.mrf.mxu2  ;;  %v3709_v62 = vadd.f32 %v1872_v53, %v1824_v41 }
 0x121   : > { %2067 = vmatmul.bf16.gmra.mxu0 %v3566_v12  ;;  %v1777_v61 = vadd.f32 %v1776_v39, %v1728_v30  ;;  %v761_v12 = vpack.c.b16 %v751_v47, %v750_v63 }
 0x123   : > { %v1732_v31 = vpop.f32.mrf.mxu1  ;;  %v826_v19 = vshrl.u32 %v761_v12, 16  ;;  %v829_v18 = vshll.u32 %v761_v12, 16 }
 0x124   : > { %v1733_v2 = vadd.f32 %v1732_v31, %v3628_v17 }
 0x125   : > { %1974 = vmatmul.bf16.gmra.mxu2 %v3377_v57  ;;  %v1825_v1 = vpop.f32.mrf.mxu3  ;;  %v828_v28 = vrot.slane %v826_v19, 7 }
 0x126   : > { %v1874_v35 = vpop.f32.mrf.mxu0  ;;  %v1826_v4 = vadd.f32 %v1825_v1, %v1777_v61 }
 0x127   : > { %v831_v24 = vor.u32 %v829_v18, %v828_v28 }
 0x128   : > { %v1779_v5 = vpop.f32.mrf.mxu2  ;;  %v3713_v59 = vadd.f32 %v1874_v35, %v1826_v4 }
 0x129   : > { %v1780_v7 = vadd.f32 %v1779_v5, %v1731_v58  ;;  %v864_v49 = vsel %vm3195_vm10, 0, %v831_v24  ;;  %v874_v58 = vsel %vm3195_vm10, %v828_v28, 0  ;;  %vm2180_vm10 = vcmask 1041408  }
 0x12a   : > { %2023 = vmatmul.bf16.gmra.mxu3 %v3589_v45  ;;  %v1051_v9 = vshll.u32 %v864_v49, 16  ;;  %v1049_v15 = vshrl.u32 %v864_v49, 16  ;;  %v1056_v41 = vshll.u32 %v874_v58, 16  ;;  %v1063_v1 = vrot.slane %v864_v49, 1 }
 0x12b   : > { %v1735_v26 = vpop.f32.mrf.mxu1  ;;  %v1064_v4 = vrot.slane %v874_v58, 1 }
 0x12c   : > { %v1736_v0 = vadd.f32 %v1735_v26, %v3579_v25  ;;  %v1053_v56 = vrot.slane %v1051_v9, 1  ;;  %v1058_v61 = vrot.slane %v1056_v41, 1 }
 0x12d   : > { %v1828_v57 = vpop.f32.mrf.mxu3  ;;  %v1065_v12 = vsel %vm996_vm5, %v1063_v1, %v1064_v4 }
 0x12e   : > { %v1877_v16 = vpop.f32.mrf.mxu0  ;;  %1930 = vmatmul.bf16.gmra.mxu1 %v3602_v52  ;;  %v1829_v17 = vadd.f32 %v1828_v57, %v1780_v7 }
 0x130   : > { %v1781_v23 = vpop.f32.mrf.mxu2  ;;  %v3719_v27 = vadd.f32 %v1877_v16, %v1829_v17 }
 0x131   : > { %2072 = vmatmul.bf16.gmra.mxu0 %v3602_v52  ;;  %v1782_v14 = vadd.f32 %v1781_v23, %v1733_v2  ;;  %v1044_v52 = vrot.slane %v3598_v51, 1 }
 0x133   : > { %v1737_v30 = vpop.f32.mrf.mxu1  ;;  %v1046_v10 = vsel %vm996_vm5, %v1044_v52, %v1045_v37 }
 0x134   : > { %v1738_v45 = vadd.f32 %v1737_v30, %v3592_v48 }
 0x135   : > { %1979 = vmatmul.bf16.gmra.mxu2 %v3598_v51  ;;  %v1830_v21 = vpop.f32.mrf.mxu3 }
 0x136   : > { %v1879_v25 = vpop.f32.mrf.mxu0  ;;  %v1831_v46 = vadd.f32 %v1830_v21, %v1782_v14 }
 0x138   : > { %v1784_v43 = vpop.f32.mrf.mxu2  ;;  %v3723_v34 = vadd.f32 %v1879_v25, %v1831_v46 }
 0x139   : > { %v1785_v6 = vadd.f32 %v1784_v43, %v1736_v0 }
 0x13a   : > { %2028 = vmatmul.bf16.gmra.mxu3 %v3620_v8 }
 0x13b   : > { %v1740_v44 = vpop.f32.mrf.mxu1 }
 0x13c   : > { %v1741_v48 = vadd.f32 %v1740_v44, %v3624_v13  ;;  %v1054_v13 = vor.u32 %v1053_v56, %v1049_v15 }
 0x13d   : > { %v1833_v53 = vpop.f32.mrf.mxu3 }
 0x13e   : > { %v1882_v36 = vpop.f32.mrf.mxu0  ;;  %1935 = vmatmul.bf16.gmra.mxu1 %v1046_v10  ;;  %v1834_v51 = vadd.f32 %v1833_v53, %v1785_v6  ;;  %v1059_v35 = vsel %vm875_vm4, %v1054_v13, %v1058_v61 }
 0x140   : > { %v1786_v40 = vpop.f32.mrf.mxu2  ;;  %v3734_v8 = vadd.f32 %v1882_v36, %v1834_v51 }
 0x141   : > { %2077 = vmatmul.bf16.gmra.mxu0 %v1046_v10  ;;  %v1787_v54 = vadd.f32 %v1786_v40, %v1738_v45 }
 0x143   : > { %v1742_v39 = vpop.f32.mrf.mxu1 }
 0x144   : > { %v1743_v11 = vadd.f32 %v1742_v39, %v3633_v32 }
 0x145   : > { %1984 = vmatmul.bf16.gmra.mxu2 %v864_v49  ;;  %v1835_v22 = vpop.f32.mrf.mxu3 }
 0x146   : > { %v1884_v29 = vpop.f32.mrf.mxu0  ;;  %v1836_v31 = vadd.f32 %v1835_v22, %v1787_v54 }
 0x148   : > { %v1789_v2 = vpop.f32.mrf.mxu2  ;;  %v3738_v47 = vadd.f32 %v1884_v29, %v1836_v31 }
 0x149   : > { %v1790_v63 = vadd.f32 %v1789_v2, %v1741_v48 }
 0x14a   : > { %2033 = vmatmul.bf16.gmra.mxu3 %v1059_v35 }
 0x14b   : > { %v1901_v5 = vpop.f32.mrf.mxu1 }
 0x14c   : > { %v1902_v45 = vadd.f32 %v1901_v5, %v3639_v50 }
 0x14d   : > { %v1838_v26 = vpop.f32.mrf.mxu3 }
 0x14e   : > { %v1887_v7 = vpop.f32.mrf.mxu0  ;;  %v1839_v0 = vadd.f32 %v1838_v26, %v1790_v63 }
 0x150   : > { %v1791_v16 = vpop.f32.mrf.mxu2  ;;  %v3741_v19 = vadd.f32 %v1887_v7, %v1839_v0 }
 0x151   : > { %2082 = vmatmul.bf16.gmra.mxu0 %v1065_v12  ;;  %v1792_v32 = vadd.f32 %v1791_v16, %v1743_v11 }
 0x153   : > { %v1903_v57 = vpop.f32.mrf.mxu1 }
 0x154   : > { %v1904_v43 = vadd.f32 %v1903_v57, %v3643_v38 }
 0x155   : > { %v1840_v23 = vpop.f32.mrf.mxu3 }
 0x156   : > { %v1889_v17 = vpop.f32.mrf.mxu0  ;;  %v1841_v14 = vadd.f32 %v1840_v23, %v1792_v32 }
 0x158   : > { %v1950_v28 = vpop.f32.mrf.mxu2  ;;  %v3743_v18 = vadd.f32 %v1889_v17, %v1841_v14 }
 0x159   : > { %v1951_v24 = vadd.f32 %v1950_v28, %v1902_v45 }
 0x15b   : > { %v1906_v30 = vpop.f32.mrf.mxu1 }
 0x15c   : > { %v1907_v58 = vadd.f32 %v1906_v30, %v3656_v60 }
 0x15d   : > { %v1999_v21 = vpop.f32.mrf.mxu3 }
 0x15e   : > { %v2048_v25 = vpop.f32.mrf.mxu0  ;;  %v2000_v6 = vadd.f32 %v1999_v21, %v1951_v24 }
 0x160   : > { %v1952_v46 = vpop.f32.mrf.mxu2  ;;  %v2049_v44 = vadd.f32 %v2048_v25, %v2000_v6 }
 0x161   : > { %v1953_v52 = vadd.f32 %v1952_v46, %v1904_v43 }
 0x162   : > { %v2141_v53 = vmul.f32 %v2049_v44, %v2049_v44 }
 0x163   : > { %v1908_v37 = vpop.f32.mrf.mxu1 }
 0x164   : > { %v1909_v61 = vadd.f32 %v1908_v37, %v3667_v33 }
 0x165   : > { %v2001_v48 = vpop.f32.mrf.mxu3 }
 0x166   : > { %v2050_v49 = vpop.f32.mrf.mxu0  ;;  %v2002_v9 = vadd.f32 %v2001_v48, %v1953_v52 }
 0x168   : > { %v1955_v36 = vpop.f32.mrf.mxu2  ;;  %v2051_v10 = vadd.f32 %v2050_v49, %v2002_v9 }
 0x169   : > { %v1956_v40 = vadd.f32 %v1955_v36, %v1907_v58 }
 0x16a   : > { %v2817_v50 = vpack.c.bf16 %v2051_v10, %v2049_v44  ;;  %v2120_v38 = vadd.f32 %v2051_v10, %v2049_v44  ;;  %v2142_v51 = vmul.f32 %v2051_v10, %v2051_v10 }
 0x16b   : > { %v1911_v54 = vpop.f32.mrf.mxu1 }
 0x16c   : > { %2818 = vst [vmem:[%s3753_s26] sm:$0xff] %v2817_v50   ;;  %v2157_v15 = vadd.f32 %v2142_v51, %v2141_v53  ;;  %v1912_v7 = vadd.f32 %v1911_v54, %v3676_v3 }
 0x16d   : > { %v2004_v41 = vpop.f32.mrf.mxu3 }
 0x16e   : > { %v2053_v56 = vpop.f32.mrf.mxu0  ;;  %v2005_v39 = vadd.f32 %v2004_v41, %v1956_v40 }
 0x170   : > { %v1957_v13 = vpop.f32.mrf.mxu2  ;;  %v2054_v60 = vadd.f32 %v2053_v56, %v2005_v39 }
 0x171   : > { %v1958_v22 = vadd.f32 %v1957_v13, %v1909_v61 }
 0x172   : > { %v2121_v11 = vadd.f32 %v2120_v38, %v2054_v60  ;;  %v2143_v29 = vmul.f32 %v2054_v60, %v2054_v60 }
 0x173   : > { %v1913_v31 = vpop.f32.mrf.mxu1 }
 0x174   : > { %v2158_v2 = vadd.f32 %v2157_v15, %v2143_v29  ;;  %v1914_v30 = vadd.f32 %v1913_v31, %v3687_v55 }
 0x175   : > { %v2006_v63 = vpop.f32.mrf.mxu3 }
 0x176   : > { %v2055_v35 = vpop.f32.mrf.mxu0  ;;  %v2007_v1 = vadd.f32 %v2006_v63, %v1958_v22 }
 0x178   : > { %v1960_v4 = vpop.f32.mrf.mxu2  ;;  %v2056_v5 = vadd.f32 %v2055_v35, %v2007_v1 }
 0x179   : > { %v1961_v16 = vadd.f32 %v1960_v4, %v1912_v7 }
 0x17a   : > { %v2822_v12 = vpack.c.bf16 %v2056_v5, %v2054_v60  ;;  %v2122_v26 = vadd.f32 %v2121_v11, %v2056_v5  ;;  %v2144_v0 = vmul.f32 %v2056_v5, %v2056_v5 }
 0x17b   : > { %v1916_v32 = vpop.f32.mrf.mxu1 }
 0x17c   : > { %2861 = vst [vmem:[%s3753_s26 + $0x8] sm:$0xff] %v2822_v12   ;;  %v2159_v33 = vadd.f32 %v2158_v2, %v2144_v0  ;;  %v1917_v49 = vadd.f32 %v1916_v32, %v3699_v20 }
 0x17d   : > { %v2009_v17 = vpop.f32.mrf.mxu3 }
 0x17e   : > { %v2058_v57 = vpop.f32.mrf.mxu0  ;;  %v2010_v23 = vadd.f32 %v2009_v17, %v1961_v16 }
 0x180   : > { %v1962_v14 = vpop.f32.mrf.mxu2  ;;  %v2059_v28 = vadd.f32 %v2058_v57, %v2010_v23 }
 0x181   : > { %v1963_v24 = vadd.f32 %v1962_v14, %v1914_v30 }
 0x182   : > { %v2123_v45 = vadd.f32 %v2122_v26, %v2059_v28  ;;  %v2145_v25 = vmul.f32 %v2059_v28, %v2059_v28 }
 0x183   : > { %v1918_v21 = vpop.f32.mrf.mxu1 }
 0x184   : > { %v2160_v3 = vadd.f32 %v2159_v33, %v2145_v25  ;;  %v1919_v40 = vadd.f32 %v1918_v21, %v3703_v42 }
 0x185   : > { %v2011_v43 = vpop.f32.mrf.mxu3 }
 0x186   : > { %v2060_v46 = vpop.f32.mrf.mxu0  ;;  %v2012_v6 = vadd.f32 %v2011_v43, %v1963_v24 }
 0x188   : > { %v1965_v52 = vpop.f32.mrf.mxu2  ;;  %v2061_v37 = vadd.f32 %v2060_v46, %v2012_v6 }
 0x189   : > { %v1966_v36 = vadd.f32 %v1965_v52, %v1917_v49 }
 0x18a   : > { %v2827_v44 = vpack.c.bf16 %v2061_v37, %v2059_v28  ;;  %v2124_v48 = vadd.f32 %v2123_v45, %v2061_v37  ;;  %v2146_v9 = vmul.f32 %v2061_v37, %v2061_v37 }
 0x18b   : > { %v1921_v10 = vpop.f32.mrf.mxu1 }
 0x18c   : > { %2862 = vst [vmem:[%s3753_s26 + $0x10] sm:$0xff] %v2827_v44   ;;  %v2161_v55 = vadd.f32 %v2160_v3, %v2146_v9  ;;  %v1922_v29 = vadd.f32 %v1921_v10, %v3709_v62 }
 0x18d   : > { %v2014_v53 = vpop.f32.mrf.mxu3 }
 0x18e   : > { %v2063_v58 = vpop.f32.mrf.mxu0  ;;  %v2015_v50 = vadd.f32 %v2014_v53, %v1966_v36 }
 0x190   : > { %v1967_v38 = vpop.f32.mrf.mxu2  ;;  %v2064_v51 = vadd.f32 %v2063_v58, %v2015_v50 }
 0x191   : > { %v1968_v56 = vadd.f32 %v1967_v38, %v1919_v40 }
 0x192   : > { %v2125_v54 = vadd.f32 %v2124_v48, %v2064_v51  ;;  %v2147_v15 = vmul.f32 %v2064_v51, %v2064_v51 }
 0x193   : > { %v1923_v41 = vpop.f32.mrf.mxu1 }
 0x194   : > { %v2162_v20 = vadd.f32 %v2161_v55, %v2147_v15  ;;  %v1924_v26 = vadd.f32 %v1923_v41, %v3713_v59 }
 0x195   : > { %v2016_v13 = vpop.f32.mrf.mxu3 }
 0x196   : > { %v2065_v39 = vpop.f32.mrf.mxu0  ;;  %v2017_v60 = vadd.f32 %v2016_v13, %v1968_v56 }
 0x198   : > { %v1970_v61 = vpop.f32.mrf.mxu2  ;;  %v2066_v11 = vadd.f32 %v2065_v39, %v2017_v60 }
 0x199   : > { %v1971_v35 = vadd.f32 %v1970_v61, %v1922_v29 }
 0x19a   : > { %v2832_v22 = vpack.c.bf16 %v2066_v11, %v2064_v51  ;;  %v2126_v31 = vadd.f32 %v2125_v54, %v2066_v11  ;;  %v2148_v2 = vmul.f32 %v2066_v11, %v2066_v11 }
 0x19b   : > { %v1926_v63 = vpop.f32.mrf.mxu1 }
 0x19c   : > { %2863 = vst [vmem:[%s3753_s26 + $0x18] sm:$0xff] %v2832_v22   ;;  %v2163_v42 = vadd.f32 %v2162_v20, %v2148_v2  ;;  %v1927_v30 = vadd.f32 %v1926_v63, %v3719_v27 }
 0x19d   : > { %v2019_v4 = vpop.f32.mrf.mxu3 }
 0x19e   : > { %v2068_v1 = vpop.f32.mrf.mxu0  ;;  %v2020_v5 = vadd.f32 %v2019_v4, %v1971_v35 }
 0x1a0   : > { %v1972_v7 = vpop.f32.mrf.mxu2  ;;  %v2069_v12 = vadd.f32 %v2068_v1, %v2020_v5 }
 0x1a1   : > { %v1973_v32 = vadd.f32 %v1972_v7, %v1924_v26 }
 0x1a2   : > { %v2127_v0 = vadd.f32 %v2126_v31, %v2069_v12  ;;  %v2149_v16 = vmul.f32 %v2069_v12, %v2069_v12 }
 0x1a3   : > { %v1928_v57 = vpop.f32.mrf.mxu1 }
 0x1a4   : > { %v2164_v33 = vadd.f32 %v2163_v42, %v2149_v16  ;;  %v1929_v49 = vadd.f32 %v1928_v57, %v3723_v34 }
 0x1a5   : > { %v2021_v17 = vpop.f32.mrf.mxu3 }
 0x1a6   : > { %v2070_v62 = vpop.f32.mrf.mxu0  ;;  %v2022_v23 = vadd.f32 %v2021_v17, %v1973_v32 }
 0x1a8   : > { %v1975_v14 = vpop.f32.mrf.mxu2  ;;  %v2071_v28 = vadd.f32 %v2070_v62, %v2022_v23 }
 0x1a9   : > { %v1976_v21 = vadd.f32 %v1975_v14, %v1927_v30 }
 0x1aa   : > { %v2837_v45 = vpack.c.bf16 %v2071_v28, %v2069_v12  ;;  %v2128_v25 = vadd.f32 %v2127_v0, %v2071_v28  ;;  %v2150_v24 = vmul.f32 %v2071_v28, %v2071_v28 }
 0x1ab   : > { %v1931_v52 = vpop.f32.mrf.mxu1 }
 0x1ac   : > { %2864 = vst [vmem:[%s3753_s26 + $0x20] sm:$0xff] %v2837_v45   ;;  %v2165_v3 = vadd.f32 %v2164_v33, %v2150_v24  ;;  %v1932_v50 = vadd.f32 %v1931_v52, %v3734_v8 }
 0x1ad   : > { %v2024_v46 = vpop.f32.mrf.mxu3 }
 0x1ae   : > { %v2073_v59 = vpop.f32.mrf.mxu0  ;;  %v2025_v43 = vadd.f32 %v2024_v46, %v1976_v21 }
 0x1b0   : > { %v1977_v6 = vpop.f32.mrf.mxu2  ;;  %v2074_v37 = vadd.f32 %v2073_v59, %v2025_v43 }
 0x1b1   : > { %v1978_v9 = vadd.f32 %v1977_v6, %v1929_v49 }
 0x1b2   : > { %v2129_v44 = vadd.f32 %v2128_v25, %v2074_v37  ;;  %v2151_v48 = vmul.f32 %v2074_v37, %v2074_v37 }
 0x1b3   : > { %v1933_v38 = vpop.f32.mrf.mxu1 }
 0x1b4   : > { %v2166_v36 = vadd.f32 %v2165_v3, %v2151_v48  ;;  %v1934_v60 = vadd.f32 %v1933_v38, %v3738_v47 }
 0x1b5   : > { %v2026_v10 = vpop.f32.mrf.mxu3 }
 0x1b6   : > { %v2075_v27 = vpop.f32.mrf.mxu0  ;;  %v2027_v55 = vadd.f32 %v2026_v10, %v1978_v9 }
 0x1b8   : > { %v1980_v58 = vpop.f32.mrf.mxu2  ;;  %v2076_v53 = vadd.f32 %v2075_v27, %v2027_v55 }
 0x1b9   : > { %v1981_v15 = vadd.f32 %v1980_v58, %v1932_v50 }
 0x1ba   : > { %v2842_v51 = vpack.c.bf16 %v2076_v53, %v2074_v37  ;;  %v2130_v40 = vadd.f32 %v2129_v44, %v2076_v53  ;;  %v2152_v54 = vmul.f32 %v2076_v53, %v2076_v53 }
 0x1bb   : > { %v1936_v22 = vpop.f32.mrf.mxu1 }
 0x1bc   : > { %2865 = vst [vmem:[%s3753_s26 + $0x28] sm:$0xff] %v2842_v51   ;;  %v2167_v56 = vadd.f32 %v2166_v36, %v2152_v54  ;;  %v1937_v1 = vadd.f32 %v1936_v22, %v3741_v19 }
 0x1bd   : > { %v2029_v41 = vpop.f32.mrf.mxu3 }
 0x1be   : > { %v2078_v34 = vpop.f32.mrf.mxu0  ;;  %v2030_v20 = vadd.f32 %v2029_v41, %v1981_v15 }
 0x1c0   : > { %v1982_v39 = vpop.f32.mrf.mxu2  ;;  %v2079_v13 = vadd.f32 %v2078_v34, %v2030_v20 }
 0x1c1   : > { %v1983_v29 = vadd.f32 %v1982_v39, %v1934_v60 }
 0x1c2   : > { %v2131_v61 = vadd.f32 %v2130_v40, %v2079_v13  ;;  %v2153_v11 = vmul.f32 %v2079_v13, %v2079_v13 }
 0x1c3   : > { %v1938_v47 = vpop.f32.mrf.mxu1 }
 0x1c4   : > { %v2168_v8 = vadd.f32 %v2167_v56, %v2153_v11  ;;  %v1939_v57 = vadd.f32 %v1938_v47, %v3743_v18 }
 0x1c5   : > { %v2031_v2 = vpop.f32.mrf.mxu3 }
 0x1c6   : > { %v2080_v31 = vpop.f32.mrf.mxu0  ;;  %v2032_v35 = vadd.f32 %v2031_v2, %v1983_v29 }
 0x1c8   : > { %v1985_v63 = vpop.f32.mrf.mxu2  ;;  %v2081_v42 = vadd.f32 %v2080_v31, %v2032_v35 }
 0x1c9   : > { %v1986_v12 = vadd.f32 %v1985_v63, %v1937_v1 }
 0x1ca   : > { %v2847_v4 = vpack.c.bf16 %v2081_v42, %v2079_v13  ;;  %v2132_v5 = vadd.f32 %v2131_v61, %v2081_v42  ;;  %v2154_v7 = vmul.f32 %v2081_v42, %v2081_v42 }
 0x1cc   : > { %2866 = vst [vmem:[%s3753_s26 + $0x30] sm:$0xff] %v2847_v4   ;;  %v2169_v26 = vadd.f32 %v2168_v8, %v2154_v7 }
 0x1cd   : > { %v2034_v0 = vpop.f32.mrf.mxu3 }
 0x1ce   : > { %v2083_v16 = vpop.f32.mrf.mxu0  ;;  %v2035_v32 = vadd.f32 %v2034_v0, %v1986_v12 }
 0x1d0   : > { %v1987_v33 = vpop.f32.mrf.mxu2  ;;  %v2084_v62 = vadd.f32 %v2083_v16, %v2035_v32 }
 0x1d1   : > { %v1988_v19 = vadd.f32 %v1987_v33, %v1939_v57 }
 0x1d2   : > { %v2133_v17 = vadd.f32 %v2132_v5, %v2084_v62  ;;  %v2155_v23 = vmul.f32 %v2084_v62, %v2084_v62 }
 0x1d4   : > { %v2170_v14 = vadd.f32 %v2169_v26, %v2155_v23 }
 0x1d5   : > { %v2036_v28 = vpop.f32.mrf.mxu3 }
 0x1d6   : > { %v2037_v30 = vadd.f32 %v2036_v28, %v1988_v19  ;;  %v2085_v45 = vpop.f32.mrf.mxu0 }
 0x1d8   : > { %v2086_v25 = vadd.f32 %v2085_v45, %v2037_v30 }
 0x1da   : > { %v2852_v24 = vpack.c.bf16 %v2086_v25, %v2084_v62  ;;  %v2134_v21 = vadd.f32 %v2133_v17, %v2086_v25  ;;  %v2156_v3 = vmul.f32 %v2086_v25, %v2086_v25 }
 0x1dc   : > { %2867 = vst [vmem:[%s3753_s26 + $0x38] sm:$0xff] %v2852_v24   ;;  %v2135_v59 = vrot.slane %v2134_v21, 4  ;;  %v2171_v46 = vadd.f32 %v2170_v14, %v2156_v3 }
 0x1de   : > { %v2136_v43 = vadd.f32 %v2135_v59, %v2134_v21  ;;  %v2172_v18 = vrot.slane %v2171_v46, 4 }
 0x1e0   : > { %v2137_v6 = vrot.slane %v2136_v43, 2  ;;  %v2173_v52 = vadd.f32 %v2172_v18, %v2171_v46 }
 0x1e2   : > { %v2138_v37 = vadd.f32 %v2137_v6, %v2136_v43  ;;  %v2174_v49 = vrot.slane %v2173_v52, 2 }
 0x1e4   : > { %v2139_v44 = vrot.slane %v2138_v37, 1  ;;  %v2175_v48 = vadd.f32 %v2174_v49, %v2173_v52 }
 0x1e6   : > { %v2176_v9 = vrot.slane %v2175_v48, 1  ;;  %v2140_v36 = vadd.f32 %v2139_v44, %v2138_v37 }
 0x1e8   : > { %v2177_v27 = vadd.f32 %v2176_v9, %v2175_v48 }
 0x1ea   : > { %v2179_v10 = vsel %vm852_vm2, %v2140_v36, %v2177_v27 }
 0x1eb   : > { %v2181_v55 = vsel %vm2180_vm10, %v2179_v10, 0.0 }
 0x1ec   : > { %2182 = vst [vmem:[%s494_s14] sm:$0xff] %v2181_v55 }
 0x1ed PF: > { %s19_s9 = sadd.s32 1, %s2977_s9   ;;  %s3810_s27 = smov %s2969_s29 }
 0x1ee   : > { %p16_p1 = scmp.ge.s32.totalorder %s19_s9, 8   ;;  %s3811_s28 = smov %s2973_s30 }
 0x1ef   : > { %s3812_s29 = smov %s3815_s10  ;;  %s3813_s30 = smov %s3819_s11 }
 0x1f0   :  { %18 = sbr.rel (!%p16_p1) target bundleno = 3 (0x3), region = 96 }

</bundles_post_ra>
